<compile_context>
chip_gen: v7x
topology: tpu7x:2x2x1
jax: 0.10.0
libtpu: 0.0.40
codegen_flags: <defaults>
</compile_context>

<pallas_src>
import functools

import numpy as np
import jax
import jax.numpy as jnp
from jax import lax
from jax.experimental import pallas as pl
from jax.experimental.pallas import tpu as pltpu

HIGHEST = jax.lax.Precision.HIGHEST


def _round_up(x, m):
    return ((x + m - 1) // m) * m


_VMEM_CACHE = []


def _vmem_limit_bytes():
    """3/4 of physical VMEM, capped at 96 MiB; None if the query fails."""
    if not _VMEM_CACHE:
        try:
            cap = pltpu.get_tpu_info().vmem_capacity_bytes
            _VMEM_CACHE.append(int(min(cap * 3 // 4, 96 * 1024 * 1024)))
        except Exception:
            _VMEM_CACHE.append(None)
    return _VMEM_CACHE[0]


def _compiler_params(semantics):
    kw = dict(dimension_semantics=semantics)
    v = _vmem_limit_bytes()
    if v is not None:
        kw["vmem_limit_bytes"] = v
    return pltpu.CompilerParams(**kw)


# --------------------------------------------------------------------------
# Pallas kernel 1: conv layer as  relu( (patches @ W) * scale + bias ) -> bf16
#   patches: (M = B*Ho*Wo, K = k*k*Cin)  bf16,  W: (K, Cout)  bf16
#   grid over M only (parallel); K and Cout live whole in VMEM.
# --------------------------------------------------------------------------
def _conv_kernel(x_ref, w_ref, s_ref, b_ref, o_ref):
    y = jnp.dot(x_ref[...], w_ref[...], preferred_element_type=jnp.float32)
    y = y * s_ref[...] + b_ref[...]
    o_ref[...] = jnp.maximum(y, 0.0).astype(o_ref.dtype)


def conv_bn_relu(patches, w2d, scale, bias):
    """patches (M, K) bf16, w2d (Kp, Cout) bf16 (pre-padded) -> (M, Cout) bf16."""
    M, K = patches.shape
    Kp, N = w2d.shape

    tm = 256 if M >= 512 else _round_up(M, 16)
    Mp = _round_up(M, tm)
    pad_m, pad_k = Mp - M, Kp - K
    if pad_m or pad_k:
        patches = jnp.pad(patches, ((0, pad_m), (0, pad_k)))

    out = pl.pallas_call(
        _conv_kernel,
        out_shape=jax.ShapeDtypeStruct((Mp, N), jnp.bfloat16),
        grid_spec=pltpu.PrefetchScalarGridSpec(
            num_scalar_prefetch=0,
            grid=(Mp // tm,),
            in_specs=[
                pl.BlockSpec((tm, Kp), lambda i: (i, 0)),
                pl.BlockSpec((Kp, N), lambda i: (0, 0)),
                pl.BlockSpec((1, N), lambda i: (0, 0)),
                pl.BlockSpec((1, N), lambda i: (0, 0)),
            ],
            out_specs=pl.BlockSpec((tm, N), lambda i: (i, 0)),
        ),
        compiler_params=_compiler_params(("parallel",)),
    )(patches, w2d, scale, bias)
    return out[:M] if Mp != M else out


# --------------------------------------------------------------------------
# Pallas kernel 2: fused FC stack + per-latent MLP tokens (one launch)
#   grid over fc1's hidden dim (weight streaming, f32 accumulator for fc2);
#   final step runs fc3 + all per-latent MLPs and writes (B, L*ctx) lane-dense.
# --------------------------------------------------------------------------
def _tail_kernel(feat_ref, fc1w_ref, fc1b_ref, fc2w_ref, fc2b_ref,
                 fc3w_ref, fc3b_ref, mw1_ref, mb1_ref, mw2_ref, mb2_ref,
                 mw3_ref, mb3_ref, o_ref, acc_ref, *, num_latents, ctx_dim):
    j = pl.program_id(0)

    @pl.when(j == 0)
    def _init():
        acc_ref[...] = jnp.zeros_like(acc_ref)

    # fc1 chunk (bf16 MXU, f32 accumulate) + ReLU, then partial fc2 reduction.
    h1 = jnp.dot(feat_ref[...], fc1w_ref[...],
                 preferred_element_type=jnp.float32)
    h1 = jnp.maximum(h1 + fc1b_ref[...], 0.0)
    acc_ref[...] += jnp.dot(h1.astype(jnp.bfloat16), fc2w_ref[...],
                            preferred_element_type=jnp.float32)

    @pl.when(j == pl.num_programs(0) - 1)
    def _finish():
        h2 = jnp.maximum(acc_ref[...] + fc2b_ref[...], 0.0)
        feats = jnp.dot(h2.astype(jnp.bfloat16), fc3w_ref[...],
                        preferred_element_type=jnp.float32) + fc3b_ref[...]
        for l in range(num_latents):                       # static unroll
            f_l = feats[:, l:l + 1]                        # (B, 1)
            a = jnp.maximum(f_l * mw1_ref[l] + mb1_ref[l], 0.0)      # (B, 256)
            b = jnp.dot(a.astype(jnp.bfloat16), mw2_ref[l],
                        preferred_element_type=jnp.float32) + mb2_ref[l]
            b = jnp.maximum(b, 0.0)                                   # (B, 512)
            t = jnp.dot(b.astype(jnp.bfloat16), mw3_ref[l],
                        preferred_element_type=jnp.float32) + mb3_ref[l]
            t = jnp.maximum(t, 0.0)                                   # (B, ctx)
            o_ref[:, l * ctx_dim:(l + 1) * ctx_dim] = t


def tail_forward(feat, p):
    """feat (B, F) bf16 -> tokens (B, L, ctx) f32, single pallas_call."""
    B, F = feat.shape
    H1 = p['fc1_w'].shape[1]                # 4096
    H2 = p['fc2_w'].shape[1]                # 256
    L = p['fc3_w'].shape[1]
    M1 = p['mlp_w1'].shape[-1]              # 256
    M2 = p['mlp_w2'].shape[-1]              # 512
    C = p['mlp_w3'].shape[-1]

    if H1 % 1024 == 0:
        hc = 1024
    elif H1 % 512 == 0:
        hc = 512
    else:
        hc = H1

    kern = functools.partial(_tail_kernel, num_latents=L, ctx_dim=C)
    out = pl.pallas_call(
        kern,
        out_shape=jax.ShapeDtypeStruct((B, L * C), jnp.float32),
        grid_spec=pltpu.PrefetchScalarGridSpec(
            num_scalar_prefetch=0,
            grid=(H1 // hc,),
            in_specs=[
                pl.BlockSpec((B, F), lambda j: (0, 0)),            # feat
                pl.BlockSpec((F, hc), lambda j: (0, j)),           # fc1_w chunk
                pl.BlockSpec((1, hc), lambda j: (0, j)),           # fc1_b chunk
                pl.BlockSpec((hc, H2), lambda j: (j, 0)),          # fc2_w chunk
                pl.BlockSpec((1, H2), lambda j: (0, 0)),           # fc2_b
                pl.BlockSpec((H2, L), lambda j: (0, 0)),           # fc3_w
                pl.BlockSpec((1, L), lambda j: (0, 0)),            # fc3_b
                pl.BlockSpec((L, 1, M1), lambda j: (0, 0, 0)),     # mlp_w1
                pl.BlockSpec((L, 1, M1), lambda j: (0, 0, 0)),     # mlp_b1
                pl.BlockSpec((L, M1, M2), lambda j: (0, 0, 0)),    # mlp_w2
                pl.BlockSpec((L, 1, M2), lambda j: (0, 0, 0)),     # mlp_b2
                pl.BlockSpec((L, M2, C), lambda j: (0, 0, 0)),     # mlp_w3
                pl.BlockSpec((L, 1, C), lambda j: (0, 0, 0)),      # mlp_b3
            ],
            out_specs=pl.BlockSpec((B, L * C), lambda j: (0, 0)),
            scratch_shapes=[pltpu.VMEM((B, H2), jnp.float32)],
        ),
        compiler_params=_compiler_params(("arbitrary",)),
    )(feat, p['fc1_w'], p['fc1_b'], p['fc2_w'], p['fc2_b'],
      p['fc3_w'], p['fc3_b'], p['mlp_w1'], p['mlp_b1'],
      p['mlp_w2'], p['mlp_b2'], p['mlp_w3'], p['mlp_b3'])
    return out.reshape(B, L, C)


# --------------------------------------------------------------------------
# Glue: NHWC im2col (XLA-level), parameter init, full forward, reference
# --------------------------------------------------------------------------
def im2col_nhwc(x, k, stride, pad):
    """x (B, H, W, C) -> patches (B*Ho*Wo, k*k*C), tap order (i, j, c)."""
    B, H, W, C = x.shape
    Ho = (H + 2 * pad - k) // stride + 1
    Wo = (W + 2 * pad - k) // stride + 1
    xp = jnp.pad(x, ((0, 0), (pad, pad), (pad, pad), (0, 0)))
    taps = []
    for i in range(k):
        for j in range(k):
            taps.append(lax.slice(
                xp, (0, i, j, 0),
                (B, i + stride * (Ho - 1) + 1, j + stride * (Wo - 1) + 1, C),
                (1, stride, stride, 1)))
    patches = jnp.concatenate(taps, axis=-1)           # (B, Ho, Wo, k*k*C)
    return patches.reshape(B * Ho * Wo, k * k * C), Ho, Wo


def init_params(key, latent_units, d, image_size, num_channels, context_dim):
    keys = iter(jax.random.split(key, 64))
    eps = 1e-5
    conv_cfg = [
        (num_channels, d, 7, 1, 3),
        (d, 2 * d, 4, 2, 1),
        (2 * d, 4 * d, 4, 2, 1),
        (4 * d, 4 * d, 4, 2, 1),
        (4 * d, 4 * d, 4, 2, 1),
    ]
    convs_k, convs_r, conv_static = [], [], []
    for cin, cout, k, s, p in conv_cfg:
        fan_in = k * k * cin
        w4d = jax.random.normal(next(keys), (k, k, cin, cout), jnp.float32) / np.sqrt(fan_in)
        bconv = 0.01 * jax.random.normal(next(keys), (cout,), jnp.float32)
        gamma = 1.0 + 0.1 * jax.random.normal(next(keys), (cout,), jnp.float32)
        beta = 0.1 * jax.random.normal(next(keys), (cout,), jnp.float32)
        mu = 0.05 * jax.random.normal(next(keys), (cout,), jnp.float32)
        var = 1.0 + 0.1 * jax.random.uniform(next(keys), (cout,), jnp.float32)
        sfac = gamma / jnp.sqrt(var + eps)
        bias = (bconv - mu) * sfac + beta
        K = k * k * cin
        Kp = _round_up(K, 128)
        w2d = jnp.pad(w4d.reshape(K, cout),
                      ((0, Kp - K), (0, 0))).astype(jnp.bfloat16)
        convs_k.append(dict(w2d=w2d,
                            scale=sfac.reshape(1, cout),
                            bias=bias.reshape(1, cout)))
        convs_r.append(dict(w4d=w4d, scale=sfac, bias=bias))
        conv_static.append((k, s, p))

    flat_dim = 4 * d * (image_size // 16) * (image_size // 16)

    def linear(fi, fo):
        w = jax.random.normal(next(keys), (fi, fo), jnp.float32) / np.sqrt(fi)
        b = 0.01 * jax.random.normal(next(keys), (fo,), jnp.float32)
        return w, b

    fc1_w, fc1_b = linear(flat_dim, 4096)
    fc2_w, fc2_b = linear(4096, 256)
    fc3_w, fc3_b = linear(256, latent_units)

    L, C = latent_units, context_dim
    mlp_w1 = jax.random.normal(next(keys), (L, 1, 256), jnp.float32)
    mlp_b1 = 0.01 * jax.random.normal(next(keys), (L, 1, 256), jnp.float32)
    mlp_w2 = jax.random.normal(next(keys), (L, 256, 512), jnp.float32) / np.sqrt(256.0)
    mlp_b2 = 0.01 * jax.random.normal(next(keys), (L, 1, 512), jnp.float32)
    mlp_w3 = jax.random.normal(next(keys), (L, 512, C), jnp.float32) / np.sqrt(512.0)
    mlp_b3 = 0.01 * jax.random.normal(next(keys), (L, 1, C), jnp.float32)

    params = dict(
        convs=convs_k,
        fc1_w=fc1_w.astype(jnp.bfloat16), fc1_b=fc1_b.reshape(1, -1),
        fc2_w=fc2_w.astype(jnp.bfloat16), fc2_b=fc2_b.reshape(1, -1),
        fc3_w=fc3_w.astype(jnp.bfloat16), fc3_b=fc3_b.reshape(1, -1),
        mlp_w1=mlp_w1, mlp_b1=mlp_b1,
        mlp_w2=mlp_w2.astype(jnp.bfloat16), mlp_b2=mlp_b2,
        mlp_w3=mlp_w3.astype(jnp.bfloat16), mlp_b3=mlp_b3)
    ref = dict(convs=convs_r,
               fc1_w=fc1_w, fc1_b=fc1_b, fc2_w=fc2_w, fc2_b=fc2_b,
               fc3_w=fc3_w, fc3_b=fc3_b,
               mlp_w1=mlp_w1, mlp_b1=mlp_b1, mlp_w2=mlp_w2, mlp_b2=mlp_b2,
               mlp_w3=mlp_w3, mlp_b3=mlp_b3)
    return params, ref, conv_static


def feature_extractor_forward(x_nchw, params, conv_static):
    """x_nchw: (B, C, H, W) float32 -> (B, latent_units, context_dim)."""
    B = x_nchw.shape[0]
    a = jnp.transpose(x_nchw, (0, 2, 3, 1)).astype(jnp.bfloat16)   # NHWC bf16
    for cp, (k, s, p) in zip(params['convs'], conv_static):
        patches, Ho, Wo = im2col_nhwc(a, k, s, p)
        y = conv_bn_relu(patches, cp['w2d'], cp['scale'], cp['bias'])
        a = y.reshape(B, Ho, Wo, -1)
    # torch.nn.Flatten on NCHW: per-batch order (c, h, w)
    feat = jnp.transpose(a, (0, 3, 1, 2)).reshape(B, -1)
    return tail_forward(feat, params)


def reference_forward(x_nchw, ref, conv_static):
    h = x_nchw
    for cp, (k, s, p) in zip(ref['convs'], conv_static):
        w_oihw = jnp.transpose(cp['w4d'], (3, 2, 0, 1))
        h = lax.conv_general_dilated(
            h, w_oihw, (s, s), [(p, p), (p, p)],
            dimension_numbers=('NCHW', 'OIHW', 'NCHW'), precision=HIGHEST)
        h = h * cp['scale'][None, :, None, None] + cp['bias'][None, :, None, None]
        h = jnp.maximum(h, 0.0)
    B = h.shape[0]
    feat = h.reshape(B, -1)
    h1 = jnp.maximum(jnp.dot(feat, ref['fc1_w'], precision=HIGHEST) + ref['fc1_b'], 0.0)
    h2 = jnp.maximum(jnp.dot(h1, ref['fc2_w'], precision=HIGHEST) + ref['fc2_b'], 0.0)
    features = jnp.dot(h2, ref['fc3_w'], precision=HIGHEST) + ref['fc3_b']
    toks = []
    for i in range(features.shape[1]):
        f = features[:, i:i + 1]
        a = jnp.maximum(jnp.dot(f, ref['mlp_w1'][i], precision=HIGHEST) + ref['mlp_b1'][i], 0.0)
        b = jnp.maximum(jnp.dot(a, ref['mlp_w2'][i], precision=HIGHEST) + ref['mlp_b2'][i], 0.0)
        c = jnp.maximum(jnp.dot(b, ref['mlp_w3'][i], precision=HIGHEST) + ref['mlp_b3'][i], 0.0)
        toks.append(c)
    return jnp.stack(toks, axis=1)


if __name__ == "__main__":
    key = jax.random.PRNGKey(0)
    batch, num_channels, image_size = 2, 3, 16
    latent_units, d, context_dim = 4, 8, 32

    pkey, xkey = jax.random.split(key)
    params, ref_params, conv_static = init_params(
        pkey, latent_units, d, image_size, num_channels, context_dim)
    x = jax.random.normal(xkey, (batch, num_channels, image_size, image_size),
                          jnp.float32)

    fwd = jax.jit(functools.partial(feature_extractor_forward,
                                    conv_static=conv_static))
    out = jax.block_until_ready(fwd(x, params))
    assert out.shape == (batch, latent_units, context_dim)

    ref = jax.block_until_ready(reference_forward(x, ref_params, conv_static))
    # bf16 MXU operands / bf16 activation carry vs the f32 reference.
    np.testing.assert_allclose(np.asarray(out), np.asarray(ref),
                               rtol=5e-2, atol=5e-2)

    print("KERNEL_OK")
</pallas_src>

<mosaic_0001>
module attributes {stable_mosaic.version = 11 : i64} {
  func.func @_conv_kernel(%arg0: i32, %arg1: memref<256x256xbf16, #tpu.memory_space<vmem>>, %arg2: memref<256x8xbf16, #tpu.memory_space<vmem>>, %arg3: memref<1x8xf32, #tpu.memory_space<vmem>>, %arg4: memref<1x8xf32, #tpu.memory_space<vmem>>, %arg5: memref<256x8xbf16, #tpu.memory_space<vmem>>) attributes {dimension_semantics = [#tpu.dimension_semantics<parallel>], iteration_bounds = array<i64: 2>, scalar_prefetch = 0 : i64, scratch_operands = 0 : i64, tpu.core_type = #tpu.core_type<tc>, window_params = [{transform_indices = @transform_0, window_bounds = array<i64: 256, 256>}, {pipeline_mode = #tpu.pipeline_mode<synchronous>, transform_indices = @transform_1, window_bounds = array<i64: 256, 8>}, {pipeline_mode = #tpu.pipeline_mode<synchronous>, transform_indices = @transform_2, window_bounds = array<i64: 1, 8>}, {pipeline_mode = #tpu.pipeline_mode<synchronous>, transform_indices = @transform_3, window_bounds = array<i64: 1, 8>}, {transform_indices = @transform_4, window_bounds = array<i64: 256, 8>}]} {
    %c0 = arith.constant 0 : index
    %c0_0 = arith.constant 0 : index
    %0 = vector.load %arg1[%c0, %c0_0] : memref<256x256xbf16, #tpu.memory_space<vmem>>, vector<256x256xbf16>
    %c0_1 = arith.constant 0 : index
    %c0_2 = arith.constant 0 : index
    %1 = vector.load %arg2[%c0_1, %c0_2] : memref<256x8xbf16, #tpu.memory_space<vmem>>, vector<256x8xbf16>
    %cst = arith.constant dense<0.000000e+00> : vector<256x8xf32>
    %2 = tpu.matmul %0, %1, %cst {dimension_numbers = #tpu.dot_dimension_numbers<[1], [0], [0], [1], [0, 0, 1, 1], [], []>} : vector<256x256xbf16>, vector<256x8xbf16>, vector<256x8xf32> -> vector<256x8xf32>
    %c0_3 = arith.constant 0 : index
    %c0_4 = arith.constant 0 : index
    %3 = vector.load %arg3[%c0_3, %c0_4] : memref<1x8xf32, #tpu.memory_space<vmem>>, vector<1x8xf32>
    %4 = vector.broadcast %3 : vector<1x8xf32> to vector<256x8xf32>
    %5 = arith.mulf %2, %4 : vector<256x8xf32>
    %c0_5 = arith.constant 0 : index
    %c0_6 = arith.constant 0 : index
    %6 = vector.load %arg4[%c0_5, %c0_6] : memref<1x8xf32, #tpu.memory_space<vmem>>, vector<1x8xf32>
    %7 = vector.broadcast %6 : vector<1x8xf32> to vector<256x8xf32>
    %8 = arith.addf %5, %7 : vector<256x8xf32>
    %cst_7 = arith.constant 0.000000e+00 : f32
    %9 = vector.broadcast %cst_7 : f32 to vector<256x8xf32>
    %10 = arith.maximumf %8, %9 : vector<256x8xf32>
    %11 = arith.truncf %10 : vector<256x8xf32> to vector<256x8xbf16>
    %c0_8 = arith.constant 0 : index
    %c0_9 = arith.constant 0 : index
    %12 = vector.load %arg5[%c0_8, %c0_9] : memref<256x8xbf16, #tpu.memory_space<vmem>>, vector<256x8xbf16>
    tpu.vector_store %arg5[%c0_8, %c0_9], %11 {strides = array<i32>} : memref<256x8xbf16, #tpu.memory_space<vmem>>, vector<256x8xbf16>,
    return
  }
  func.func @transform_0(%arg0: i32) -> (i32, i32) {
    %c0_i32 = arith.constant 0 : i32
    %c0_i32_0 = arith.constant 0 : i32
    return %arg0, %c0_i32 : i32, i32
  }
  func.func @transform_1(%arg0: i32) -> (i32, i32) {
    %c0_i32 = arith.constant 0 : i32
    %c0_i32_0 = arith.constant 0 : i32
    %c0_i32_1 = arith.constant 0 : i32
    return %c0_i32, %c0_i32_0 : i32, i32
  }
  func.func @transform_2(%arg0: i32) -> (i32, i32) {
    %c0_i32 = arith.constant 0 : i32
    %c0_i32_0 = arith.constant 0 : i32
    %c0_i32_1 = arith.constant 0 : i32
    return %c0_i32, %c0_i32_0 : i32, i32
  }
  func.func @transform_3(%arg0: i32) -> (i32, i32) {
    %c0_i32 = arith.constant 0 : i32
    %c0_i32_0 = arith.constant 0 : i32
    %c0_i32_1 = arith.constant 0 : i32
    return %c0_i32, %c0_i32_0 : i32, i32
  }
  func.func @transform_4(%arg0: i32) -> (i32, i32) {
    %c0_i32 = arith.constant 0 : i32
    %c0_i32_0 = arith.constant 0 : i32
    return %arg0, %c0_i32 : i32, i32
  }
}

module attributes {stable_mosaic.version = 11 : i64} {
  func.func @_conv_kernel(%arg0: i32, %arg1: memref<128x128xbf16, #tpu.memory_space<vmem>>, %arg2: memref<128x16xbf16, #tpu.memory_space<vmem>>, %arg3: memref<1x16xf32, #tpu.memory_space<vmem>>, %arg4: memref<1x16xf32, #tpu.memory_space<vmem>>, %arg5: memref<128x16xbf16, #tpu.memory_space<vmem>>) attributes {dimension_semantics = [#tpu.dimension_semantics<parallel>], iteration_bounds = array<i64: 1>, scalar_prefetch = 0 : i64, scratch_operands = 0 : i64, tpu.core_type = #tpu.core_type<tc>, window_params = [{transform_indices = @transform_0, window_bounds = array<i64: 128, 128>}, {pipeline_mode = #tpu.pipeline_mode<synchronous>, transform_indices = @transform_1, window_bounds = array<i64: 128, 16>}, {pipeline_mode = #tpu.pipeline_mode<synchronous>, transform_indices = @transform_2, window_bounds = array<i64: 1, 16>}, {pipeline_mode = #tpu.pipeline_mode<synchronous>, transform_indices = @transform_3, window_bounds = array<i64: 1, 16>}, {transform_indices = @transform_4, window_bounds = array<i64: 128, 16>}]} {
    %c0 = arith.constant 0 : index
    %c0_0 = arith.constant 0 : index
    %0 = vector.load %arg1[%c0, %c0_0] : memref<128x128xbf16, #tpu.memory_space<vmem>>, vector<128x128xbf16>
    %c0_1 = arith.constant 0 : index
    %c0_2 = arith.constant 0 : index
    %1 = vector.load %arg2[%c0_1, %c0_2] : memref<128x16xbf16, #tpu.memory_space<vmem>>, vector<128x16xbf16>
    %cst = arith.constant dense<0.000000e+00> : vector<128x16xf32>
    %2 = tpu.matmul %0, %1, %cst {dimension_numbers = #tpu.dot_dimension_numbers<[1], [0], [0], [1], [0, 0, 1, 1], [], []>} : vector<128x128xbf16>, vector<128x16xbf16>, vector<128x16xf32> -> vector<128x16xf32>
    %c0_3 = arith.constant 0 : index
    %c0_4 = arith.constant 0 : index
    %3 = vector.load %arg3[%c0_3, %c0_4] : memref<1x16xf32, #tpu.memory_space<vmem>>, vector<1x16xf32>
    %4 = vector.broadcast %3 : vector<1x16xf32> to vector<128x16xf32>
    %5 = arith.mulf %2, %4 : vector<128x16xf32>
    %c0_5 = arith.constant 0 : index
    %c0_6 = arith.constant 0 : index
    %6 = vector.load %arg4[%c0_5, %c0_6] : memref<1x16xf32, #tpu.memory_space<vmem>>, vector<1x16xf32>
    %7 = vector.broadcast %6 : vector<1x16xf32> to vector<128x16xf32>
    %8 = arith.addf %5, %7 : vector<128x16xf32>
    %cst_7 = arith.constant 0.000000e+00 : f32
    %9 = vector.broadcast %cst_7 : f32 to vector<128x16xf32>
    %10 = arith.maximumf %8, %9 : vector<128x16xf32>
    %11 = arith.truncf %10 : vector<128x16xf32> to vector<128x16xbf16>
    %c0_8 = arith.constant 0 : index
    %c0_9 = arith.constant 0 : index
    %12 = vector.load %arg5[%c0_8, %c0_9] : memref<128x16xbf16, #tpu.memory_space<vmem>>, vector<128x16xbf16>
    tpu.vector_store %arg5[%c0_8, %c0_9], %11 {strides = array<i32>} : memref<128x16xbf16, #tpu.memory_space<vmem>>, vector<128x16xbf16>,
    return
  }
  func.func @transform_0(%arg0: i32) -> (i32, i32) {
    %c0_i32 = arith.constant 0 : i32
    %c0_i32_0 = arith.constant 0 : i32
    return %arg0, %c0_i32 : i32, i32
  }
  func.func @transform_1(%arg0: i32) -> (i32, i32) {
    %c0_i32 = arith.constant 0 : i32
    %c0_i32_0 = arith.constant 0 : i32
    %c0_i32_1 = arith.constant 0 : i32
    return %c0_i32, %c0_i32_0 : i32, i32
  }
  func.func @transform_2(%arg0: i32) -> (i32, i32) {
    %c0_i32 = arith.constant 0 : i32
    %c0_i32_0 = arith.constant 0 : i32
    %c0_i32_1 = arith.constant 0 : i32
    return %c0_i32, %c0_i32_0 : i32, i32
  }
  func.func @transform_3(%arg0: i32) -> (i32, i32) {
    %c0_i32 = arith.constant 0 : i32
    %c0_i32_0 = arith.constant 0 : i32
    %c0_i32_1 = arith.constant 0 : i32
    return %c0_i32, %c0_i32_0 : i32, i32
  }
  func.func @transform_4(%arg0: i32) -> (i32, i32) {
    %c0_i32 = arith.constant 0 : i32
    %c0_i32_0 = arith.constant 0 : i32
    return %arg0, %c0_i32 : i32, i32
  }
}

module attributes {stable_mosaic.version = 11 : i64} {
  func.func @_conv_kernel(%arg0: i32, %arg1: memref<32x256xbf16, #tpu.memory_space<vmem>>, %arg2: memref<256x32xbf16, #tpu.memory_space<vmem>>, %arg3: memref<1x32xf32, #tpu.memory_space<vmem>>, %arg4: memref<1x32xf32, #tpu.memory_space<vmem>>, %arg5: memref<32x32xbf16, #tpu.memory_space<vmem>>) attributes {dimension_semantics = [#tpu.dimension_semantics<parallel>], iteration_bounds = array<i64: 1>, scalar_prefetch = 0 : i64, scratch_operands = 0 : i64, tpu.core_type = #tpu.core_type<tc>, window_params = [{transform_indices = @transform_0, window_bounds = array<i64: 32, 256>}, {pipeline_mode = #tpu.pipeline_mode<synchronous>, transform_indices = @transform_1, window_bounds = array<i64: 256, 32>}, {pipeline_mode = #tpu.pipeline_mode<synchronous>, transform_indices = @transform_2, window_bounds = array<i64: 1, 32>}, {pipeline_mode = #tpu.pipeline_mode<synchronous>, transform_indices = @transform_3, window_bounds = array<i64: 1, 32>}, {transform_indices = @transform_4, window_bounds = array<i64: 32, 32>}]} {
    %c0 = arith.constant 0 : index
    %c0_0 = arith.constant 0 : index
    %0 = vector.load %arg1[%c0, %c0_0] : memref<32x256xbf16, #tpu.memory_space<vmem>>, vector<32x256xbf16>
    %c0_1 = arith.constant 0 : index
    %c0_2 = arith.constant 0 : index
    %1 = vector.load %arg2[%c0_1, %c0_2] : memref<256x32xbf16, #tpu.memory_space<vmem>>, vector<256x32xbf16>
    %cst = arith.constant dense<0.000000e+00> : vector<32x32xf32>
    %2 = tpu.matmul %0, %1, %cst {dimension_numbers = #tpu.dot_dimension_numbers<[1], [0], [0], [1], [0, 0, 1, 1], [], []>} : vector<32x256xbf16>, vector<256x32xbf16>, vector<32x32xf32> -> vector<32x32xf32>
    %c0_3 = arith.constant 0 : index
    %c0_4 = arith.constant 0 : index
    %3 = vector.load %arg3[%c0_3, %c0_4] : memref<1x32xf32, #tpu.memory_space<vmem>>, vector<1x32xf32>
    %4 = vector.broadcast %3 : vector<1x32xf32> to vector<32x32xf32>
    %5 = arith.mulf %2, %4 : vector<32x32xf32>
    %c0_5 = arith.constant 0 : index
    %c0_6 = arith.constant 0 : index
    %6 = vector.load %arg4[%c0_5, %c0_6] : memref<1x32xf32, #tpu.memory_space<vmem>>, vector<1x32xf32>
    %7 = vector.broadcast %6 : vector<1x32xf32> to vector<32x32xf32>
    %8 = arith.addf %5, %7 : vector<32x32xf32>
    %cst_7 = arith.constant 0.000000e+00 : f32
    %9 = vector.broadcast %cst_7 : f32 to vector<32x32xf32>
    %10 = arith.maximumf %8, %9 : vector<32x32xf32>
    %11 = arith.truncf %10 : vector<32x32xf32> to vector<32x32xbf16>
    %c0_8 = arith.constant 0 : index
    %c0_9 = arith.constant 0 : index
    %12 = vector.load %arg5[%c0_8, %c0_9] : memref<32x32xbf16, #tpu.memory_space<vmem>>, vector<32x32xbf16>
    tpu.vector_store %arg5[%c0_8, %c0_9], %11 {strides = array<i32>} : memref<32x32xbf16, #tpu.memory_space<vmem>>, vector<32x32xbf16>,
    return
  }
  func.func @transform_0(%arg0: i32) -> (i32, i32) {
    %c0_i32 = arith.constant 0 : i32
    %c0_i32_0 = arith.constant 0 : i32
    return %arg0, %c0_i32 : i32, i32
  }
  func.func @transform_1(%arg0: i32) -> (i32, i32) {
    %c0_i32 = arith.constant 0 : i32
    %c0_i32_0 = arith.constant 0 : i32
    %c0_i32_1 = arith.constant 0 : i32
    return %c0_i32, %c0_i32_0 : i32, i32
  }
  func.func @transform_2(%arg0: i32) -> (i32, i32) {
    %c0_i32 = arith.constant 0 : i32
    %c0_i32_0 = arith.constant 0 : i32
    %c0_i32_1 = arith.constant 0 : i32
    return %c0_i32, %c0_i32_0 : i32, i32
  }
  func.func @transform_3(%arg0: i32) -> (i32, i32) {
    %c0_i32 = arith.constant 0 : i32
    %c0_i32_0 = arith.constant 0 : i32
    %c0_i32_1 = arith.constant 0 : i32
    return %c0_i32, %c0_i32_0 : i32, i32
  }
  func.func @transform_4(%arg0: i32) -> (i32, i32) {
    %c0_i32 = arith.constant 0 : i32
    %c0_i32_0 = arith.constant 0 : i32
    return %arg0, %c0_i32 : i32, i32
  }
}

module attributes {stable_mosaic.version = 11 : i64} {
  func.func @_conv_kernel(%arg0: i32, %arg1: memref<16x512xbf16, #tpu.memory_space<vmem>>, %arg2: memref<512x32xbf16, #tpu.memory_space<vmem>>, %arg3: memref<1x32xf32, #tpu.memory_space<vmem>>, %arg4: memref<1x32xf32, #tpu.memory_space<vmem>>, %arg5: memref<16x32xbf16, #tpu.memory_space<vmem>>) attributes {dimension_semantics = [#tpu.dimension_semantics<parallel>], iteration_bounds = array<i64: 1>, scalar_prefetch = 0 : i64, scratch_operands = 0 : i64, tpu.core_type = #tpu.core_type<tc>, window_params = [{transform_indices = @transform_0, window_bounds = array<i64: 16, 512>}, {pipeline_mode = #tpu.pipeline_mode<synchronous>, transform_indices = @transform_1, window_bounds = array<i64: 512, 32>}, {pipeline_mode = #tpu.pipeline_mode<synchronous>, transform_indices = @transform_2, window_bounds = array<i64: 1, 32>}, {pipeline_mode = #tpu.pipeline_mode<synchronous>, transform_indices = @transform_3, window_bounds = array<i64: 1, 32>}, {transform_indices = @transform_4, window_bounds = array<i64: 16, 32>}]} {
    %c0 = arith.constant 0 : index
    %c0_0 = arith.constant 0 : index
    %0 = vector.load %arg1[%c0, %c0_0] : memref<16x512xbf16, #tpu.memory_space<vmem>>, vector<16x512xbf16>
    %c0_1 = arith.constant 0 : index
    %c0_2 = arith.constant 0 : index
    %1 = vector.load %arg2[%c0_1, %c0_2] : memref<512x32xbf16, #tpu.memory_space<vmem>>, vector<512x32xbf16>
    %cst = arith.constant dense<0.000000e+00> : vector<16x32xf32>
    %2 = tpu.matmul %0, %1, %cst {dimension_numbers = #tpu.dot_dimension_numbers<[1], [0], [0], [1], [0, 0, 1, 1], [], []>} : vector<16x512xbf16>, vector<512x32xbf16>, vector<16x32xf32> -> vector<16x32xf32>
    %c0_3 = arith.constant 0 : index
    %c0_4 = arith.constant 0 : index
    %3 = vector.load %arg3[%c0_3, %c0_4] : memref<1x32xf32, #tpu.memory_space<vmem>>, vector<1x32xf32>
    %4 = vector.broadcast %3 : vector<1x32xf32> to vector<16x32xf32>
    %5 = arith.mulf %2, %4 : vector<16x32xf32>
    %c0_5 = arith.constant 0 : index
    %c0_6 = arith.constant 0 : index
    %6 = vector.load %arg4[%c0_5, %c0_6] : memref<1x32xf32, #tpu.memory_space<vmem>>, vector<1x32xf32>
    %7 = vector.broadcast %6 : vector<1x32xf32> to vector<16x32xf32>
    %8 = arith.addf %5, %7 : vector<16x32xf32>
    %cst_7 = arith.constant 0.000000e+00 : f32
    %9 = vector.broadcast %cst_7 : f32 to vector<16x32xf32>
    %10 = arith.maximumf %8, %9 : vector<16x32xf32>
    %11 = arith.truncf %10 : vector<16x32xf32> to vector<16x32xbf16>
    %c0_8 = arith.constant 0 : index
    %c0_9 = arith.constant 0 : index
    %12 = vector.load %arg5[%c0_8, %c0_9] : memref<16x32xbf16, #tpu.memory_space<vmem>>, vector<16x32xbf16>
    tpu.vector_store %arg5[%c0_8, %c0_9], %11 {strides = array<i32>} : memref<16x32xbf16, #tpu.memory_space<vmem>>, vector<16x32xbf16>,
    return
  }
  func.func @transform_0(%arg0: i32) -> (i32, i32) {
    %c0_i32 = arith.constant 0 : i32
    %c0_i32_0 = arith.constant 0 : i32
    return %arg0, %c0_i32 : i32, i32
  }
  func.func @transform_1(%arg0: i32) -> (i32, i32) {
    %c0_i32 = arith.constant 0 : i32
    %c0_i32_0 = arith.constant 0 : i32
    %c0_i32_1 = arith.constant 0 : i32
    return %c0_i32, %c0_i32_0 : i32, i32
  }
  func.func @transform_2(%arg0: i32) -> (i32, i32) {
    %c0_i32 = arith.constant 0 : i32
    %c0_i32_0 = arith.constant 0 : i32
    %c0_i32_1 = arith.constant 0 : i32
    return %c0_i32, %c0_i32_0 : i32, i32
  }
  func.func @transform_3(%arg0: i32) -> (i32, i32) {
    %c0_i32 = arith.constant 0 : i32
    %c0_i32_0 = arith.constant 0 : i32
    %c0_i32_1 = arith.constant 0 : i32
    return %c0_i32, %c0_i32_0 : i32, i32
  }
  func.func @transform_4(%arg0: i32) -> (i32, i32) {
    %c0_i32 = arith.constant 0 : i32
    %c0_i32_0 = arith.constant 0 : i32
    return %arg0, %c0_i32 : i32, i32
  }
}

module attributes {stable_mosaic.version = 11 : i64} {
  func.func @_tail_kernel(%arg0: i32, %arg1: memref<2x32xbf16, #tpu.memory_space<vmem>>, %arg2: memref<32x1024xbf16, #tpu.memory_space<vmem>>, %arg3: memref<1x1024xf32, #tpu.memory_space<vmem>>, %arg4: memref<1024x256xbf16, #tpu.memory_space<vmem>>, %arg5: memref<1x256xf32, #tpu.memory_space<vmem>>, %arg6: memref<256x4xbf16, #tpu.memory_space<vmem>>, %arg7: memref<1x4xf32, #tpu.memory_space<vmem>>, %arg8: memref<4x1x256xf32, #tpu.memory_space<vmem>>, %arg9: memref<4x1x256xf32, #tpu.memory_space<vmem>>, %arg10: memref<4x256x512xbf16, #tpu.memory_space<vmem>>, %arg11: memref<4x1x512xf32, #tpu.memory_space<vmem>>, %arg12: memref<4x512x32xbf16, #tpu.memory_space<vmem>>, %arg13: memref<4x1x32xf32, #tpu.memory_space<vmem>>, %arg14: memref<2x128xf32, #tpu.memory_space<vmem>>, %arg15: memref<2x256xf32, #tpu.memory_space<vmem>>) attributes {dimension_semantics = [#tpu.dimension_semantics<arbitrary>], iteration_bounds = array<i64: 4>, scalar_prefetch = 0 : i64, scratch_operands = 1 : i64, tpu.core_type = #tpu.core_type<tc>, window_params = [{pipeline_mode = #tpu.pipeline_mode<synchronous>, transform_indices = @transform_0, window_bounds = array<i64: 2, 32>}, {transform_indices = @transform_1, window_bounds = array<i64: 32, 1024>}, {transform_indices = @transform_2, window_bounds = array<i64: 1, 1024>}, {transform_indices = @transform_3, window_bounds = array<i64: 1024, 256>}, {pipeline_mode = #tpu.pipeline_mode<synchronous>, transform_indices = @transform_4, window_bounds = array<i64: 1, 256>}, {pipeline_mode = #tpu.pipeline_mode<synchronous>, transform_indices = @transform_5, window_bounds = array<i64: 256, 4>}, {pipeline_mode = #tpu.pipeline_mode<synchronous>, transform_indices = @transform_6, window_bounds = array<i64: 1, 4>}, {pipeline_mode = #tpu.pipeline_mode<synchronous>, transform_indices = @transform_7, window_bounds = array<i64: 4, 1, 256>}, {pipeline_mode = #tpu.pipeline_mode<synchronous>, transform_indices = @transform_8, window_bounds = array<i64: 4, 1, 256>}, {pipeline_mode = #tpu.pipeline_mode<synchronous>, transform_indices = @transform_9, window_bounds = array<i64: 4, 256, 512>}, {pipeline_mode = #tpu.pipeline_mode<synchronous>, transform_indices = @transform_10, window_bounds = array<i64: 4, 1, 512>}, {pipeline_mode = #tpu.pipeline_mode<synchronous>, transform_indices = @transform_11, window_bounds = array<i64: 4, 512, 32>}, {pipeline_mode = #tpu.pipeline_mode<synchronous>, transform_indices = @transform_12, window_bounds = array<i64: 4, 1, 32>}, {pipeline_mode = #tpu.pipeline_mode<synchronous>, transform_indices = @transform_13, window_bounds = array<i64: 2, 128>}]} {
    %c0_i32 = arith.constant 0 : i32
    %0 = arith.cmpi eq, %arg0, %c0_i32 : i32
    %1 = arith.extui %0 : i1 to i32
    %c0_i32_0 = arith.constant 0 : i32
    %2 = arith.cmpi ne, %1, %c0_i32_0 : i32
    scf.if %2 {
      %cst_15 = arith.constant 0.000000e+00 : f32
      %20 = vector.broadcast %cst_15 : f32 to vector<2x256xf32>
      %c0_16 = arith.constant 0 : index
      %c0_17 = arith.constant 0 : index
      %21 = vector.load %arg15[%c0_16, %c0_17] : memref<2x256xf32, #tpu.memory_space<vmem>>, vector<2x256xf32>
      tpu.vector_store %arg15[%c0_16, %c0_17], %20 {strides = array<i32>} : memref<2x256xf32, #tpu.memory_space<vmem>>, vector<2x256xf32>,
    } else {
    }
    %c0 = arith.constant 0 : index
    %c0_1 = arith.constant 0 : index
    %3 = vector.load %arg1[%c0, %c0_1] : memref<2x32xbf16, #tpu.memory_space<vmem>>, vector<2x32xbf16>
    %c0_2 = arith.constant 0 : index
    %c0_3 = arith.constant 0 : index
    %4 = vector.load %arg2[%c0_2, %c0_3] : memref<32x1024xbf16, #tpu.memory_space<vmem>>, vector<32x1024xbf16>
    %cst = arith.constant dense<0.000000e+00> : vector<2x1024xf32>
    %5 = tpu.matmul %3, %4, %cst {dimension_numbers = #tpu.dot_dimension_numbers<[1], [0], [0], [1], [0, 0, 1, 1], [], []>} : vector<2x32xbf16>, vector<32x1024xbf16>, vector<2x1024xf32> -> vector<2x1024xf32>
    %c0_4 = arith.constant 0 : index
    %c0_5 = arith.constant 0 : index
    %6 = vector.load %arg3[%c0_4, %c0_5] : memref<1x1024xf32, #tpu.memory_space<vmem>>, vector<1x1024xf32>
    %7 = vector.broadcast %6 : vector<1x1024xf32> to vector<2x1024xf32>
    %8 = arith.addf %5, %7 : vector<2x1024xf32>
    %cst_6 = arith.constant 0.000000e+00 : f32
    %9 = vector.broadcast %cst_6 : f32 to vector<2x1024xf32>
    %10 = arith.maximumf %8, %9 : vector<2x1024xf32>
    %c0_7 = arith.constant 0 : index
    %c0_8 = arith.constant 0 : index
    %11 = vector.load %arg15[%c0_7, %c0_8] : memref<2x256xf32, #tpu.memory_space<vmem>>, vector<2x256xf32>
    %12 = arith.truncf %10 : vector<2x1024xf32> to vector<2x1024xbf16>
    %c0_9 = arith.constant 0 : index
    %c0_10 = arith.constant 0 : index
    %13 = vector.load %arg4[%c0_9, %c0_10] : memref<1024x256xbf16, #tpu.memory_space<vmem>>, vector<1024x256xbf16>
    %cst_11 = arith.constant dense<0.000000e+00> : vector<2x256xf32>
    %14 = tpu.matmul %12, %13, %cst_11 {dimension_numbers = #tpu.dot_dimension_numbers<[1], [0], [0], [1], [0, 0, 1, 1], [], []>} : vector<2x1024xbf16>, vector<1024x256xbf16>, vector<2x256xf32> -> vector<2x256xf32>
    %15 = arith.addf %11, %14 : vector<2x256xf32>
    %c0_12 = arith.constant 0 : index
    %c0_13 = arith.constant 0 : index
    %16 = vector.load %arg15[%c0_12, %c0_13] : memref<2x256xf32, #tpu.memory_space<vmem>>, vector<2x256xf32>
    tpu.vector_store %arg15[%c0_12, %c0_13], %15 {strides = array<i32>} : memref<2x256xf32, #tpu.memory_space<vmem>>, vector<2x256xf32>,
    %c3_i32 = arith.constant 3 : i32
    %17 = arith.cmpi eq, %arg0, %c3_i32 : i32
    %18 = arith.extui %17 : i1 to i32
    %c0_i32_14 = arith.constant 0 : i32
    %19 = arith.cmpi ne, %18, %c0_i32_14 : i32
    scf.if %19 {
      %c0_15 = arith.constant 0 : index
      %c0_16 = arith.constant 0 : index
      %20 = vector.load %arg15[%c0_15, %c0_16] : memref<2x256xf32, #tpu.memory_space<vmem>>, vector<2x256xf32>
      %c0_17 = arith.constant 0 : index
      %c0_18 = arith.constant 0 : index
      %21 = vector.load %arg5[%c0_17, %c0_18] : memref<1x256xf32, #tpu.memory_space<vmem>>, vector<1x256xf32>
      %22 = vector.broadcast %21 : vector<1x256xf32> to vector<2x256xf32>
      %23 = arith.addf %20, %22 : vector<2x256xf32>
      %cst_19 = arith.constant 0.000000e+00 : f32
      %24 = vector.broadcast %cst_19 : f32 to vector<2x256xf32>
      %25 = arith.maximumf %23, %24 : vector<2x256xf32>
      %26 = arith.truncf %25 : vector<2x256xf32> to vector<2x256xbf16>
      %c0_20 = arith.constant 0 : index
      %c0_21 = arith.constant 0 : index
      %27 = vector.load %arg6[%c0_20, %c0_21] : memref<256x4xbf16, #tpu.memory_space<vmem>>, vector<256x4xbf16>
      %cst_22 = arith.constant dense<0.000000e+00> : vector<2x4xf32>
      %28 = tpu.matmul %26, %27, %cst_22 {dimension_numbers = #tpu.dot_dimension_numbers<[1], [0], [0], [1], [0, 0, 1, 1], [], []>} : vector<2x256xbf16>, vector<256x4xbf16>, vector<2x4xf32> -> vector<2x4xf32>
      %c0_23 = arith.constant 0 : index
      %c0_24 = arith.constant 0 : index
      %29 = vector.load %arg7[%c0_23, %c0_24] : memref<1x4xf32, #tpu.memory_space<vmem>>, vector<1x4xf32>
      %30 = vector.broadcast %29 : vector<1x4xf32> to vector<2x4xf32>
      %31 = arith.addf %28, %30 : vector<2x4xf32>
      %32 = vector.extract_strided_slice %31 {offsets = [0, 0], sizes = [2, 1], strides = [1, 1]} : vector<2x4xf32> to vector<2x1xf32>
      %c0_25 = arith.constant 0 : index
      %c0_26 = arith.constant 0 : index
      %c0_27 = arith.constant 0 : index
      %33 = vector.load %arg8[%c0_25, %c0_26, %c0_27] : memref<4x1x256xf32, #tpu.memory_space<vmem>>, vector<1x1x256xf32>
      %34 = vector.shape_cast %33 : vector<1x1x256xf32> to vector<1x256xf32>
      %35 = vector.broadcast %32 : vector<2x1xf32> to vector<2x256xf32>
      %36 = vector.broadcast %34 : vector<1x256xf32> to vector<2x256xf32>
      %37 = arith.mulf %35, %36 : vector<2x256xf32>
      %c0_28 = arith.constant 0 : index
      %c0_29 = arith.constant 0 : index
      %c0_30 = arith.constant 0 : index
      %38 = vector.load %arg9[%c0_28, %c0_29, %c0_30] : memref<4x1x256xf32, #tpu.memory_space<vmem>>, vector<1x1x256xf32>
      %39 = vector.shape_cast %38 : vector<1x1x256xf32> to vector<1x256xf32>
      %40 = vector.broadcast %39 : vector<1x256xf32> to vector<2x256xf32>
      %41 = arith.addf %37, %40 : vector<2x256xf32>
      %cst_31 = arith.constant 0.000000e+00 : f32
      %42 = vector.broadcast %cst_31 : f32 to vector<2x256xf32>
      %43 = arith.maximumf %41, %42 : vector<2x256xf32>
      %44 = arith.truncf %43 : vector<2x256xf32> to vector<2x256xbf16>
      %c0_32 = arith.constant 0 : index
      %c0_33 = arith.constant 0 : index
      %c0_34 = arith.constant 0 : index
      %45 = vector.load %arg10[%c0_32, %c0_33, %c0_34] : memref<4x256x512xbf16, #tpu.memory_space<vmem>>, vector<1x256x512xbf16>
      %46 = vector.shape_cast %45 : vector<1x256x512xbf16> to vector<256x512xbf16>
      %cst_35 = arith.constant dense<0.000000e+00> : vector<2x512xf32>
      %47 = tpu.matmul %44, %46, %cst_35 {dimension_numbers = #tpu.dot_dimension_numbers<[1], [0], [0], [1], [0, 0, 1, 1], [], []>} : vector<2x256xbf16>, vector<256x512xbf16>, vector<2x512xf32> -> vector<2x512xf32>
      %c0_36 = arith.constant 0 : index
      %c0_37 = arith.constant 0 : index
      %c0_38 = arith.constant 0 : index
      %48 = vector.load %arg11[%c0_36, %c0_37, %c0_38] : memref<4x1x512xf32, #tpu.memory_space<vmem>>, vector<1x1x512xf32>
      %49 = vector.shape_cast %48 : vector<1x1x512xf32> to vector<1x512xf32>
      %50 = vector.broadcast %49 : vector<1x512xf32> to vector<2x512xf32>
      %51 = arith.addf %47, %50 : vector<2x512xf32>
      %cst_39 = arith.constant 0.000000e+00 : f32
      %52 = vector.broadcast %cst_39 : f32 to vector<2x512xf32>
      %53 = arith.maximumf %51, %52 : vector<2x512xf32>
      %54 = arith.truncf %53 : vector<2x512xf32> to vector<2x512xbf16>
      %c0_40 = arith.constant 0 : index
      %c0_41 = arith.constant 0 : index
      %c0_42 = arith.constant 0 : index
      %55 = vector.load %arg12[%c0_40, %c0_41, %c0_42] : memref<4x512x32xbf16, #tpu.memory_space<vmem>>, vector<1x512x32xbf16>
      %56 = vector.shape_cast %55 : vector<1x512x32xbf16> to vector<512x32xbf16>
      %cst_43 = arith.constant dense<0.000000e+00> : vector<2x32xf32>
      %57 = tpu.matmul %54, %56, %cst_43 {dimension_numbers = #tpu.dot_dimension_numbers<[1], [0], [0], [1], [0, 0, 1, 1], [], []>} : vector<2x512xbf16>, vector<512x32xbf16>, vector<2x32xf32> -> vector<2x32xf32>
      %c0_44 = arith.constant 0 : index
      %c0_45 = arith.constant 0 : index
      %c0_46 = arith.constant 0 : index
      %58 = vector.load %arg13[%c0_44, %c0_45, %c0_46] : memref<4x1x32xf32, #tpu.memory_space<vmem>>, vector<1x1x32xf32>
      %59 = vector.shape_cast %58 : vector<1x1x32xf32> to vector<1x32xf32>
      %60 = vector.broadcast %59 : vector<1x32xf32> to vector<2x32xf32>
      %61 = arith.addf %57, %60 : vector<2x32xf32>
      %cst_47 = arith.constant 0.000000e+00 : f32
      %62 = vector.broadcast %cst_47 : f32 to vector<2x32xf32>
      %63 = arith.maximumf %61, %62 : vector<2x32xf32>
      %c0_48 = arith.constant 0 : index
      %c0_49 = arith.constant 0 : index
      %64 = vector.load %arg14[%c0_48, %c0_49] : memref<2x128xf32, #tpu.memory_space<vmem>>, vector<2x32xf32>
      tpu.vector_store %arg14[%c0_48, %c0_49], %63 {strides = array<i32>} : memref<2x128xf32, #tpu.memory_space<vmem>>, vector<2x32xf32>,
      %65 = vector.extract_strided_slice %31 {offsets = [0, 1], sizes = [2, 1], strides = [1, 1]} : vector<2x4xf32> to vector<2x1xf32>
      %c1 = arith.constant 1 : index
      %c0_50 = arith.constant 0 : index
      %c0_51 = arith.constant 0 : index
      %66 = vector.load %arg8[%c1, %c0_50, %c0_51] : memref<4x1x256xf32, #tpu.memory_space<vmem>>, vector<1x1x256xf32>
      %67 = vector.shape_cast %66 : vector<1x1x256xf32> to vector<1x256xf32>
      %68 = vector.broadcast %65 : vector<2x1xf32> to vector<2x256xf32>
      %69 = vector.broadcast %67 : vector<1x256xf32> to vector<2x256xf32>
      %70 = arith.mulf %68, %69 : vector<2x256xf32>
      %c1_52 = arith.constant 1 : index
      %c0_53 = arith.constant 0 : index
      %c0_54 = arith.constant 0 : index
      %71 = vector.load %arg9[%c1_52, %c0_53, %c0_54] : memref<4x1x256xf32, #tpu.memory_space<vmem>>, vector<1x1x256xf32>
      %72 = vector.shape_cast %71 : vector<1x1x256xf32> to vector<1x256xf32>
      %73 = vector.broadcast %72 : vector<1x256xf32> to vector<2x256xf32>
      %74 = arith.addf %70, %73 : vector<2x256xf32>
      %cst_55 = arith.constant 0.000000e+00 : f32
      %75 = vector.broadcast %cst_55 : f32 to vector<2x256xf32>
      %76 = arith.maximumf %74, %75 : vector<2x256xf32>
      %77 = arith.truncf %76 : vector<2x256xf32> to vector<2x256xbf16>
      %c1_56 = arith.constant 1 : index
      %c0_57 = arith.constant 0 : index
      %c0_58 = arith.constant 0 : index
      %78 = vector.load %arg10[%c1_56, %c0_57, %c0_58] : memref<4x256x512xbf16, #tpu.memory_space<vmem>>, vector<1x256x512xbf16>
      %79 = vector.shape_cast %78 : vector<1x256x512xbf16> to vector<256x512xbf16>
      %cst_59 = arith.constant dense<0.000000e+00> : vector<2x512xf32>
      %80 = tpu.matmul %77, %79, %cst_59 {dimension_numbers = #tpu.dot_dimension_numbers<[1], [0], [0], [1], [0, 0, 1, 1], [], []>} : vector<2x256xbf16>, vector<256x512xbf16>, vector<2x512xf32> -> vector<2x512xf32>
      %c1_60 = arith.constant 1 : index
      %c0_61 = arith.constant 0 : index
      %c0_62 = arith.constant 0 : index
      %81 = vector.load %arg11[%c1_60, %c0_61, %c0_62] : memref<4x1x512xf32, #tpu.memory_space<vmem>>, vector<1x1x512xf32>
      %82 = vector.shape_cast %81 : vector<1x1x512xf32> to vector<1x512xf32>
      %83 = vector.broadcast %82 : vector<1x512xf32> to vector<2x512xf32>
      %84 = arith.addf %80, %83 : vector<2x512xf32>
      %cst_63 = arith.constant 0.000000e+00 : f32
      %85 = vector.broadcast %cst_63 : f32 to vector<2x512xf32>
      %86 = arith.maximumf %84, %85 : vector<2x512xf32>
      %87 = arith.truncf %86 : vector<2x512xf32> to vector<2x512xbf16>
      %c1_64 = arith.constant 1 : index
      %c0_65 = arith.constant 0 : index
      %c0_66 = arith.constant 0 : index
      %88 = vector.load %arg12[%c1_64, %c0_65, %c0_66] : memref<4x512x32xbf16, #tpu.memory_space<vmem>>, vector<1x512x32xbf16>
      %89 = vector.shape_cast %88 : vector<1x512x32xbf16> to vector<512x32xbf16>
      %cst_67 = arith.constant dense<0.000000e+00> : vector<2x32xf32>
      %90 = tpu.matmul %87, %89, %cst_67 {dimension_numbers = #tpu.dot_dimension_numbers<[1], [0], [0], [1], [0, 0, 1, 1], [], []>} : vector<2x512xbf16>, vector<512x32xbf16>, vector<2x32xf32> -> vector<2x32xf32>
      %c1_68 = arith.constant 1 : index
      %c0_69 = arith.constant 0 : index
      %c0_70 = arith.constant 0 : index
      %91 = vector.load %arg13[%c1_68, %c0_69, %c0_70] : memref<4x1x32xf32, #tpu.memory_space<vmem>>, vector<1x1x32xf32>
      %92 = vector.shape_cast %91 : vector<1x1x32xf32> to vector<1x32xf32>
      %93 = vector.broadcast %92 : vector<1x32xf32> to vector<2x32xf32>
      %94 = arith.addf %90, %93 : vector<2x32xf32>
      %cst_71 = arith.constant 0.000000e+00 : f32
      %95 = vector.broadcast %cst_71 : f32 to vector<2x32xf32>
      %96 = arith.maximumf %94, %95 : vector<2x32xf32>
      %c0_72 = arith.constant 0 : index
      %c32 = arith.constant 32 : index
      %97 = vector.load %arg14[%c0_72, %c32] : memref<2x128xf32, #tpu.memory_space<vmem>>, vector<2x32xf32>
      tpu.vector_store %arg14[%c0_72, %c32], %96 {strides = array<i32>} : memref<2x128xf32, #tpu.memory_space<vmem>>, vector<2x32xf32>,
      %98 = vector.extract_strided_slice %31 {offsets = [0, 2], sizes = [2, 1], strides = [1, 1]} : vector<2x4xf32> to vector<2x1xf32>
      %c2 = arith.constant 2 : index
      %c0_73 = arith.constant 0 : index
      %c0_74 = arith.constant 0 : index
      %99 = vector.load %arg8[%c2, %c0_73, %c0_74] : memref<4x1x256xf32, #tpu.memory_space<vmem>>, vector<1x1x256xf32>
      %100 = vector.shape_cast %99 : vector<1x1x256xf32> to vector<1x256xf32>
      %101 = vector.broadcast %98 : vector<2x1xf32> to vector<2x256xf32>
      %102 = vector.broadcast %100 : vector<1x256xf32> to vector<2x256xf32>
      %103 = arith.mulf %101, %102 : vector<2x256xf32>
      %c2_75 = arith.constant 2 : index
      %c0_76 = arith.constant 0 : index
      %c0_77 = arith.constant 0 : index
      %104 = vector.load %arg9[%c2_75, %c0_76, %c0_77] : memref<4x1x256xf32, #tpu.memory_space<vmem>>, vector<1x1x256xf32>
      %105 = vector.shape_cast %104 : vector<1x1x256xf32> to vector<1x256xf32>
      %106 = vector.broadcast %105 : vector<1x256xf32> to vector<2x256xf32>
      %107 = arith.addf %103, %106 : vector<2x256xf32>
      %cst_78 = arith.constant 0.000000e+00 : f32
      %108 = vector.broadcast %cst_78 : f32 to vector<2x256xf32>
      %109 = arith.maximumf %107, %108 : vector<2x256xf32>
      %110 = arith.truncf %109 : vector<2x256xf32> to vector<2x256xbf16>
      %c2_79 = arith.constant 2 : index
      %c0_80 = arith.constant 0 : index
      %c0_81 = arith.constant 0 : index
      %111 = vector.load %arg10[%c2_79, %c0_80, %c0_81] : memref<4x256x512xbf16, #tpu.memory_space<vmem>>, vector<1x256x512xbf16>
      %112 = vector.shape_cast %111 : vector<1x256x512xbf16> to vector<256x512xbf16>
      %cst_82 = arith.constant dense<0.000000e+00> : vector<2x512xf32>
      %113 = tpu.matmul %110, %112, %cst_82 {dimension_numbers = #tpu.dot_dimension_numbers<[1], [0], [0], [1], [0, 0, 1, 1], [], []>} : vector<2x256xbf16>, vector<256x512xbf16>, vector<2x512xf32> -> vector<2x512xf32>
      %c2_83 = arith.constant 2 : index
      %c0_84 = arith.constant 0 : index
      %c0_85 = arith.constant 0 : index
      %114 = vector.load %arg11[%c2_83, %c0_84, %c0_85] : memref<4x1x512xf32, #tpu.memory_space<vmem>>, vector<1x1x512xf32>
      %115 = vector.shape_cast %114 : vector<1x1x512xf32> to vector<1x512xf32>
      %116 = vector.broadcast %115 : vector<1x512xf32> to vector<2x512xf32>
      %117 = arith.addf %113, %116 : vector<2x512xf32>
      %cst_86 = arith.constant 0.000000e+00 : f32
      %118 = vector.broadcast %cst_86 : f32 to vector<2x512xf32>
      %119 = arith.maximumf %117, %118 : vector<2x512xf32>
      %120 = arith.truncf %119 : vector<2x512xf32> to vector<2x512xbf16>
      %c2_87 = arith.constant 2 : index
      %c0_88 = arith.constant 0 : index
      %c0_89 = arith.constant 0 : index
      %121 = vector.load %arg12[%c2_87, %c0_88, %c0_89] : memref<4x512x32xbf16, #tpu.memory_space<vmem>>, vector<1x512x32xbf16>
      %122 = vector.shape_cast %121 : vector<1x512x32xbf16> to vector<512x32xbf16>
      %cst_90 = arith.constant dense<0.000000e+00> : vector<2x32xf32>
      %123 = tpu.matmul %120, %122, %cst_90 {dimension_numbers = #tpu.dot_dimension_numbers<[1], [0], [0], [1], [0, 0, 1, 1], [], []>} : vector<2x512xbf16>, vector<512x32xbf16>, vector<2x32xf32> -> vector<2x32xf32>
      %c2_91 = arith.constant 2 : index
      %c0_92 = arith.constant 0 : index
      %c0_93 = arith.constant 0 : index
      %124 = vector.load %arg13[%c2_91, %c0_92, %c0_93] : memref<4x1x32xf32, #tpu.memory_space<vmem>>, vector<1x1x32xf32>
      %125 = vector.shape_cast %124 : vector<1x1x32xf32> to vector<1x32xf32>
      %126 = vector.broadcast %125 : vector<1x32xf32> to vector<2x32xf32>
      %127 = arith.addf %123, %126 : vector<2x32xf32>
      %cst_94 = arith.constant 0.000000e+00 : f32
      %128 = vector.broadcast %cst_94 : f32 to vector<2x32xf32>
      %129 = arith.maximumf %127, %128 : vector<2x32xf32>
      %c0_95 = arith.constant 0 : index
      %c64 = arith.constant 64 : index
      %130 = vector.load %arg14[%c0_95, %c64] : memref<2x128xf32, #tpu.memory_space<vmem>>, vector<2x32xf32>
      tpu.vector_store %arg14[%c0_95, %c64], %129 {strides = array<i32>} : memref<2x128xf32, #tpu.memory_space<vmem>>, vector<2x32xf32>,
      %131 = vector.extract_strided_slice %31 {offsets = [0, 3], sizes = [2, 1], strides = [1, 1]} : vector<2x4xf32> to vector<2x1xf32>
      %c3 = arith.constant 3 : index
      %c0_96 = arith.constant 0 : index
      %c0_97 = arith.constant 0 : index
      %132 = vector.load %arg8[%c3, %c0_96, %c0_97] : memref<4x1x256xf32, #tpu.memory_space<vmem>>, vector<1x1x256xf32>
      %133 = vector.shape_cast %132 : vector<1x1x256xf32> to vector<1x256xf32>
      %134 = vector.broadcast %131 : vector<2x1xf32> to vector<2x256xf32>
      %135 = vector.broadcast %133 : vector<1x256xf32> to vector<2x256xf32>
      %136 = arith.mulf %134, %135 : vector<2x256xf32>
      %c3_98 = arith.constant 3 : index
      %c0_99 = arith.constant 0 : index
      %c0_100 = arith.constant 0 : index
      %137 = vector.load %arg9[%c3_98, %c0_99, %c0_100] : memref<4x1x256xf32, #tpu.memory_space<vmem>>, vector<1x1x256xf32>
      %138 = vector.shape_cast %137 : vector<1x1x256xf32> to vector<1x256xf32>
      %139 = vector.broadcast %138 : vector<1x256xf32> to vector<2x256xf32>
      %140 = arith.addf %136, %139 : vector<2x256xf32>
      %cst_101 = arith.constant 0.000000e+00 : f32
      %141 = vector.broadcast %cst_101 : f32 to vector<2x256xf32>
      %142 = arith.maximumf %140, %141 : vector<2x256xf32>
      %143 = arith.truncf %142 : vector<2x256xf32> to vector<2x256xbf16>
      %c3_102 = arith.constant 3 : index
      %c0_103 = arith.constant 0 : index
      %c0_104 = arith.constant 0 : index
      %144 = vector.load %arg10[%c3_102, %c0_103, %c0_104] : memref<4x256x512xbf16, #tpu.memory_space<vmem>>, vector<1x256x512xbf16>
      %145 = vector.shape_cast %144 : vector<1x256x512xbf16> to vector<256x512xbf16>
      %cst_105 = arith.constant dense<0.000000e+00> : vector<2x512xf32>
      %146 = tpu.matmul %143, %145, %cst_105 {dimension_numbers = #tpu.dot_dimension_numbers<[1], [0], [0], [1], [0, 0, 1, 1], [], []>} : vector<2x256xbf16>, vector<256x512xbf16>, vector<2x512xf32> -> vector<2x512xf32>
      %c3_106 = arith.constant 3 : index
      %c0_107 = arith.constant 0 : index
      %c0_108 = arith.constant 0 : index
      %147 = vector.load %arg11[%c3_106, %c0_107, %c0_108] : memref<4x1x512xf32, #tpu.memory_space<vmem>>, vector<1x1x512xf32>
      %148 = vector.shape_cast %147 : vector<1x1x512xf32> to vector<1x512xf32>
      %149 = vector.broadcast %148 : vector<1x512xf32> to vector<2x512xf32>
      %150 = arith.addf %146, %149 : vector<2x512xf32>
      %cst_109 = arith.constant 0.000000e+00 : f32
      %151 = vector.broadcast %cst_109 : f32 to vector<2x512xf32>
      %152 = arith.maximumf %150, %151 : vector<2x512xf32>
      %153 = arith.truncf %152 : vector<2x512xf32> to vector<2x512xbf16>
      %c3_110 = arith.constant 3 : index
      %c0_111 = arith.constant 0 : index
      %c0_112 = arith.constant 0 : index
      %154 = vector.load %arg12[%c3_110, %c0_111, %c0_112] : memref<4x512x32xbf16, #tpu.memory_space<vmem>>, vector<1x512x32xbf16>
      %155 = vector.shape_cast %154 : vector<1x512x32xbf16> to vector<512x32xbf16>
      %cst_113 = arith.constant dense<0.000000e+00> : vector<2x32xf32>
      %156 = tpu.matmul %153, %155, %cst_113 {dimension_numbers = #tpu.dot_dimension_numbers<[1], [0], [0], [1], [0, 0, 1, 1], [], []>} : vector<2x512xbf16>, vector<512x32xbf16>, vector<2x32xf32> -> vector<2x32xf32>
      %c3_114 = arith.constant 3 : index
      %c0_115 = arith.constant 0 : index
      %c0_116 = arith.constant 0 : index
      %157 = vector.load %arg13[%c3_114, %c0_115, %c0_116] : memref<4x1x32xf32, #tpu.memory_space<vmem>>, vector<1x1x32xf32>
      %158 = vector.shape_cast %157 : vector<1x1x32xf32> to vector<1x32xf32>
      %159 = vector.broadcast %158 : vector<1x32xf32> to vector<2x32xf32>
      %160 = arith.addf %156, %159 : vector<2x32xf32>
      %cst_117 = arith.constant 0.000000e+00 : f32
      %161 = vector.broadcast %cst_117 : f32 to vector<2x32xf32>
      %162 = arith.maximumf %160, %161 : vector<2x32xf32>
      %c0_118 = arith.constant 0 : index
      %c96 = arith.constant 96 : index
      %163 = vector.load %arg14[%c0_118, %c96] : memref<2x128xf32, #tpu.memory_space<vmem>>, vector<2x32xf32>
      tpu.vector_store %arg14[%c0_118, %c96], %162 {strides = array<i32>} : memref<2x128xf32, #tpu.memory_space<vmem>>, vector<2x32xf32>,
    } else {
    }
    return
  }
  func.func @transform_0(%arg0: i32) -> (i32, i32) {
    %c0_i32 = arith.constant 0 : i32
    %c0_i32_0 = arith.constant 0 : i32
    %c0_i32_1 = arith.constant 0 : i32
    return %c0_i32, %c0_i32_0 : i32, i32
  }
  func.func @transform_1(%arg0: i32) -> (i32, i32) {
    %c0_i32 = arith.constant 0 : i32
    %c0_i32_0 = arith.constant 0 : i32
    return %c0_i32, %arg0 : i32, i32
  }
  func.func @transform_2(%arg0: i32) -> (i32, i32) {
    %c0_i32 = arith.constant 0 : i32
    %c0_i32_0 = arith.constant 0 : i32
    return %c0_i32, %arg0 : i32, i32
  }
  func.func @transform_3(%arg0: i32) -> (i32, i32) {
    %c0_i32 = arith.constant 0 : i32
    %c0_i32_0 = arith.constant 0 : i32
    return %arg0, %c0_i32 : i32, i32
  }
  func.func @transform_4(%arg0: i32) -> (i32, i32) {
    %c0_i32 = arith.constant 0 : i32
    %c0_i32_0 = arith.constant 0 : i32
    %c0_i32_1 = arith.constant 0 : i32
    return %c0_i32, %c0_i32_0 : i32, i32
  }
  func.func @transform_5(%arg0: i32) -> (i32, i32) {
    %c0_i32 = arith.constant 0 : i32
    %c0_i32_0 = arith.constant 0 : i32
    %c0_i32_1 = arith.constant 0 : i32
    return %c0_i32, %c0_i32_0 : i32, i32
  }
  func.func @transform_6(%arg0: i32) -> (i32, i32) {
    %c0_i32 = arith.constant 0 : i32
    %c0_i32_0 = arith.constant 0 : i32
    %c0_i32_1 = arith.constant 0 : i32
    return %c0_i32, %c0_i32_0 : i32, i32
  }
  func.func @transform_7(%arg0: i32) -> (i32, i32, i32) {
    %c0_i32 = arith.constant 0 : i32
    %c0_i32_0 = arith.constant 0 : i32
    %c0_i32_1 = arith.constant 0 : i32
    %c0_i32_2 = arith.constant 0 : i32
    return %c0_i32, %c0_i32_0, %c0_i32_1 : i32, i32, i32
  }
  func.func @transform_8(%arg0: i32) -> (i32, i32, i32) {
    %c0_i32 = arith.constant 0 : i32
    %c0_i32_0 = arith.constant 0 : i32
    %c0_i32_1 = arith.constant 0 : i32
    %c0_i32_2 = arith.constant 0 : i32
    return %c0_i32, %c0_i32_0, %c0_i32_1 : i32, i32, i32
  }
  func.func @transform_9(%arg0: i32) -> (i32, i32, i32) {
    %c0_i32 = arith.constant 0 : i32
    %c0_i32_0 = arith.constant 0 : i32
    %c0_i32_1 = arith.constant 0 : i32
    %c0_i32_2 = arith.constant 0 : i32
    return %c0_i32, %c0_i32_0, %c0_i32_1 : i32, i32, i32
  }
  func.func @transform_10(%arg0: i32) -> (i32, i32, i32) {
    %c0_i32 = arith.constant 0 : i32
    %c0_i32_0 = arith.constant 0 : i32
    %c0_i32_1 = arith.constant 0 : i32
    %c0_i32_2 = arith.constant 0 : i32
    return %c0_i32, %c0_i32_0, %c0_i32_1 : i32, i32, i32
  }
  func.func @transform_11(%arg0: i32) -> (i32, i32, i32) {
    %c0_i32 = arith.constant 0 : i32
    %c0_i32_0 = arith.constant 0 : i32
    %c0_i32_1 = arith.constant 0 : i32
    %c0_i32_2 = arith.constant 0 : i32
    return %c0_i32, %c0_i32_0, %c0_i32_1 : i32, i32, i32
  }
  func.func @transform_12(%arg0: i32) -> (i32, i32, i32) {
    %c0_i32 = arith.constant 0 : i32
    %c0_i32_0 = arith.constant 0 : i32
    %c0_i32_1 = arith.constant 0 : i32
    %c0_i32_2 = arith.constant 0 : i32
    return %c0_i32, %c0_i32_0, %c0_i32_1 : i32, i32, i32
  }
  func.func @transform_13(%arg0: i32) -> (i32, i32) {
    %c0_i32 = arith.constant 0 : i32
    %c0_i32_0 = arith.constant 0 : i32
    %c0_i32_1 = arith.constant 0 : i32
    return %c0_i32, %c0_i32_0 : i32, i32
  }
}

</mosaic_0001>

<bundles_post_ra>
// kernel: feature_extractor_forward.6
= control target key start
LH: loop header
LB: loop body
LE: loop exit
PB: predicated region body
PF: predicated region fallthrough
CT: control target
= control target key end

     0   :  { %s1373_s15 = smov 0   ;;  %s1616_s0 = inlined_call_operand.vmem [shape: bf16[512,256], index: 0, kind: input, shape index: {}]   ;;  %s1617_s1 = inlined_call_operand.vmem [shape: bf16[256,8], index: 1, kind: input, shape index: {}]   ;;  %s1618_s2 = inlined_call_operand.vmem [shape: f32[1,8], index: 2, kind: input, shape index: {}]   ;;  %s1619_s3 = inlined_call_operand.vmem [shape: f32[1,8], index: 3, kind: input, shape index: {}]   ;;  %s1620_s4 = inlined_call_operand.vmem [shape: bf16[512,8], index: 4, kind: output, shape index: {}]  }
   0x1 LB: > { %s1013_s16 = sadd.s32 4294967295, %s1346_s15   ;;  %p1017_p0 = scmp.ge.s32.totalorder %s1346_s15, 1  ;;  %s1346_s15 = sphi %s1373_s15, %s14_s15  }
   0x2   : > { %p164_p1 = scmp.lt.s32.totalorder %s1346_s15, 3 }
   0x4   : > { %p165_p2 = pnand %p1017_p0, %p164_p1 }
   0x5   : > { %v1276_v0 = vld [vmem:[%s1617_s1 + $0x40] sm:$0xff] (!%p165_p2)   ;;  %s1018_s19 = sshll.u32 (!%p165_p2), %s1013_s16, 5  ;;  %v1278_v2 = vld [vmem:[%s1617_s1 + $0x48] sm:$0xff] (!%p165_p2)   ;;  %v1280_v4 = vld [vmem:[%s1617_s1 + $0x50] sm:$0xff] (!%p165_p2)   ;;  %vm924_vm0 = vcmask (!%p165_p2), 60416  }
   0x6   : > { %168 = sbr.rel (%p165_p2) target bundleno = 320 (0x140), region = 36  ;;  %v1277_v1 = vld [vmem:[%s1617_s1] sm:$0xff] (!%p165_p2)   ;;  %1140 = vmatprep.subr.bf16.mxu0 (!%p165_p2), %v1276_v0  ;;  %1252 = vmatprep.subr.bf16.mxu1 (!%p165_p2), %v1276_v0  ;;  %v1279_v3 = vld [vmem:[%s1617_s1 + $0x8] sm:$0xff] (!%p165_p2)   ;;  %p192_p3 = scmp.lt.s32.totalorder (!%p165_p2), %s1018_s19, 63  ;;  %v1281_v5 = vld [vmem:[%s1617_s1 + $0x10] sm:$0xff] (!%p165_p2)  }
   0x7   : > { %1141 = vmatpush3.bf16.msra.mxu0 (!%p165_p2), %v1277_v1  ;;  %1260 = vmatpush3.bf16.msra.mxu1 (!%p165_p2), %v1277_v1  ;;  %v1282_v6 = vld [vmem:[%s1617_s1 + $0x58] sm:$0xff] (!%p165_p2)   ;;  %v1284_v8 = vld [vmem:[%s1617_s1 + $0x60] sm:$0xff] (!%p165_p2)   ;;  %v1286_v10 = vld [vmem:[%s1617_s1 + $0x68] sm:$0xff] (!%p165_p2)  }
   0x8   : > { %1142 = vmatprep.subr.bf16.mxu0 (!%p165_p2), %v1278_v2  ;;  %1253 = vmatprep.subr.bf16.mxu1 (!%p165_p2), %v1278_v2  ;;  %v1283_v7 = vld [vmem:[%s1617_s1 + $0x18] sm:$0xff] (!%p165_p2)   ;;  %v1285_v9 = vld [vmem:[%s1617_s1 + $0x20] sm:$0xff] (!%p165_p2)   ;;  %v1287_v13 = vld [vmem:[%s1617_s1 + $0x28] sm:$0xff] (!%p165_p2)  }
   0x9   : > { %v1288_v14 = vld [vmem:[%s1617_s1 + $0x70] sm:$0xff] (!%p165_p2)   ;;  %v1290_v16 = vld [vmem:[%s1617_s1 + $0x78] sm:$0xff] (!%p165_p2)   ;;  %v1472_v51 = vld [vmem:[%s1618_s2] ss:$0 sm:$0xff] (!%p165_p2) }
   0xa   : > { %v1289_v15 = vld [vmem:[%s1617_s1 + $0x30] sm:$0xff] (!%p165_p2)   ;;  %v1291_v17 = vld [vmem:[%s1617_s1 + $0x38] sm:$0xff] (!%p165_p2)   ;;  %v1477_v57 = vld [vmem:[%s1619_s3] ss:$0 sm:$0xff] (!%p165_p2) }
   0xb   : > { %1143 = vmatpush3.bf16.msra.mxu0 (!%p165_p2), %v1279_v3  ;;  %1261 = vmatpush3.bf16.msra.mxu1 (!%p165_p2), %v1279_v3 }
   0xc   : > { %1144 = vmatprep.subr.bf16.mxu0 (!%p165_p2), %v1280_v4  ;;  %1254 = vmatprep.subr.bf16.mxu1 (!%p165_p2), %v1280_v4 }
   0xd   : > { %s1622_s19 = smov (!%p192_p3, %s1018_s19), 63 }
   0xe   : > { %s1107_s8 = sshll.u32 %s1622_s19, 3 }
   0xf   : > { %1145 = vmatpush3.bf16.msra.mxu0 %v1281_v5  ;;  %1262 = vmatpush3.bf16.msra.mxu1 %v1281_v5  ;;  %s1414_s13 = scalar_lea.vmem %s1616_s0, %s1107_s8  ;;  %s1022_s8 = sshll.u32 %s1622_s19, 2 }
  0x10   : > { %1146 = vmatprep.subr.bf16.mxu0 %v1282_v6  ;;  %1255 = vmatprep.subr.bf16.mxu1 %v1282_v6  ;;  %v1294_v11 = vld [vmem:[%s1414_s13 + $0x4] ss:$8 sps:$4 sm:$0xff]   ;;  %v1292_v18 = vld [vmem:[%s1414_s13] ss:$8 sps:$4 sm:$0xff]   ;;  %v1298_v20 = vld [vmem:[%s1414_s13 + $0x14] ss:$8 sps:$4 sm:$0xff]   ;;  %s1491_s19 = scalar_lea.vmem %s1620_s4, %s1022_s8 }
  0x11   : > { %v1297_v12 = vld [vmem:[%s1414_s13 + $0x84] ss:$8 sps:$4 sm:$0xff]   ;;  %557 = vmatprep.mubr.bf16.mxu0 %v1294_v11  ;;  %v1295_v19 = vld [vmem:[%s1414_s13 + $0x80] ss:$8 sps:$4 sm:$0xff]   ;;  %v1300_v21 = vld [vmem:[%s1414_s13 + $0x94] ss:$8 sps:$4 sm:$0xff]  }
  0x12   : > { %621 = vmatprep.mubr.bf16.mxu1 %v1297_v12  ;;  %v1302_v22 = vld [vmem:[%s1414_s13 + $0x10] ss:$8 sps:$4 sm:$0xff]   ;;  %v1304_v24 = vld [vmem:[%s1414_s13 + $0x24] ss:$8 sps:$4 sm:$0xff]   ;;  %v1308_v26 = vld [vmem:[%s1414_s13 + $0x20] ss:$8 sps:$4 sm:$0xff]  }
  0x13   : > { %1147 = vmatpush3.bf16.msra.mxu0 %v1283_v7  ;;  %1263 = vmatpush3.bf16.msra.mxu1 %v1283_v7  ;;  %v1303_v23 = vld [vmem:[%s1414_s13 + $0x90] ss:$8 sps:$4 sm:$0xff]   ;;  %v1306_v25 = vld [vmem:[%s1414_s13 + $0xa4] ss:$8 sps:$4 sm:$0xff]   ;;  %v1309_v27 = vld [vmem:[%s1414_s13 + $0xa0] ss:$8 sps:$4 sm:$0xff]  }
  0x14   : > { %1148 = vmatprep.subr.bf16.mxu0 %v1284_v8  ;;  %1256 = vmatprep.subr.bf16.mxu1 %v1284_v8  ;;  %v1310_v28 = vld [vmem:[%s1414_s13 + $0x34] ss:$8 sps:$4 sm:$0xff]   ;;  %v1314_v30 = vld [vmem:[%s1414_s13 + $0x30] ss:$8 sps:$4 sm:$0xff]   ;;  %v1316_v32 = vld [vmem:[%s1414_s13 + $0x44] ss:$8 sps:$4 sm:$0xff]  }
  0x15   : > { %v1312_v29 = vld [vmem:[%s1414_s13 + $0xb4] ss:$8 sps:$4 sm:$0xff]   ;;  %v1315_v31 = vld [vmem:[%s1414_s13 + $0xb0] ss:$8 sps:$4 sm:$0xff]   ;;  %v1318_v33 = vld [vmem:[%s1414_s13 + $0xc4] ss:$8 sps:$4 sm:$0xff]  }
  0x16   : > { %v1320_v34 = vld [vmem:[%s1414_s13 + $0x40] ss:$8 sps:$4 sm:$0xff]   ;;  %v1322_v36 = vld [vmem:[%s1414_s13 + $0x54] ss:$8 sps:$4 sm:$0xff]   ;;  %v1326_v38 = vld [vmem:[%s1414_s13 + $0x50] ss:$8 sps:$4 sm:$0xff]  }
  0x17   : > { %1149 = vmatpush3.bf16.msra.mxu0 %v1285_v9  ;;  %1264 = vmatpush3.bf16.msra.mxu1 %v1285_v9  ;;  %v1321_v35 = vld [vmem:[%s1414_s13 + $0xc0] ss:$8 sps:$4 sm:$0xff]   ;;  %v1324_v37 = vld [vmem:[%s1414_s13 + $0xd4] ss:$8 sps:$4 sm:$0xff]   ;;  %v1327_v39 = vld [vmem:[%s1414_s13 + $0xd0] ss:$8 sps:$4 sm:$0xff]  }
  0x18   : > { %1150 = vmatprep.subr.bf16.mxu0 %v1286_v10  ;;  %1257 = vmatprep.subr.bf16.mxu1 %v1286_v10  ;;  %v1328_v40 = vld [vmem:[%s1414_s13 + $0x64] ss:$8 sps:$4 sm:$0xff]   ;;  %v1332_v42 = vld [vmem:[%s1414_s13 + $0x60] ss:$8 sps:$4 sm:$0xff]   ;;  %v1334_v44 = vld [vmem:[%s1414_s13 + $0x74] ss:$8 sps:$4 sm:$0xff]  }
  0x19   : > { %v1330_v41 = vld [vmem:[%s1414_s13 + $0xe4] ss:$8 sps:$4 sm:$0xff]   ;;  %v1333_v43 = vld [vmem:[%s1414_s13 + $0xe0] ss:$8 sps:$4 sm:$0xff]   ;;  %v1336_v45 = vld [vmem:[%s1414_s13 + $0xf4] ss:$8 sps:$4 sm:$0xff]  }
  0x1a   : > { %v1338_v46 = vld [vmem:[%s1414_s13 + $0x70] ss:$8 sps:$4 sm:$0xff]  }
  0x1b   : > { %1151 = vmatpush3.bf16.msra.mxu0 %v1287_v13  ;;  %1265 = vmatpush3.bf16.msra.mxu1 %v1287_v13  ;;  %v1339_v47 = vld [vmem:[%s1414_s13 + $0xf0] ss:$8 sps:$4 sm:$0xff]  }
  0x1c   : > { %1152 = vmatprep.subr.bf16.mxu0 %v1288_v14  ;;  %1258 = vmatprep.subr.bf16.mxu1 %v1288_v14 }
  0x1f   : > { %1153 = vmatpush3.bf16.msra.mxu0 %v1289_v15  ;;  %1266 = vmatpush3.bf16.msra.mxu1 %v1289_v15 }
  0x20   : > { %1154 = vmatprep.subr.bf16.mxu0 %v1290_v16  ;;  %1259 = vmatprep.subr.bf16.mxu1 %v1290_v16 }
  0x23   : > { %1155 = vmatpush3.bf16.msra.mxu0 %v1291_v17  ;;  %1267 = vmatpush3.bf16.msra.mxu1 %v1291_v17 }
  0x26   : > { %558 = vmatmul.mubr.bf16.vlgmr.msra.gmra.mrb[0].mxu0 %v1292_v18  ;;  %622 = vmatmul.mubr.bf16.vlgmr.msra.gmra.mrb[0].mxu1 %v1295_v19 }
  0x27   : > { %565 = vmatprep.mubr.bf16.mxu0 %v1298_v20  ;;  %629 = vmatprep.mubr.bf16.mxu1 %v1300_v21 }
  0x2e   : > { %566 = vmatmul.mubr.bf16.gmra.mrb[4].mxu0 %v1302_v22  ;;  %630 = vmatmul.mubr.bf16.gmra.mrb[4].mxu1 %v1303_v23 }
  0x2f   : > { %573 = vmatprep.mubr.bf16.mxu0 %v1304_v24  ;;  %637 = vmatprep.mubr.bf16.mxu1 %v1306_v25 }
  0x36   : > { %574 = vmatmul.mubr.bf16.gmra.mrb[8].mxu0 %v1308_v26  ;;  %638 = vmatmul.mubr.bf16.gmra.mrb[8].mxu1 %v1309_v27 }
  0x37   : > { %581 = vmatprep.mubr.bf16.mxu0 %v1310_v28  ;;  %645 = vmatprep.mubr.bf16.mxu1 %v1312_v29 }
  0x3e   : > { %582 = vmatmul.mubr.bf16.gmra.mrb[12].mxu0 %v1314_v30  ;;  %646 = vmatmul.mubr.bf16.gmra.mrb[12].mxu1 %v1315_v31 }
  0x3f   : > { %589 = vmatprep.mubr.bf16.mxu0 %v1316_v32  ;;  %653 = vmatprep.mubr.bf16.mxu1 %v1318_v33 }
  0x46   : > { %590 = vmatmul.mubr.bf16.gmra.mrb[16].mxu0 %v1320_v34  ;;  %654 = vmatmul.mubr.bf16.gmra.mrb[16].mxu1 %v1321_v35 }
  0x47   : > { %597 = vmatprep.mubr.bf16.mxu0 %v1322_v36  ;;  %661 = vmatprep.mubr.bf16.mxu1 %v1324_v37 }
  0x4e   : > { %598 = vmatmul.mubr.bf16.gmra.mrb[20].mxu0 %v1326_v38  ;;  %662 = vmatmul.mubr.bf16.gmra.mrb[20].mxu1 %v1327_v39 }
  0x4f   : > { %605 = vmatprep.mubr.bf16.mxu0 %v1328_v40  ;;  %669 = vmatprep.mubr.bf16.mxu1 %v1330_v41 }
  0x56   : > { %606 = vmatmul.mubr.bf16.gmra.mrb[24].mxu0 %v1332_v42  ;;  %670 = vmatmul.mubr.bf16.gmra.mrb[24].mxu1 %v1333_v43 }
  0x57   : > { %613 = vmatprep.mubr.bf16.mxu0 %v1334_v44  ;;  %677 = vmatprep.mubr.bf16.mxu1 %v1336_v45 }
  0x5e   : > { %614 = vmatmul.mubr.bf16.gmra.mrb[28].mxu0 %v1338_v46  ;;  %678 = vmatmul.mubr.bf16.gmra.mrb[28].mxu1 %v1339_v47 }
  0xf9   : > { %v1156_v48 = vpop.f32.mrb[0].mxu0  ;;  %v1204_v49 = vpop.f32.mrb[0].mxu1 }
  0xfa   : > { %v1157_v50 = vpop.f32.mrb[1].mxu0  ;;  %v1205_v52 = vpop.f32.mrb[1].mxu1 }
  0xfb   : > { %v1158_v53 = vadd.f32 %v1157_v50, %v1156_v48  ;;  %v1206_v54 = vadd.f32 %v1205_v52, %v1204_v49  ;;  %v1159_v55 = vpop.f32.mrb[2].mxu0  ;;  %v1207_v56 = vpop.f32.mrb[2].mxu1 }
  0xfc   : > { %v1160_v58 = vpop.f32.mrb[3].mxu0  ;;  %v1208_v59 = vpop.f32.mrb[3].mxu1 }
  0xfd   : > { %v693_v60 = vmul.f32 %v1158_v53, %v1472_v51  ;;  %v709_v61 = vmul.f32 %v1206_v54, %v1472_v51  ;;  %v1161_v62 = vadd.f32 %v1160_v58, %v1159_v55  ;;  %v1209_v63 = vadd.f32 %v1208_v59, %v1207_v56 }
  0xff   : > { %v732_v0 = vadd.f32 %v1477_v57, %v693_v60  ;;  %v748_v1 = vadd.f32 %v1477_v57, %v709_v61  ;;  %v694_v2 = vmul.f32 %v1161_v62, %v1472_v51  ;;  %v710_v3 = vmul.f32 %v1209_v63, %v1472_v51 }
 0x101   : > { %v764_v4 = vmax.f32 %v732_v0, 0.0  ;;  %v780_v5 = vmax.f32 %v748_v1, 0.0  ;;  %v733_v6 = vadd.f32 %v1477_v57, %v694_v2  ;;  %v749_v7 = vadd.f32 %v1477_v57, %v710_v3  ;;  %v1162_v8 = vpop.f32.mrb[4].mxu0  ;;  %v1210_v9 = vpop.f32.mrb[4].mxu1 }
 0x102   : > { %v1163_v10 = vpop.f32.mrb[5].mxu0  ;;  %v1211_v11 = vpop.f32.mrb[5].mxu1 }
 0x103   : > { %v1108_v12 = vpack.c.bf16 %v764_v4, %v764_v4  ;;  %v1124_v13 = vpack.c.bf16 %v780_v5, %v780_v5  ;;  %v765_v14 = vmax.f32 %v733_v6, 0.0  ;;  %v781_v15 = vmax.f32 %v749_v7, 0.0  ;;  %v1165_v16 = vpop.f32.mrb[6].mxu0  ;;  %v1213_v17 = vpop.f32.mrb[6].mxu1 }
 0x104   : > { %v1164_v18 = vadd.f32 %v1163_v10, %v1162_v8  ;;  %v1212_v19 = vadd.f32 %v1211_v11, %v1210_v9  ;;  %v1166_v20 = vpop.f32.mrb[7].mxu0  ;;  %v1214_v21 = vpop.f32.mrb[7].mxu1 }
 0x105   : > { %925 = vst.msk [vmem:[%s1491_s19] sm:$0xf] %vm924_vm0, %v1108_v12  ;;  %941 = vst.msk [vmem:[%s1491_s19 + $0x40] sm:$0xf] %vm924_vm0, %v1124_v13  ;;  %v1109_v22 = vpack.c.bf16 %v765_v14, %v765_v14  ;;  %v1125_v23 = vpack.c.bf16 %v781_v15, %v781_v15  ;;  %v1167_v24 = vadd.f32 %v1166_v20, %v1165_v16 }
 0x106   : > { %v1215_v25 = vadd.f32 %v1214_v21, %v1213_v17  ;;  %v695_v26 = vmul.f32 %v1164_v18, %v1472_v51  ;;  %v711_v27 = vmul.f32 %v1212_v19, %v1472_v51 }
 0x107   : > { %926 = vst.msk [vmem:[%s1491_s19 + $0x4] sm:$0xf] %vm924_vm0, %v1109_v22  ;;  %942 = vst.msk [vmem:[%s1491_s19 + $0x44] sm:$0xf] %vm924_vm0, %v1125_v23  ;;  %v696_v28 = vmul.f32 %v1167_v24, %v1472_v51 }
 0x108   : > { %v712_v29 = vmul.f32 %v1215_v25, %v1472_v51  ;;  %v734_v30 = vadd.f32 %v1477_v57, %v695_v26  ;;  %v750_v31 = vadd.f32 %v1477_v57, %v711_v27 }
 0x109   : > { %v735_v32 = vadd.f32 %v1477_v57, %v696_v28  ;;  %v1168_v34 = vpop.f32.mrb[8].mxu0  ;;  %v1216_v35 = vpop.f32.mrb[8].mxu1 }
 0x10a   : > { %v751_v33 = vadd.f32 %v1477_v57, %v712_v29  ;;  %v766_v36 = vmax.f32 %v734_v30, 0.0  ;;  %v782_v37 = vmax.f32 %v750_v31, 0.0  ;;  %v1169_v38 = vpop.f32.mrb[9].mxu0  ;;  %v1217_v39 = vpop.f32.mrb[9].mxu1 }
 0x10b   : > { %v767_v40 = vmax.f32 %v735_v32, 0.0  ;;  %v1170_v42 = vadd.f32 %v1169_v38, %v1168_v34  ;;  %v1218_v43 = vadd.f32 %v1217_v39, %v1216_v35  ;;  %v1171_v44 = vpop.f32.mrb[10].mxu0  ;;  %v1219_v45 = vpop.f32.mrb[10].mxu1 }
 0x10c   : > { %v783_v41 = vmax.f32 %v751_v33, 0.0  ;;  %v1110_v46 = vpack.c.bf16 %v766_v36, %v766_v36  ;;  %v1126_v47 = vpack.c.bf16 %v782_v37, %v782_v37  ;;  %v1172_v48 = vpop.f32.mrb[11].mxu0  ;;  %v1220_v49 = vpop.f32.mrb[11].mxu1 }
 0x10d   : > { %v1111_v50 = vpack.c.bf16 %v767_v40, %v767_v40  ;;  %v697_v53 = vmul.f32 %v1170_v42, %v1472_v51  ;;  %v713_v54 = vmul.f32 %v1218_v43, %v1472_v51  ;;  %v1173_v55 = vadd.f32 %v1172_v48, %v1171_v44 }
 0x10e   : > { %v1127_v52 = vpack.c.bf16 %v783_v41, %v783_v41  ;;  %927 = vst.msk [vmem:[%s1491_s19 + $0x8] sm:$0xf] %vm924_vm0, %v1110_v46  ;;  %943 = vst.msk [vmem:[%s1491_s19 + $0x48] sm:$0xf] %vm924_vm0, %v1126_v47  ;;  %v1221_v56 = vadd.f32 %v1220_v49, %v1219_v45 }
 0x10f   : > { %928 = vst.msk [vmem:[%s1491_s19 + $0xc] sm:$0xf] %vm924_vm0, %v1111_v50  ;;  %v736_v58 = vadd.f32 %v1477_v57, %v697_v53  ;;  %v752_v59 = vadd.f32 %v1477_v57, %v713_v54  ;;  %v698_v60 = vmul.f32 %v1173_v55, %v1472_v51 }
 0x110   : > { %944 = vst.msk [vmem:[%s1491_s19 + $0x4c] sm:$0xf] %vm924_vm0, %v1127_v52  ;;  %v714_v61 = vmul.f32 %v1221_v56, %v1472_v51 }
 0x111   : > { %v768_v62 = vmax.f32 %v736_v58, 0.0  ;;  %v784_v63 = vmax.f32 %v752_v59, 0.0  ;;  %v1174_v0 = vpop.f32.mrb[12].mxu0  ;;  %v1222_v1 = vpop.f32.mrb[12].mxu1  ;;  %v737_v2 = vadd.f32 %v1477_v57, %v698_v60 }
 0x112   : > { %v753_v3 = vadd.f32 %v1477_v57, %v714_v61  ;;  %v1175_v4 = vpop.f32.mrb[13].mxu0  ;;  %v1223_v5 = vpop.f32.mrb[13].mxu1 }
 0x113   : > { %v1112_v6 = vpack.c.bf16 %v768_v62, %v768_v62  ;;  %v1128_v7 = vpack.c.bf16 %v784_v63, %v784_v63  ;;  %v1176_v8 = vadd.f32 %v1175_v4, %v1174_v0  ;;  %v1224_v9 = vadd.f32 %v1223_v5, %v1222_v1  ;;  %v1177_v10 = vpop.f32.mrb[14].mxu0  ;;  %v1225_v11 = vpop.f32.mrb[14].mxu1 }
 0x114   : > { %v769_v12 = vmax.f32 %v737_v2, 0.0  ;;  %v785_v13 = vmax.f32 %v753_v3, 0.0  ;;  %v1178_v14 = vpop.f32.mrb[15].mxu0  ;;  %v1226_v15 = vpop.f32.mrb[15].mxu1 }
 0x115   : > { %929 = vst.msk [vmem:[%s1491_s19 + $0x10] sm:$0xf] %vm924_vm0, %v1112_v6  ;;  %945 = vst.msk [vmem:[%s1491_s19 + $0x50] sm:$0xf] %vm924_vm0, %v1128_v7  ;;  %v699_v16 = vmul.f32 %v1176_v8, %v1472_v51  ;;  %v715_v17 = vmul.f32 %v1224_v9, %v1472_v51  ;;  %v1179_v18 = vadd.f32 %v1178_v14, %v1177_v10 }
 0x116   : > { %v1227_v19 = vadd.f32 %v1226_v15, %v1225_v11  ;;  %v1113_v20 = vpack.c.bf16 %v769_v12, %v769_v12  ;;  %v1129_v21 = vpack.c.bf16 %v785_v13, %v785_v13 }
 0x117   : > { %v738_v22 = vadd.f32 %v1477_v57, %v699_v16  ;;  %v754_v23 = vadd.f32 %v1477_v57, %v715_v17  ;;  %v700_v24 = vmul.f32 %v1179_v18, %v1472_v51 }
 0x118   : > { %v716_v25 = vmul.f32 %v1227_v19, %v1472_v51  ;;  %930 = vst.msk [vmem:[%s1491_s19 + $0x14] sm:$0xf] %vm924_vm0, %v1113_v20  ;;  %946 = vst.msk [vmem:[%s1491_s19 + $0x54] sm:$0xf] %vm924_vm0, %v1129_v21 }
 0x119   : > { %v770_v26 = vmax.f32 %v738_v22, 0.0  ;;  %v786_v27 = vmax.f32 %v754_v23, 0.0  ;;  %v739_v28 = vadd.f32 %v1477_v57, %v700_v24  ;;  %v1180_v30 = vpop.f32.mrb[16].mxu0  ;;  %v1228_v31 = vpop.f32.mrb[16].mxu1 }
 0x11a   : > { %v755_v29 = vadd.f32 %v1477_v57, %v716_v25  ;;  %v1181_v32 = vpop.f32.mrb[17].mxu0  ;;  %v1229_v33 = vpop.f32.mrb[17].mxu1 }
 0x11b   : > { %v1114_v34 = vpack.c.bf16 %v770_v26, %v770_v26  ;;  %v1130_v35 = vpack.c.bf16 %v786_v27, %v786_v27  ;;  %v771_v36 = vmax.f32 %v739_v28, 0.0  ;;  %v1183_v38 = vpop.f32.mrb[18].mxu0  ;;  %v1231_v39 = vpop.f32.mrb[18].mxu1  ;;  %v1182_v40 = vadd.f32 %v1181_v32, %v1180_v30 }
 0x11c   : > { %v787_v37 = vmax.f32 %v755_v29, 0.0  ;;  %v1230_v41 = vadd.f32 %v1229_v33, %v1228_v31  ;;  %v1184_v42 = vpop.f32.mrb[19].mxu0  ;;  %v1232_v43 = vpop.f32.mrb[19].mxu1 }
 0x11d   : > { %931 = vst.msk [vmem:[%s1491_s19 + $0x18] sm:$0xf] %vm924_vm0, %v1114_v34  ;;  %947 = vst.msk [vmem:[%s1491_s19 + $0x58] sm:$0xf] %vm924_vm0, %v1130_v35  ;;  %v1115_v44 = vpack.c.bf16 %v771_v36, %v771_v36  ;;  %v1185_v46 = vadd.f32 %v1184_v42, %v1183_v38  ;;  %v1233_v47 = vadd.f32 %v1232_v43, %v1231_v39 }
 0x11e   : > { %v1131_v45 = vpack.c.bf16 %v787_v37, %v787_v37  ;;  %v701_v48 = vmul.f32 %v1182_v40, %v1472_v51  ;;  %v717_v49 = vmul.f32 %v1230_v41, %v1472_v51 }
 0x11f   : > { %932 = vst.msk [vmem:[%s1491_s19 + $0x1c] sm:$0xf] %vm924_vm0, %v1115_v44  ;;  %v702_v50 = vmul.f32 %v1185_v46, %v1472_v51  ;;  %v718_v52 = vmul.f32 %v1233_v47, %v1472_v51 }
 0x120   : > { %948 = vst.msk [vmem:[%s1491_s19 + $0x5c] sm:$0xf] %vm924_vm0, %v1131_v45  ;;  %v740_v53 = vadd.f32 %v1477_v57, %v701_v48  ;;  %v756_v54 = vadd.f32 %v1477_v57, %v717_v49 }
 0x121   : > { %v741_v55 = vadd.f32 %v1477_v57, %v702_v50  ;;  %v757_v56 = vadd.f32 %v1477_v57, %v718_v52  ;;  %v1186_v58 = vpop.f32.mrb[20].mxu0  ;;  %v1234_v59 = vpop.f32.mrb[20].mxu1 }
 0x122   : > { %v772_v60 = vmax.f32 %v740_v53, 0.0  ;;  %v788_v61 = vmax.f32 %v756_v54, 0.0  ;;  %v1187_v62 = vpop.f32.mrb[21].mxu0  ;;  %v1235_v63 = vpop.f32.mrb[21].mxu1 }
 0x123   : > { %v773_v0 = vmax.f32 %v741_v55, 0.0  ;;  %v789_v1 = vmax.f32 %v757_v56, 0.0  ;;  %v1188_v2 = vadd.f32 %v1187_v62, %v1186_v58  ;;  %v1236_v3 = vadd.f32 %v1235_v63, %v1234_v59  ;;  %v1189_v4 = vpop.f32.mrb[22].mxu0  ;;  %v1237_v5 = vpop.f32.mrb[22].mxu1 }
 0x124   : > { %v1116_v6 = vpack.c.bf16 %v772_v60, %v772_v60  ;;  %v1132_v7 = vpack.c.bf16 %v788_v61, %v788_v61  ;;  %v1190_v8 = vpop.f32.mrb[23].mxu0  ;;  %v1238_v9 = vpop.f32.mrb[23].mxu1 }
 0x125   : > { %v1117_v10 = vpack.c.bf16 %v773_v0, %v773_v0  ;;  %v1133_v11 = vpack.c.bf16 %v789_v1, %v789_v1  ;;  %v703_v12 = vmul.f32 %v1188_v2, %v1472_v51  ;;  %v719_v13 = vmul.f32 %v1236_v3, %v1472_v51 }
 0x126   : > { %933 = vst.msk [vmem:[%s1491_s19 + $0x20] sm:$0xf] %vm924_vm0, %v1116_v6  ;;  %949 = vst.msk [vmem:[%s1491_s19 + $0x60] sm:$0xf] %vm924_vm0, %v1132_v7  ;;  %v1191_v14 = vadd.f32 %v1190_v8, %v1189_v4  ;;  %v1239_v15 = vadd.f32 %v1238_v9, %v1237_v5 }
 0x127   : > { %934 = vst.msk [vmem:[%s1491_s19 + $0x24] sm:$0xf] %vm924_vm0, %v1117_v10  ;;  %950 = vst.msk [vmem:[%s1491_s19 + $0x64] sm:$0xf] %vm924_vm0, %v1133_v11  ;;  %v742_v16 = vadd.f32 %v1477_v57, %v703_v12  ;;  %v758_v17 = vadd.f32 %v1477_v57, %v719_v13 }
 0x128   : > { %v704_v18 = vmul.f32 %v1191_v14, %v1472_v51  ;;  %v720_v19 = vmul.f32 %v1239_v15, %v1472_v51 }
 0x129   : > { %v774_v20 = vmax.f32 %v742_v16, 0.0  ;;  %v790_v21 = vmax.f32 %v758_v17, 0.0  ;;  %v1192_v22 = vpop.f32.mrb[24].mxu0  ;;  %v1240_v23 = vpop.f32.mrb[24].mxu1 }
 0x12a   : > { %v743_v24 = vadd.f32 %v1477_v57, %v704_v18  ;;  %v759_v25 = vadd.f32 %v1477_v57, %v720_v19  ;;  %v1193_v26 = vpop.f32.mrb[25].mxu0  ;;  %v1241_v27 = vpop.f32.mrb[25].mxu1 }
 0x12b   : > { %v1118_v28 = vpack.c.bf16 %v774_v20, %v774_v20  ;;  %v1134_v29 = vpack.c.bf16 %v790_v21, %v790_v21  ;;  %v1194_v30 = vadd.f32 %v1193_v26, %v1192_v22  ;;  %v1242_v31 = vadd.f32 %v1241_v27, %v1240_v23  ;;  %v1195_v32 = vpop.f32.mrb[26].mxu0  ;;  %v1243_v33 = vpop.f32.mrb[26].mxu1 }
 0x12c   : > { %v775_v34 = vmax.f32 %v743_v24, 0.0  ;;  %v791_v35 = vmax.f32 %v759_v25, 0.0  ;;  %v1196_v36 = vpop.f32.mrb[27].mxu0  ;;  %v1244_v37 = vpop.f32.mrb[27].mxu1 }
 0x12d   : > { %935 = vst.msk [vmem:[%s1491_s19 + $0x28] sm:$0xf] %vm924_vm0, %v1118_v28  ;;  %951 = vst.msk [vmem:[%s1491_s19 + $0x68] sm:$0xf] %vm924_vm0, %v1134_v29  ;;  %v705_v38 = vmul.f32 %v1194_v30, %v1472_v51  ;;  %v721_v39 = vmul.f32 %v1242_v31, %v1472_v51  ;;  %v1197_v40 = vadd.f32 %v1196_v36, %v1195_v32 }
 0x12e   : > { %v1245_v41 = vadd.f32 %v1244_v37, %v1243_v33  ;;  %v1119_v42 = vpack.c.bf16 %v775_v34, %v775_v34  ;;  %v1135_v43 = vpack.c.bf16 %v791_v35, %v791_v35 }
 0x12f   : > { %v744_v44 = vadd.f32 %v1477_v57, %v705_v38  ;;  %v760_v45 = vadd.f32 %v1477_v57, %v721_v39  ;;  %v706_v46 = vmul.f32 %v1197_v40, %v1472_v51 }
 0x130   : > { %v722_v47 = vmul.f32 %v1245_v41, %v1472_v51  ;;  %936 = vst.msk [vmem:[%s1491_s19 + $0x2c] sm:$0xf] %vm924_vm0, %v1119_v42  ;;  %952 = vst.msk [vmem:[%s1491_s19 + $0x6c] sm:$0xf] %vm924_vm0, %v1135_v43 }
 0x131   : > { %v776_v48 = vmax.f32 %v744_v44, 0.0  ;;  %v792_v49 = vmax.f32 %v760_v45, 0.0  ;;  %v745_v50 = vadd.f32 %v1477_v57, %v706_v46  ;;  %v1198_v53 = vpop.f32.mrb[28].mxu0  ;;  %v1246_v54 = vpop.f32.mrb[28].mxu1 }
 0x132   : > { %v761_v52 = vadd.f32 %v1477_v57, %v722_v47  ;;  %v1199_v55 = vpop.f32.mrb[29].mxu0  ;;  %v1247_v56 = vpop.f32.mrb[29].mxu1 }
 0x133   : > { %v1120_v58 = vpack.c.bf16 %v776_v48, %v776_v48  ;;  %v1136_v59 = vpack.c.bf16 %v792_v49, %v792_v49  ;;  %v777_v60 = vmax.f32 %v745_v50, 0.0  ;;  %v1201_v62 = vpop.f32.mrb[30].mxu0  ;;  %v1249_v63 = vpop.f32.mrb[30].mxu1  ;;  %v1200_v0 = vadd.f32 %v1199_v55, %v1198_v53 }
 0x134   : > { %v793_v61 = vmax.f32 %v761_v52, 0.0  ;;  %v1248_v1 = vadd.f32 %v1247_v56, %v1246_v54  ;;  %v1202_v2 = vpop.f32.mrb[31].mxu0  ;;  %v1250_v3 = vpop.f32.mrb[31].mxu1 }
 0x135   : > { %937 = vst.msk [vmem:[%s1491_s19 + $0x30] sm:$0xf] %vm924_vm0, %v1120_v58  ;;  %953 = vst.msk [vmem:[%s1491_s19 + $0x70] sm:$0xf] %vm924_vm0, %v1136_v59  ;;  %v1121_v4 = vpack.c.bf16 %v777_v60, %v777_v60  ;;  %v1203_v6 = vadd.f32 %v1202_v2, %v1201_v62  ;;  %v1251_v7 = vadd.f32 %v1250_v3, %v1249_v63 }
 0x136   : > { %v1137_v5 = vpack.c.bf16 %v793_v61, %v793_v61  ;;  %v707_v8 = vmul.f32 %v1200_v0, %v1472_v51  ;;  %v723_v9 = vmul.f32 %v1248_v1, %v1472_v51 }
 0x137   : > { %938 = vst.msk [vmem:[%s1491_s19 + $0x34] sm:$0xf] %vm924_vm0, %v1121_v4  ;;  %v708_v10 = vmul.f32 %v1203_v6, %v1472_v51  ;;  %v724_v11 = vmul.f32 %v1251_v7, %v1472_v51 }
 0x138   : > { %954 = vst.msk [vmem:[%s1491_s19 + $0x74] sm:$0xf] %vm924_vm0, %v1137_v5  ;;  %v746_v12 = vadd.f32 %v1477_v57, %v707_v8  ;;  %v762_v13 = vadd.f32 %v1477_v57, %v723_v9 }
 0x139   : > { %v747_v14 = vadd.f32 %v1477_v57, %v708_v10  ;;  %v763_v15 = vadd.f32 %v1477_v57, %v724_v11 }
 0x13a   : > { %v778_v16 = vmax.f32 %v746_v12, 0.0  ;;  %v794_v17 = vmax.f32 %v762_v13, 0.0 }
 0x13b   : > { %v779_v18 = vmax.f32 %v747_v14, 0.0  ;;  %v795_v19 = vmax.f32 %v763_v15, 0.0 }
 0x13c   : > { %v1122_v20 = vpack.c.bf16 %v778_v16, %v778_v16  ;;  %v1138_v21 = vpack.c.bf16 %v794_v17, %v794_v17 }
 0x13d   : > { %v1123_v22 = vpack.c.bf16 %v779_v18, %v779_v18  ;;  %v1139_v23 = vpack.c.bf16 %v795_v19, %v795_v19 }
 0x13e   : > { %939 = vst.msk [vmem:[%s1491_s19 + $0x38] sm:$0xf] %vm924_vm0, %v1122_v20  ;;  %955 = vst.msk [vmem:[%s1491_s19 + $0x78] sm:$0xf] %vm924_vm0, %v1138_v21 }
 0x13f   : > { %940 = vst.msk [vmem:[%s1491_s19 + $0x3c] sm:$0xf] %vm924_vm0, %v1123_v22  ;;  %956 = vst.msk [vmem:[%s1491_s19 + $0x7c] sm:$0xf] %vm924_vm0, %v1139_v23 }
 0x140 PF: > { %s14_s15 = sadd.s32 1, %s1346_s15  }
 0x141   : > { %p11_p4 = scmp.ge.s32.totalorder %s14_s15, 4  }
 0x143   :  { %13 = sbr.rel (!%p11_p4) target bundleno = 1 (0x1), region = 66 }

// kernel: feature_extractor_forward.7
= control target key start
LH: loop header
LB: loop body
LE: loop exit
PB: predicated region body
PF: predicated region fallthrough
CT: control target
= control target key end

     0   :  { %vm369_vm0 = vcmask 125952   ;;  %s699_s1 = inlined_call_operand.vmem [shape: bf16[128,16], index: 1, kind: input, shape index: {}]   ;;  %s700_s0 = inlined_call_operand.vmem [shape: bf16[128,128], index: 0, kind: input, shape index: {}]   ;;  %s701_s2 = inlined_call_operand.vmem [shape: f32[1,16], index: 2, kind: input, shape index: {}]   ;;  %s702_s3 = inlined_call_operand.vmem [shape: f32[1,16], index: 3, kind: input, shape index: {}]   ;;  %s703_s4 = inlined_call_operand.vmem [shape: bf16[128,16], index: 4, kind: output, shape index: {}]  }
   0x1   :  { %v504_v0 = vld [vmem:[%s699_s1] sm:$0xff]   ;;  %v505_v1 = vld [vmem:[%s699_s1 + $0x8] sm:$0xff]   ;;  %v506_v2 = vld [vmem:[%s699_s1 + $0x10] sm:$0xff]  }
   0x2   :  { %456 = vmatprep.subr.bf16.mxu0 %v504_v0  ;;  %488 = vmatprep.subr.bf16.mxu1 %v504_v0  ;;  %v507_v3 = vld [vmem:[%s699_s1 + $0x18] sm:$0xff]   ;;  %v512_v4 = vld [vmem:[%s700_s0] sm:$0xff]   ;;  %v509_v7 = vld [vmem:[%s699_s1 + $0x28] sm:$0xff]  }
   0x3   :  { %457 = vmatpush3.bf16.msra.mxu0 %v504_v0  ;;  %496 = vmatpush3.bf16.msra.mxu1 %v504_v0  ;;  %v513_v5 = vld [vmem:[%s700_s0 + $0x20] sm:$0xff]   ;;  %v510_v8 = vld [vmem:[%s699_s1 + $0x30] sm:$0xff]   ;;  %v511_v9 = vld [vmem:[%s699_s1 + $0x38] sm:$0xff]  }
   0x4   :  { %458 = vmatprep.subr.bf16.mxu0 %v505_v1  ;;  %489 = vmatprep.subr.bf16.mxu1 %v505_v1  ;;  %v508_v6 = vld [vmem:[%s699_s1 + $0x20] sm:$0xff]   ;;  %v514_v10 = vld [vmem:[%s700_s0 + $0x8] sm:$0xff]   ;;  %v516_v12 = vld [vmem:[%s700_s0 + $0x10] sm:$0xff]  }
   0x5   :  { %472 = vmatprep.mubr.bf16.mxu0 %v512_v4  ;;  %480 = vmatprep.mubr.bf16.mxu1 %v513_v5  ;;  %v515_v11 = vld [vmem:[%s700_s0 + $0x28] sm:$0xff]   ;;  %v517_v13 = vld [vmem:[%s700_s0 + $0x30] sm:$0xff]   ;;  %v518_v14 = vld [vmem:[%s700_s0 + $0x18] sm:$0xff]  }
   0x6   :  { %v519_v15 = vld [vmem:[%s700_s0 + $0x38] sm:$0xff]   ;;  %v596_v16 = vld [vmem:[%s701_s2] ss:$0 sm:$0xff] }
   0x7   :  { %459 = vmatpush3.bf16.msra.mxu0 %v505_v1  ;;  %497 = vmatpush3.bf16.msra.mxu1 %v505_v1  ;;  %v601_v18 = vld [vmem:[%s702_s3] ss:$0 sm:$0xff] }
   0x8   :  { %460 = vmatprep.subr.bf16.mxu0 %v506_v2  ;;  %490 = vmatprep.subr.bf16.mxu1 %v506_v2 }
   0xb   :  { %461 = vmatpush3.bf16.msra.mxu0 %v506_v2  ;;  %498 = vmatpush3.bf16.msra.mxu1 %v506_v2 }
   0xc   :  { %462 = vmatprep.subr.bf16.mxu0 %v507_v3  ;;  %491 = vmatprep.subr.bf16.mxu1 %v507_v3 }
   0xf   :  { %463 = vmatpush3.bf16.msra.mxu0 %v507_v3  ;;  %499 = vmatpush3.bf16.msra.mxu1 %v507_v3 }
  0x10   :  { %464 = vmatprep.subr.bf16.mxu0 %v508_v6  ;;  %492 = vmatprep.subr.bf16.mxu1 %v508_v6 }
  0x13   :  { %465 = vmatpush3.bf16.msra.mxu0 %v508_v6  ;;  %500 = vmatpush3.bf16.msra.mxu1 %v508_v6 }
  0x14   :  { %466 = vmatprep.subr.bf16.mxu0 %v509_v7  ;;  %493 = vmatprep.subr.bf16.mxu1 %v509_v7 }
  0x17   :  { %467 = vmatpush3.bf16.msra.mxu0 %v509_v7  ;;  %501 = vmatpush3.bf16.msra.mxu1 %v509_v7 }
  0x18   :  { %468 = vmatprep.subr.bf16.mxu0 %v510_v8  ;;  %494 = vmatprep.subr.bf16.mxu1 %v510_v8 }
  0x1b   :  { %469 = vmatpush3.bf16.msra.mxu0 %v510_v8  ;;  %502 = vmatpush3.bf16.msra.mxu1 %v510_v8 }
  0x1c   :  { %470 = vmatprep.subr.bf16.mxu0 %v511_v9  ;;  %495 = vmatprep.subr.bf16.mxu1 %v511_v9 }
  0x1f   :  { %471 = vmatpush3.bf16.msra.mxu0 %v511_v9  ;;  %503 = vmatpush3.bf16.msra.mxu1 %v511_v9 }
  0x22   :  { %473 = vmatmul.mubr.bf16.vlgmr.msra.gmra.mrb[0].mxu0 %v514_v10  ;;  %481 = vmatmul.mubr.bf16.vlgmr.msra.gmra.mrb[0].mxu1 %v515_v11 }
  0x23   :  { %476 = vmatprep.mubr.bf16.mxu0 %v516_v12  ;;  %484 = vmatprep.mubr.bf16.mxu1 %v517_v13 }
  0x2a   :  { %477 = vmatmul.mubr.bf16.gmra.mrb[4].mxu0 %v518_v14  ;;  %485 = vmatmul.mubr.bf16.gmra.mrb[4].mxu1 %v519_v15 }
  0xf5   :  { %v474_v17 = vpop.f32.mrb[0].mxu0  ;;  %v482_v19 = vpop.f32.mrb[0].mxu1 }
  0xf6   :  { %v252_v20 = vmul.f32 %v474_v17, %v596_v16  ;;  %v260_v21 = vmul.f32 %v482_v19, %v596_v16  ;;  %v180_v22 = vpop.f32.mrb[1].mxu0  ;;  %v212_v23 = vpop.f32.mrb[1].mxu1 }
  0xf7   :  { %v250_v24 = vmul.f32 %v596_v16, %v180_v22  ;;  %v258_v25 = vmul.f32 %v596_v16, %v212_v23  ;;  %v475_v26 = vpop.f32.mrb[2].mxu0  ;;  %v483_v27 = vpop.f32.mrb[2].mxu1 }
  0xf8   :  { %v275_v28 = vadd.f32 %v601_v18, %v252_v20  ;;  %v283_v29 = vadd.f32 %v601_v18, %v260_v21  ;;  %v253_v30 = vmul.f32 %v475_v26, %v596_v16  ;;  %v261_v31 = vmul.f32 %v483_v27, %v596_v16  ;;  %v183_v32 = vpop.f32.mrb[3].mxu0  ;;  %v215_v33 = vpop.f32.mrb[3].mxu1 }
  0xf9   :  { %v273_v34 = vadd.f32 %v601_v18, %v250_v24  ;;  %v281_v35 = vadd.f32 %v601_v18, %v258_v25  ;;  %v251_v36 = vmul.f32 %v596_v16, %v183_v32  ;;  %v259_v37 = vmul.f32 %v596_v16, %v215_v33 }
  0xfa   :  { %v291_v38 = vmax.f32 %v275_v28, 0.0  ;;  %v299_v39 = vmax.f32 %v283_v29, 0.0  ;;  %v276_v40 = vadd.f32 %v601_v18, %v253_v30  ;;  %v284_v41 = vadd.f32 %v601_v18, %v261_v31 }
  0xfb   :  { %v289_v42 = vmax.f32 %v273_v34, 0.0  ;;  %v297_v43 = vmax.f32 %v281_v35, 0.0  ;;  %v274_v44 = vadd.f32 %v601_v18, %v251_v36  ;;  %v282_v45 = vadd.f32 %v601_v18, %v259_v37 }
  0xfc   :  { %v426_v46 = vpack.c.bf16 %v291_v38, %v291_v38  ;;  %v434_v47 = vpack.c.bf16 %v299_v39, %v299_v39  ;;  %v292_v48 = vmax.f32 %v276_v40, 0.0  ;;  %v300_v49 = vmax.f32 %v284_v41, 0.0 }
  0xfd   :  { %v424_v50 = vpack.c.bf16 %v289_v42, %v289_v42  ;;  %v432_v51 = vpack.c.bf16 %v297_v43, %v297_v43  ;;  %v290_v52 = vmax.f32 %v274_v44, 0.0  ;;  %v298_v53 = vmax.f32 %v282_v45, 0.0  ;;  %v478_v54 = vpop.f32.mrb[4].mxu0  ;;  %v486_v55 = vpop.f32.mrb[4].mxu1 }
  0xfe   :  { %372 = vst.msk [vmem:[%s703_s4 + $0x8] sm:$0xf] %vm369_vm0, %v426_v46  ;;  %380 = vst.msk [vmem:[%s703_s4 + $0x28] sm:$0xf] %vm369_vm0, %v434_v47  ;;  %v427_v56 = vpack.c.bf16 %v292_v48, %v292_v48  ;;  %v435_v57 = vpack.c.bf16 %v300_v49, %v300_v49  ;;  %v256_v58 = vmul.f32 %v478_v54, %v596_v16  ;;  %v196_v60 = vpop.f32.mrb[5].mxu0  ;;  %v228_v61 = vpop.f32.mrb[5].mxu1 }
  0xff   :  { %v264_v59 = vmul.f32 %v486_v55, %v596_v16  ;;  %370 = vst.msk [vmem:[%s703_s4] sm:$0xf] %vm369_vm0, %v424_v50  ;;  %378 = vst.msk [vmem:[%s703_s4 + $0x20] sm:$0xf] %vm369_vm0, %v432_v51  ;;  %v425_v62 = vpack.c.bf16 %v290_v52, %v290_v52  ;;  %v433_v63 = vpack.c.bf16 %v298_v53, %v298_v53  ;;  %v479_v2 = vpop.f32.mrb[6].mxu0  ;;  %v487_v3 = vpop.f32.mrb[6].mxu1 }
 0x100   :  { %v254_v0 = vmul.f32 %v596_v16, %v196_v60  ;;  %v262_v1 = vmul.f32 %v596_v16, %v228_v61  ;;  %373 = vst.msk [vmem:[%s703_s4 + $0xc] sm:$0xf] %vm369_vm0, %v427_v56  ;;  %381 = vst.msk [vmem:[%s703_s4 + $0x2c] sm:$0xf] %vm369_vm0, %v435_v57  ;;  %v279_v4 = vadd.f32 %v601_v18, %v256_v58  ;;  %v199_v8 = vpop.f32.mrb[7].mxu0  ;;  %v231_v9 = vpop.f32.mrb[7].mxu1 }
 0x101   :  { %v287_v5 = vadd.f32 %v601_v18, %v264_v59  ;;  %v257_v6 = vmul.f32 %v479_v2, %v596_v16  ;;  %v265_v7 = vmul.f32 %v487_v3, %v596_v16  ;;  %371 = vst.msk [vmem:[%s703_s4 + $0x4] sm:$0xf] %vm369_vm0, %v425_v62  ;;  %379 = vst.msk [vmem:[%s703_s4 + $0x24] sm:$0xf] %vm369_vm0, %v433_v63 }
 0x102   :  { %v277_v10 = vadd.f32 %v601_v18, %v254_v0  ;;  %v285_v11 = vadd.f32 %v601_v18, %v262_v1  ;;  %v255_v12 = vmul.f32 %v596_v16, %v199_v8  ;;  %v263_v13 = vmul.f32 %v596_v16, %v231_v9 }
 0x103   :  { %v295_v14 = vmax.f32 %v279_v4, 0.0  ;;  %v303_v15 = vmax.f32 %v287_v5, 0.0  ;;  %v280_v17 = vadd.f32 %v601_v18, %v257_v6  ;;  %v288_v19 = vadd.f32 %v601_v18, %v265_v7 }
 0x104   :  { %v293_v20 = vmax.f32 %v277_v10, 0.0  ;;  %v301_v21 = vmax.f32 %v285_v11, 0.0  ;;  %v278_v22 = vadd.f32 %v601_v18, %v255_v12  ;;  %v286_v23 = vadd.f32 %v601_v18, %v263_v13 }
 0x105   :  { %v430_v24 = vpack.c.bf16 %v295_v14, %v295_v14  ;;  %v438_v25 = vpack.c.bf16 %v303_v15, %v303_v15  ;;  %v296_v26 = vmax.f32 %v280_v17, 0.0  ;;  %v304_v27 = vmax.f32 %v288_v19, 0.0 }
 0x106   :  { %v428_v28 = vpack.c.bf16 %v293_v20, %v293_v20  ;;  %v436_v29 = vpack.c.bf16 %v301_v21, %v301_v21  ;;  %v294_v30 = vmax.f32 %v278_v22, 0.0  ;;  %v302_v16 = vmax.f32 %v286_v23, 0.0 }
 0x107   :  { %376 = vst.msk [vmem:[%s703_s4 + $0x18] sm:$0xf] %vm369_vm0, %v430_v24  ;;  %384 = vst.msk [vmem:[%s703_s4 + $0x38] sm:$0xf] %vm369_vm0, %v438_v25  ;;  %v431_v31 = vpack.c.bf16 %v296_v26, %v296_v26  ;;  %v439_v18 = vpack.c.bf16 %v304_v27, %v304_v27 }
 0x108   :  { %374 = vst.msk [vmem:[%s703_s4 + $0x10] sm:$0xf] %vm369_vm0, %v428_v28  ;;  %382 = vst.msk [vmem:[%s703_s4 + $0x30] sm:$0xf] %vm369_vm0, %v436_v29  ;;  %v429_v32 = vpack.c.bf16 %v294_v30, %v294_v30  ;;  %v437_v33 = vpack.c.bf16 %v302_v16, %v302_v16 }
 0x109   :  { %377 = vst.msk [vmem:[%s703_s4 + $0x1c] sm:$0xf] %vm369_vm0, %v431_v31  ;;  %385 = vst.msk [vmem:[%s703_s4 + $0x3c] sm:$0xf] %vm369_vm0, %v439_v18 }
 0x10a   :  { %375 = vst.msk [vmem:[%s703_s4 + $0x14] sm:$0xf] %vm369_vm0, %v429_v32  ;;  %383 = vst.msk [vmem:[%s703_s4 + $0x34] sm:$0xf] %vm369_vm0, %v437_v33 }

// kernel: feature_extractor_forward.8
= control target key start
LH: loop header
LB: loop body
LE: loop exit
PB: predicated region body
PF: predicated region fallthrough
CT: control target
= control target key end

     0   :  { %vm261_vm0 = vcmask 257024   ;;  %s469_s1 = inlined_call_operand.vmem [shape: bf16[256,32], index: 1, kind: input, shape index: {}]   ;;  %s470_s0 = inlined_call_operand.vmem [shape: bf16[32,256], index: 0, kind: input, shape index: {}]   ;;  %s471_s2 = inlined_call_operand.vmem [shape: f32[1,32], index: 2, kind: input, shape index: {}]   ;;  %s472_s3 = inlined_call_operand.vmem [shape: f32[1,32], index: 3, kind: input, shape index: {}]   ;;  %s473_s4 = inlined_call_operand.vmem [shape: bf16[32,32], index: 4, kind: output, shape index: {}]  }
   0x1   :  { %v344_v0 = vld [vmem:[%s469_s1 + $0x40] sm:$0xff]   ;;  %v346_v2 = vld [vmem:[%s469_s1 + $0x48] sm:$0xff]   ;;  %v348_v4 = vld [vmem:[%s469_s1 + $0x50] sm:$0xff]  }
   0x2   :  { %v345_v1 = vld [vmem:[%s469_s1] sm:$0xff]   ;;  %300 = vmatprep.subr.bf16.mxu0 %v344_v0  ;;  %328 = vmatprep.subr.bf16.mxu1 %v344_v0  ;;  %v347_v3 = vld [vmem:[%s469_s1 + $0x8] sm:$0xff]   ;;  %v349_v5 = vld [vmem:[%s469_s1 + $0x10] sm:$0xff]  }
   0x3   :  { %301 = vmatpush3.bf16.msra.mxu0 %v345_v1  ;;  %336 = vmatpush3.bf16.msra.mxu1 %v345_v1  ;;  %v350_v6 = vld [vmem:[%s469_s1 + $0x58] sm:$0xff]   ;;  %v352_v8 = vld [vmem:[%s469_s1 + $0x60] sm:$0xff]   ;;  %v354_v10 = vld [vmem:[%s469_s1 + $0x68] sm:$0xff]  }
   0x4   :  { %302 = vmatprep.subr.bf16.mxu0 %v346_v2  ;;  %329 = vmatprep.subr.bf16.mxu1 %v346_v2  ;;  %v351_v7 = vld [vmem:[%s469_s1 + $0x18] sm:$0xff]   ;;  %v353_v9 = vld [vmem:[%s469_s1 + $0x20] sm:$0xff]   ;;  %v355_v13 = vld [vmem:[%s469_s1 + $0x28] sm:$0xff]  }
   0x5   :  { %v362_v11 = vld [vmem:[%s470_s0 + $0x4] ss:$8 sps:$4 sm:$0xff]   ;;  %v365_v12 = vld [vmem:[%s470_s0 + $0x14] ss:$8 sps:$4 sm:$0xff]   ;;  %v360_v18 = vld [vmem:[%s470_s0] ss:$8 sps:$4 sm:$0xff]  }
   0x6   :  { %v356_v14 = vld [vmem:[%s469_s1 + $0x70] sm:$0xff]   ;;  %202 = vmatprep.mubr.bf16.mxu0 %v362_v11  ;;  %210 = vmatprep.mubr.bf16.mxu1 %v365_v12  ;;  %v358_v16 = vld [vmem:[%s469_s1 + $0x78] sm:$0xff]   ;;  %v290_v23 = vld [vmem:[%s471_s2] ss:$0 sm:$0xff] }
   0x7   :  { %303 = vmatpush3.bf16.msra.mxu0 %v347_v3  ;;  %337 = vmatpush3.bf16.msra.mxu1 %v347_v3  ;;  %v357_v15 = vld [vmem:[%s469_s1 + $0x30] sm:$0xff]   ;;  %v359_v17 = vld [vmem:[%s469_s1 + $0x38] sm:$0xff]   ;;  %v291_v29 = vld [vmem:[%s472_s3] ss:$0 sm:$0xff] }
   0x8   :  { %304 = vmatprep.subr.bf16.mxu0 %v348_v4  ;;  %330 = vmatprep.subr.bf16.mxu1 %v348_v4  ;;  %v363_v19 = vld [vmem:[%s470_s0 + $0x10] ss:$8 sps:$4 sm:$0xff]  }
   0xb   :  { %305 = vmatpush3.bf16.msra.mxu0 %v349_v5  ;;  %338 = vmatpush3.bf16.msra.mxu1 %v349_v5 }
   0xc   :  { %306 = vmatprep.subr.bf16.mxu0 %v350_v6  ;;  %331 = vmatprep.subr.bf16.mxu1 %v350_v6 }
   0xf   :  { %307 = vmatpush3.bf16.msra.mxu0 %v351_v7  ;;  %339 = vmatpush3.bf16.msra.mxu1 %v351_v7 }
  0x10   :  { %308 = vmatprep.subr.bf16.mxu0 %v352_v8  ;;  %332 = vmatprep.subr.bf16.mxu1 %v352_v8 }
  0x13   :  { %309 = vmatpush3.bf16.msra.mxu0 %v353_v9  ;;  %340 = vmatpush3.bf16.msra.mxu1 %v353_v9 }
  0x14   :  { %310 = vmatprep.subr.bf16.mxu0 %v354_v10  ;;  %333 = vmatprep.subr.bf16.mxu1 %v354_v10 }
  0x17   :  { %311 = vmatpush3.bf16.msra.mxu0 %v355_v13  ;;  %341 = vmatpush3.bf16.msra.mxu1 %v355_v13 }
  0x18   :  { %312 = vmatprep.subr.bf16.mxu0 %v356_v14  ;;  %334 = vmatprep.subr.bf16.mxu1 %v356_v14 }
  0x1b   :  { %313 = vmatpush3.bf16.msra.mxu0 %v357_v15  ;;  %342 = vmatpush3.bf16.msra.mxu1 %v357_v15 }
  0x1c   :  { %314 = vmatprep.subr.bf16.mxu0 %v358_v16  ;;  %335 = vmatprep.subr.bf16.mxu1 %v358_v16 }
  0x1f   :  { %315 = vmatpush3.bf16.msra.mxu0 %v359_v17  ;;  %343 = vmatpush3.bf16.msra.mxu1 %v359_v17 }
  0x22   :  { %203 = vmatmul.mubr.bf16.vlgmr.msra.gmra.mrb[0].mxu0 %v360_v18  ;;  %211 = vmatmul.mubr.bf16.vlgmr.msra.gmra.mrb[0].mxu1 %v363_v19 }
  0xf5   :  { %v316_v20 = vpop.f32.mrb[0].mxu0  ;;  %v322_v21 = vpop.f32.mrb[0].mxu1 }
  0xf6   :  { %v317_v22 = vpop.f32.mrb[1].mxu0  ;;  %v323_v24 = vpop.f32.mrb[1].mxu1 }
  0xf7   :  { %v318_v25 = vadd.f32 %v317_v22, %v316_v20  ;;  %v324_v26 = vadd.f32 %v323_v24, %v322_v21  ;;  %v319_v27 = vpop.f32.mrb[2].mxu0  ;;  %v325_v28 = vpop.f32.mrb[2].mxu1 }
  0xf8   :  { %v320_v30 = vpop.f32.mrb[3].mxu0  ;;  %v326_v31 = vpop.f32.mrb[3].mxu1 }
  0xf9   :  { %v226_v32 = vmul.f32 %v318_v25, %v290_v23  ;;  %v228_v33 = vmul.f32 %v324_v26, %v290_v23  ;;  %v321_v34 = vadd.f32 %v320_v30, %v319_v27  ;;  %v327_v35 = vadd.f32 %v326_v31, %v325_v28 }
  0xfb   :  { %v237_v36 = vadd.f32 %v291_v29, %v226_v32  ;;  %v239_v37 = vadd.f32 %v291_v29, %v228_v33  ;;  %v227_v38 = vmul.f32 %v321_v34, %v290_v23  ;;  %v229_v39 = vmul.f32 %v327_v35, %v290_v23 }
  0xfd   :  { %v241_v40 = vmax.f32 %v237_v36, 0.0  ;;  %v243_v41 = vmax.f32 %v239_v37, 0.0  ;;  %v238_v42 = vadd.f32 %v291_v29, %v227_v38  ;;  %v240_v43 = vadd.f32 %v291_v29, %v229_v39 }
  0xff   :  { %v296_v44 = vpack.c.bf16 %v241_v40, %v241_v40  ;;  %v298_v45 = vpack.c.bf16 %v243_v41, %v243_v41  ;;  %v242_v46 = vmax.f32 %v238_v42, 0.0  ;;  %v244_v47 = vmax.f32 %v240_v43, 0.0 }
 0x101   :  { %262 = vst.msk [vmem:[%s473_s4] sm:$0xf] %vm261_vm0, %v296_v44  ;;  %264 = vst.msk [vmem:[%s473_s4 + $0x8] sm:$0xf] %vm261_vm0, %v298_v45  ;;  %v297_v48 = vpack.c.bf16 %v242_v46, %v242_v46  ;;  %v299_v49 = vpack.c.bf16 %v244_v47, %v244_v47 }
 0x103   :  { %263 = vst.msk [vmem:[%s473_s4 + $0x4] sm:$0xf] %vm261_vm0, %v297_v48  ;;  %265 = vst.msk [vmem:[%s473_s4 + $0xc] sm:$0xf] %vm261_vm0, %v299_v49 }

// kernel: feature_extractor_forward.9
= control target key start
LH: loop header
LB: loop body
LE: loop exit
PB: predicated region body
PF: predicated region fallthrough
CT: control target
= control target key end

     0   :  { %vm408_vm0 = vcmask 257024   ;;  %s684_s1 = inlined_call_operand.vmem [shape: bf16[512,32], index: 1, kind: input, shape index: {}]   ;;  %s685_s0 = inlined_call_operand.vmem [shape: bf16[16,512], index: 0, kind: input, shape index: {}]   ;;  %s686_s2 = inlined_call_operand.vmem [shape: f32[1,32], index: 2, kind: input, shape index: {}]   ;;  %s687_s3 = inlined_call_operand.vmem [shape: f32[1,32], index: 3, kind: input, shape index: {}]   ;;  %s688_s4 = inlined_call_operand.vmem [shape: bf16[16,32], index: 4, kind: output, shape index: {}]  }
   0x1   :  { %v501_v0 = vld [vmem:[%s684_s1 + $0x40] sm:$0xff]   ;;  %v505_v4 = vld [vmem:[%s684_s1 + $0x48] sm:$0xff]   ;;  %v509_v8 = vld [vmem:[%s684_s1 + $0x50] sm:$0xff]  }
   0x2   :  { %v502_v1 = vld [vmem:[%s684_s1 + $0xc0] sm:$0xff]   ;;  %457 = vmatprep.subr.bf16.mxu0 %v501_v0  ;;  %v506_v5 = vld [vmem:[%s684_s1 + $0xc8] sm:$0xff]   ;;  %v510_v9 = vld [vmem:[%s684_s1 + $0xd0] sm:$0xff]  }
   0x3   :  { %v503_v2 = vld [vmem:[%s684_s1] sm:$0xff]   ;;  %479 = vmatprep.subr.bf16.mxu1 %v502_v1  ;;  %v507_v6 = vld [vmem:[%s684_s1 + $0x8] sm:$0xff]   ;;  %v511_v10 = vld [vmem:[%s684_s1 + $0x10] sm:$0xff]  }
   0x4   :  { %v504_v3 = vld [vmem:[%s684_s1 + $0x80] sm:$0xff]   ;;  %458 = vmatpush3.bf16.msra.mxu0 %v503_v2  ;;  %v508_v7 = vld [vmem:[%s684_s1 + $0x88] sm:$0xff]   ;;  %v512_v11 = vld [vmem:[%s684_s1 + $0x90] sm:$0xff]  }
   0x5   :  { %480 = vmatpush3.bf16.msra.mxu1 %v504_v3  ;;  %459 = vmatprep.subr.bf16.mxu0 %v505_v4  ;;  %v513_v12 = vld [vmem:[%s684_s1 + $0x58] sm:$0xff]   ;;  %v517_v16 = vld [vmem:[%s684_s1 + $0x60] sm:$0xff]   ;;  %v521_v20 = vld [vmem:[%s684_s1 + $0x68] sm:$0xff]  }
   0x6   :  { %481 = vmatprep.subr.bf16.mxu1 %v506_v5  ;;  %v514_v13 = vld [vmem:[%s684_s1 + $0xd8] sm:$0xff]   ;;  %v518_v17 = vld [vmem:[%s684_s1 + $0xe0] sm:$0xff]   ;;  %v522_v21 = vld [vmem:[%s684_s1 + $0xe8] sm:$0xff]  }
   0x7   :  { %v515_v14 = vld [vmem:[%s684_s1 + $0x18] sm:$0xff]   ;;  %v519_v18 = vld [vmem:[%s684_s1 + $0x20] sm:$0xff]   ;;  %v523_v22 = vld [vmem:[%s684_s1 + $0x28] sm:$0xff]  }
   0x8   :  { %460 = vmatpush3.bf16.msra.mxu0 %v507_v6  ;;  %v516_v15 = vld [vmem:[%s684_s1 + $0x98] sm:$0xff]   ;;  %v520_v19 = vld [vmem:[%s684_s1 + $0xa0] sm:$0xff]   ;;  %v524_v23 = vld [vmem:[%s684_s1 + $0xa8] sm:$0xff]  }
   0x9   :  { %482 = vmatpush3.bf16.msra.mxu1 %v508_v7  ;;  %461 = vmatprep.subr.bf16.mxu0 %v509_v8  ;;  %v525_v24 = vld [vmem:[%s684_s1 + $0x70] sm:$0xff]   ;;  %v529_v28 = vld [vmem:[%s684_s1 + $0x78] sm:$0xff]   ;;  %v451_v45 = vld [vmem:[%s686_s2] ss:$0 sm:$0xff] }
   0xa   :  { %483 = vmatprep.subr.bf16.mxu1 %v510_v9  ;;  %v526_v25 = vld [vmem:[%s684_s1 + $0xf0] sm:$0xff]   ;;  %v530_v29 = vld [vmem:[%s684_s1 + $0xf8] sm:$0xff]   ;;  %v452_v50 = vld [vmem:[%s687_s3] ss:$0 sm:$0xff] }
   0xb   :  { %v527_v26 = vld [vmem:[%s684_s1 + $0x30] sm:$0xff]   ;;  %v531_v30 = vld [vmem:[%s684_s1 + $0x38] sm:$0xff]  }
   0xc   :  { %462 = vmatpush3.bf16.msra.mxu0 %v511_v10  ;;  %v528_v27 = vld [vmem:[%s684_s1 + $0xb0] sm:$0xff]   ;;  %v532_v31 = vld [vmem:[%s684_s1 + $0xb8] sm:$0xff]  }
   0xd   :  { %484 = vmatpush3.bf16.msra.mxu1 %v512_v11  ;;  %463 = vmatprep.subr.bf16.mxu0 %v513_v12  ;;  %v533_v32 = vld [vmem:[%s685_s0] ss:$16 sps:$4 sm:$0xff]   ;;  %v535_v33 = vld [vmem:[%s685_s0 + $0x4] ss:$16 sps:$4 sm:$0xff]   ;;  %v536_v34 = vld [vmem:[%s685_s0 + $0x8] ss:$16 sps:$4 sm:$0xff]  }
   0xe   :  { %485 = vmatprep.subr.bf16.mxu1 %v514_v13  ;;  %v538_v35 = vld [vmem:[%s685_s0 + $0xc] ss:$16 sps:$4 sm:$0xff]   ;;  %330 = vmatprep.mubr.bf16.mxu0 %v535_v33 }
   0xf   :  { %371 = vmatprep.mubr.bf16.mxu1 %v538_v35 }
  0x10   :  { %464 = vmatpush3.bf16.msra.mxu0 %v515_v14 }
  0x11   :  { %486 = vmatpush3.bf16.msra.mxu1 %v516_v15  ;;  %465 = vmatprep.subr.bf16.mxu0 %v517_v16 }
  0x12   :  { %487 = vmatprep.subr.bf16.mxu1 %v518_v17 }
  0x14   :  { %466 = vmatpush3.bf16.msra.mxu0 %v519_v18 }
  0x15   :  { %488 = vmatpush3.bf16.msra.mxu1 %v520_v19  ;;  %467 = vmatprep.subr.bf16.mxu0 %v521_v20 }
  0x16   :  { %489 = vmatprep.subr.bf16.mxu1 %v522_v21 }
  0x18   :  { %468 = vmatpush3.bf16.msra.mxu0 %v523_v22 }
  0x19   :  { %490 = vmatpush3.bf16.msra.mxu1 %v524_v23  ;;  %469 = vmatprep.subr.bf16.mxu0 %v525_v24 }
  0x1a   :  { %491 = vmatprep.subr.bf16.mxu1 %v526_v25 }
  0x1c   :  { %470 = vmatpush3.bf16.msra.mxu0 %v527_v26 }
  0x1d   :  { %492 = vmatpush3.bf16.msra.mxu1 %v528_v27  ;;  %471 = vmatprep.subr.bf16.mxu0 %v529_v28 }
  0x1e   :  { %493 = vmatprep.subr.bf16.mxu1 %v530_v29 }
  0x20   :  { %472 = vmatpush3.bf16.msra.mxu0 %v531_v30 }
  0x21   :  { %494 = vmatpush3.bf16.msra.mxu1 %v532_v31 }
  0x23   :  { %331 = vmatmul.mubr.bf16.vlgmr.msra.gmra.mrb[0].mxu0 %v533_v32 }
  0x24   :  { %372 = vmatmul.mubr.bf16.vlgmr.msra.gmra.mrb[0].mxu1 %v536_v34 }
  0xf6   :  { %v473_v36 = vpop.f32.mrb[0].mxu0 }
  0xf7   :  { %v495_v37 = vpop.f32.mrb[0].mxu1  ;;  %v474_v38 = vpop.f32.mrb[1].mxu0 }
  0xf8   :  { %v475_v39 = vadd.f32 %v474_v38, %v473_v36  ;;  %v496_v40 = vpop.f32.mrb[1].mxu1  ;;  %v476_v41 = vpop.f32.mrb[2].mxu0 }
  0xf9   :  { %v497_v42 = vadd.f32 %v496_v40, %v495_v37  ;;  %v498_v43 = vpop.f32.mrb[2].mxu1  ;;  %v477_v44 = vpop.f32.mrb[3].mxu0 }
  0xfa   :  { %v478_v46 = vadd.f32 %v477_v44, %v476_v41  ;;  %v499_v47 = vpop.f32.mrb[3].mxu1 }
  0xfb   :  { %v374_v48 = vadd.f32 %v497_v42, %v475_v39  ;;  %v500_v49 = vadd.f32 %v499_v47, %v498_v43 }
  0xfd   :  { %v387_v51 = vmul.f32 %v451_v45, %v374_v48  ;;  %v377_v52 = vadd.f32 %v500_v49, %v478_v46 }
  0xff   :  { %v396_v53 = vadd.f32 %v452_v50, %v387_v51  ;;  %v388_v54 = vmul.f32 %v451_v45, %v377_v52 }
 0x101   :  { %v398_v55 = vmax.f32 %v396_v53, 0.0  ;;  %v397_v56 = vadd.f32 %v452_v50, %v388_v54 }
 0x103   :  { %v455_v57 = vpack.c.bf16 %v398_v55, %v398_v55  ;;  %v399_v58 = vmax.f32 %v397_v56, 0.0 }
 0x105   :  { %409 = vst.msk [vmem:[%s688_s4] sm:$0xf] %vm408_vm0, %v455_v57  ;;  %v456_v59 = vpack.c.bf16 %v399_v58, %v399_v58 }
 0x107   :  { %410 = vst.msk [vmem:[%s688_s4 + $0x4] sm:$0xf] %vm408_vm0, %v456_v59 }

// kernel: feature_extractor_forward.11
= control target key start
LH: loop header
LB: loop body
LE: loop exit
PB: predicated region body
PF: predicated region fallthrough
CT: control target
= control target key end

     0   :  { %s7646_s25 = smov 0   ;;  %s7648_s26 = smov 0   ;;  %s9261_s0 = inlined_call_operand.vmem [shape: bf16[2,32], index: 0, kind: input, shape index: {}]   ;;  %s9262_s1 = inlined_call_operand.vmem [shape: bf16[32,4096], index: 1, kind: input, shape index: {}]   ;;  %s9263_s2 = inlined_call_operand.vmem [shape: f32[1,4096], index: 2, kind: input, shape index: {}]   ;;  %s9264_s3 = inlined_call_operand.vmem [shape: bf16[4096,256], index: 3, kind: input, shape index: {}]   ;;  %s9265_s4 = inlined_call_operand.vmem [shape: f32[1,256], index: 4, kind: input, shape index: {}]   ;;  %s9266_s5 = inlined_call_operand.vmem [shape: bf16[256,4], index: 5, kind: input, shape index: {}]   ;;  %s9267_s6 = inlined_call_operand.vmem [shape: f32[1,4], index: 6, kind: input, shape index: {}]   ;;  %s9268_s7 = inlined_call_operand.vmem [shape: f32[4,1,256], index: 7, kind: input, shape index: {}]   ;;  %s9269_s8 = inlined_call_operand.vmem [shape: f32[4,1,256], index: 8, kind: input, shape index: {}]   ;;  %s9270_s9 = inlined_call_operand.vmem [shape: bf16[4,256,512], index: 9, kind: input, shape index: {}]   ;;  %s9271_s10 = inlined_call_operand.vmem [shape: f32[4,1,512], index: 10, kind: input, shape index: {}]   ;;  %s9272_s11 = inlined_call_operand.vmem [shape: bf16[4,512,32], index: 11, kind: input, shape index: {}]   ;;  %s9273_s12 = inlined_call_operand.vmem [shape: f32[4,1,32], index: 12, kind: input, shape index: {}]   ;;  %s9274_s13 = inlined_call_operand.vmem [shape: f32[2,128], index: 13, kind: output, shape index: {}]  }
   0x1   :  { %s7650_s27 = smov 0  }
   0x2 LB: > { %s7662_s28 = sadd.s32 4294967295, %s7564_s27   ;;  %s7665_s29 = sadd.s32 1, %s7564_s27   ;;  %s7564_s27 = sphi %s7650_s27, %s9277_s27   ;;  %s7560_s26 = sphi %s7648_s26, %s9276_s26   ;;  %s7556_s25 = sphi %s7646_s25, %s9275_s25  }
   0x3   : > { %s48_s30 = ssub.s32 %s7564_s27, %s7665_s29  ;;  %s51_s14 = sadd.s32 1, %s7560_s26 }
   0x4   : > { %p49_p0 = scmp.eq.s32.totalorder %s48_s30, 0  ;;  %p58_p1 = scmp.ne.s32.totalorder %s7560_s26, %s7556_s25 }
   0x5   : > { %p59_p2 = scmp.eq.s32.totalorder %s7564_s27, 0  ;;  %p5610_p4 = scmp.ge.s32.totalorder %s7564_s27, 4 }
   0x6   : > { %s7674_s15 = scalar_select %p49_p0, %s7560_s26, %s51_s14  }
   0x7   : > { %p60_p3 = por %p59_p2, %p58_p1  ;;  %376 = sbr.rel (%p5610_p4) target bundleno = 26 (0x1a), region = 56 }
   0xe   : > { %379 = sbr.rel (!%p60_p3) target bundleno = 26 (0x1a), region = 60  ;;  %s381_s16 = sand.u32 (%p60_p3), 1, %s7560_s26  }
   0xf   : > { %s6573_s17 = sshll.u32 (%p60_p3), %s7564_s27, 5  ;;  %s5611_s18 = sshll.u32 (%p60_p3), %s381_s16, 7 }
  0x10   : > { %s7682_s21 = scalar_lea.vmem (%p60_p3), %s9262_s1, %s6573_s17  ;;  %s383_s22 = scalar_lea.vmem (%p60_p3), [#allocation3], %s5611_s18 }
  0x11   : > { %v399_v0 = vld [vmem:[%s7682_s21] sm:$0xff] (%p60_p3)  ;;  %v401_v1 = vld [vmem:[%s7682_s21 + $0x8] sm:$0xff] (%p60_p3)  ;;  %v403_v2 = vld [vmem:[%s7682_s21 + $0x10] sm:$0xff] (%p60_p3) }
  0x12   : > { %400 = vst [vmem:[%s383_s22] sm:$0xff] (%p60_p3), %v399_v0  ;;  %402 = vst [vmem:[%s383_s22 + $0x8] sm:$0xff] (%p60_p3), %v401_v1  ;;  %v405_v3 = vld [vmem:[%s7682_s21 + $0x18] sm:$0xff] (%p60_p3)  ;;  %v407_v4 = vld [vmem:[%s7682_s21 + $0x80] sm:$0xff] (%p60_p3) }
  0x13   : > { %404 = vst [vmem:[%s383_s22 + $0x10] sm:$0xff] (%p60_p3), %v403_v2  ;;  %v409_v5 = vld [vmem:[%s7682_s21 + $0x88] sm:$0xff] (%p60_p3)  ;;  %406 = vst [vmem:[%s383_s22 + $0x18] sm:$0xff] (%p60_p3), %v405_v3  ;;  %v411_v6 = vld [vmem:[%s7682_s21 + $0x90] sm:$0xff] (%p60_p3) }
  0x14   : > { %408 = vst [vmem:[%s383_s22 + $0x20] sm:$0xff] (%p60_p3), %v407_v4  ;;  %410 = vst [vmem:[%s383_s22 + $0x28] sm:$0xff] (%p60_p3), %v409_v5  ;;  %v413_v7 = vld [vmem:[%s7682_s21 + $0x98] sm:$0xff] (%p60_p3)  ;;  %v415_v8 = vld [vmem:[%s7682_s21 + $0x100] sm:$0xff] (%p60_p3) }
  0x15   : > { %412 = vst [vmem:[%s383_s22 + $0x30] sm:$0xff] %v411_v6  ;;  %414 = vst [vmem:[%s383_s22 + $0x38] sm:$0xff] %v413_v7  ;;  %v417_v9 = vld [vmem:[%s7682_s21 + $0x108] sm:$0xff]  ;;  %v419_v10 = vld [vmem:[%s7682_s21 + $0x110] sm:$0xff] }
  0x16   : > { %416 = vst [vmem:[%s383_s22 + $0x40] sm:$0xff] %v415_v8  ;;  %v421_v11 = vld [vmem:[%s7682_s21 + $0x118] sm:$0xff]  ;;  %418 = vst [vmem:[%s383_s22 + $0x48] sm:$0xff] %v417_v9  ;;  %v423_v12 = vld [vmem:[%s7682_s21 + $0x180] sm:$0xff] }
  0x17   : > { %420 = vst [vmem:[%s383_s22 + $0x50] sm:$0xff] %v419_v10  ;;  %422 = vst [vmem:[%s383_s22 + $0x58] sm:$0xff] %v421_v11  ;;  %v425_v13 = vld [vmem:[%s7682_s21 + $0x188] sm:$0xff]  ;;  %v427_v14 = vld [vmem:[%s7682_s21 + $0x190] sm:$0xff] }
  0x18   : > { %424 = vst [vmem:[%s383_s22 + $0x60] sm:$0xff] %v423_v12  ;;  %426 = vst [vmem:[%s383_s22 + $0x68] sm:$0xff] %v425_v13  ;;  %v429_v15 = vld [vmem:[%s7682_s21 + $0x198] sm:$0xff] }
  0x19   : > { %428 = vst [vmem:[%s383_s22 + $0x70] sm:$0xff] %v427_v14  ;;  %430 = vst [vmem:[%s383_s22 + $0x78] sm:$0xff] %v429_v15 }
  0x1a PF: > { %p5614_p5 = scmp.ge.s32.totalorder %s7564_s27, 1  ;;  %p453_p6 = scmp.lt.s32.totalorder %s7564_s27, 5 }
  0x1c   : > { %p454_p7 = pnand %p5614_p5, %p453_p6 }
  0x1d   : > { %s460_s23 = sand.u32 (!%p454_p7), 1, %s7556_s25   ;;  %s5616_s24 = sshll.u32 (!%p454_p7), %s7662_s28, 3 }
  0x1e   : > { %457 = sbr.rel (%p454_p7) target bundleno = 2353 (0x931), region = 91  ;;  %s5615_s30 = sshll.u32 (!%p454_p7), %s460_s23, 7 }
  0x1f   : > { %p510_p8 = scmp.lt.s32.totalorder (!%p454_p7), %s5616_s24, 31  ;;  %s5617_s14 = sshll.u32 (!%p454_p7), %s7662_s28, 7 }
  0x20   : > { %p515_p9 = scmp.lt.s32.totalorder (!%p454_p7), %s5617_s14, 511  ;;  %s7716_s25 = scalar_lea.vmem (!%p454_p7), [#allocation3], %s5615_s30 }
  0x21   : > { %p5620_p10 = scmp.ne.s32.totalorder (!%p454_p7), %s7662_s28, 0 }
  0x25   : > { %s9279_s24 = smov (!%p510_p8, %s5616_s24), 31  ;;  %s9281_s14 = smov (!%p515_p9, %s5617_s14), 511 }
  0x26   : > { %s512_s18 = scalar_lea.vmem %s9263_s2, %s9279_s24  ;;  %s6574_s27 = sshll.u32 %s9281_s14, 3  ;;  %v7566_v16 = vmov (!%p5620_p10), 0.0  }
  0x27   : > { %s7714_s21 = scalar_lea.vmem %s9264_s3, %s6574_s27  ;;  %525 = sbr.rel (%p5620_p10) target bundleno = 46 (0x2e), region = 99  ;;  %526 = vst [vmem:[#allocation2] sm:$0xf] (!%p5620_p10), %v7566_v16 }
  0x2e PF: > { %v528_v17 = vld [vmem:[%s7716_s25] sm:$0xff]  ;;  %v7567_v23 = vmov 0   ;;  %v530_v25 = vld [vmem:[%s7716_s25 + $0x10] sm:$0xff]  ;;  %v529_v27 = vld [vmem:[%s7716_s25 + $0x8] sm:$0xff]  ;;  %vm666_vm0 = vcmask 261120   ;;  %p5769_p11 = scmp.ne.s32.totalorder %s7662_s28, 3 }
  0x2f   : > { %v532_v18 = vld [vmem:[%s7716_s25 + $0x20] sm:$0xff]  ;;  %702 = vmatprep.mubr.bf16.mxu0 %v7567_v23  ;;  %743 = vmatprep.mubr.bf16.mxu1 %v7567_v23  ;;  %v534_v26 = vld [vmem:[%s7716_s25 + $0x30] sm:$0xff]  ;;  %v533_v28 = vld [vmem:[%s7716_s25 + $0x28] sm:$0xff]  ;;  %vm2887_vm1 = vcmask (!%p5769_p11), 254976   ;;  %s7573_s28 = smov (!%p5769_p11), 32   ;;  %vm3775_vm2 = vcmask (!%p5769_p11), 517376  }
  0x30   : > { %v536_v19 = vld [vmem:[%s7716_s25 + $0x40] sm:$0xff]  ;;  %v5622_v20 = vcombine.high %v528_v17, %v532_v18  ;;  %v5621_v21 = vcombine.low %v528_v17, %v532_v18  ;;  %v537_v29 = vld [vmem:[%s7716_s25 + $0x48] sm:$0xff]  ;;  %v5624_v31 = vcombine.high %v529_v27, %v533_v28  ;;  %v5623_v32 = vcombine.low %v529_v27, %v533_v28  ;;  %v538_v35 = vld [vmem:[%s7716_s25 + $0x50] sm:$0xff]  ;;  %s7574_s23 = smov (!%p5769_p11), 64   ;;  %s7575_s27 = smov (!%p5769_p11), 96  }
  0x31   : > { %v540_v22 = vld [vmem:[%s7716_s25 + $0x60] sm:$0xff]  ;;  %v541_v33 = vld [vmem:[%s7716_s25 + $0x68] sm:$0xff]  ;;  %v5626_v34 = vcombine.high %v530_v25, %v534_v26  ;;  %v542_v36 = vld [vmem:[%s7716_s25 + $0x70] sm:$0xff]  ;;  %v5625_v42 = vcombine.low %v530_v25, %v534_v26  ;;  %vm4663_vm3 = vcmask (!%p5769_p11), 779776   ;;  %vm5551_vm4 = vcmask (!%p5769_p11), 1042176  }
  0x32   : > { %v5630_v24 = vcombine.high %v536_v19, %v540_v22  ;;  %670 = vmatprep.subr.bf16.mxu0 %v5622_v20  ;;  %v5629_v30 = vcombine.low %v536_v19, %v540_v22  ;;  %v5632_v37 = vcombine.high %v537_v29, %v541_v33  ;;  %711 = vmatprep.subr.bf16.mxu1 %v5624_v31  ;;  %v531_v38 = vld [vmem:[%s7716_s25 + $0x18] sm:$0xff]  ;;  %v6828_v50 = vld [vmem:[%s7714_s21 + $0x204] ss:$8 sps:$4 sm:$0xff]   ;;  %v6832_v57 = vld [vmem:[%s7714_s21 + $0x210] ss:$8 sps:$4 sm:$0xff]  }
  0x33   : > { %671 = vmatpush1.bf16.msra.mxu0 %v5621_v21  ;;  %v535_v39 = vld [vmem:[%s7716_s25 + $0x38] sm:$0xff]  ;;  %712 = vmatpush1.bf16.msra.mxu1 %v5623_v32  ;;  %v5631_v40 = vcombine.low %v537_v29, %v541_v33  ;;  %v5634_v43 = vcombine.high %v538_v35, %v542_v36  ;;  %v5633_v48 = vcombine.low %v538_v35, %v542_v36  ;;  %v6819_v52 = vld [vmem:[%s7714_s21 + $0x4] ss:$8 sps:$4 sm:$0xff]   ;;  %v6820_v59 = vld [vmem:[%s7714_s21 + $0x10] ss:$8 sps:$4 sm:$0xff]  }
  0x34   : > { %672 = vmatprep.subr.bf16.mxu0 %v5630_v24  ;;  %v527_v41 = vld [vmem:[%s9261_s0] sm:$0x1]  ;;  %713 = vmatprep.subr.bf16.mxu1 %v5632_v37  ;;  %v5628_v44 = vcombine.high %v531_v38, %v535_v39  ;;  %v5627_v47 = vcombine.low %v531_v38, %v535_v39  ;;  %v6834_v54 = vld [vmem:[%s7714_s21 + $0x214] ss:$8 sps:$4 sm:$0xff]   ;;  %v6840_v58 = vld [vmem:[%s7714_s21 + $0x224] ss:$8 sps:$4 sm:$0xff]  }
  0x35   : > { %v539_v45 = vld [vmem:[%s7716_s25 + $0x58] sm:$0xff]  ;;  %v6825_v60 = vld [vmem:[%s7714_s21 + $0x24] ss:$8 sps:$4 sm:$0xff]   ;;  %v6844_v1 = vld [vmem:[%s7714_s21 + $0x230] ss:$8 sps:$4 sm:$0xff]  }
  0x36   : > { %v543_v46 = vld [vmem:[%s7716_s25 + $0x78] sm:$0xff]  ;;  %v6852_v2 = vld [vmem:[%s7714_s21 + $0x244] ss:$8 sps:$4 sm:$0xff]   ;;  %v6829_v3 = vld [vmem:[%s7714_s21 + $0x30] ss:$8 sps:$4 sm:$0xff]  }
  0x37   : > { %673 = vmatpush1.bf16.msra.mxu0 %v5629_v30  ;;  %714 = vmatpush1.bf16.msra.mxu1 %v5631_v40  ;;  %v5636_v49 = vcombine.high %v539_v45, %v543_v46  ;;  %v5635_v51 = vcombine.low %v539_v45, %v543_v46  ;;  %v6826_v53 = vld [vmem:[%s7714_s21 + $0x200] ss:$8 sps:$4 sm:$0xff]   ;;  %v6822_v56 = vld [vmem:[%s7714_s21 + $0x14] ss:$8 sps:$4 sm:$0xff]   ;;  %v6837_v4 = vld [vmem:[%s7714_s21 + $0x44] ss:$8 sps:$4 sm:$0xff]  }
  0x38   : > { %752 = vmatprep.subr.bf16.mxu0 %v5626_v34  ;;  %793 = vmatprep.subr.bf16.mxu1 %v5628_v44  ;;  %v6817_v55 = vld [vmem:[%s7714_s21] ss:$8 sps:$4 sm:$0xff]   ;;  %v6846_v62 = vld [vmem:[%s7714_s21 + $0x234] ss:$8 sps:$4 sm:$0xff]   ;;  %v6856_v9 = vld [vmem:[%s7714_s21 + $0x250] ss:$8 sps:$4 sm:$0xff]  }
  0x39   : > { %v6838_v61 = vld [vmem:[%s7714_s21 + $0x220] ss:$8 sps:$4 sm:$0xff]   ;;  %v6831_v0 = vld [vmem:[%s7714_s21 + $0x34] ss:$8 sps:$4 sm:$0xff]   ;;  %v6864_v10 = vld [vmem:[%s7714_s21 + $0x264] ss:$8 sps:$4 sm:$0xff]  }
  0x3a   : > { %5637 = vmatmul.mubr.msk.bf16.vlgmr.msra.gmra.mrb[0].mxu0 %vm666_vm0, %v527_v41  ;;  %5638 = vmatmul.mubr.msk.bf16.vlgmr.msra.gmra.mrb[0].mxu1 %vm666_vm0, %v527_v41  ;;  %v6823_v63 = vld [vmem:[%s7714_s21 + $0x20] ss:$8 sps:$4 sm:$0xff]   ;;  %v6858_v6 = vld [vmem:[%s7714_s21 + $0x254] ss:$8 sps:$4 sm:$0xff]   ;;  %v6841_v11 = vld [vmem:[%s7714_s21 + $0x50] ss:$8 sps:$4 sm:$0xff]  }
  0x3b   : > { %753 = vmatpush1.bf16.msra.mxu0 %v5625_v42  ;;  %784 = vmatprep.mubr.bf16.mxu0 %v7567_v23  ;;  %v6850_v5 = vld [vmem:[%s7714_s21 + $0x240] ss:$8 sps:$4 sm:$0xff]   ;;  %v6843_v8 = vld [vmem:[%s7714_s21 + $0x54] ss:$8 sps:$4 sm:$0xff]   ;;  %v6849_v12 = vld [vmem:[%s7714_s21 + $0x64] ss:$8 sps:$4 sm:$0xff]  }
  0x3c   : > { %754 = vmatprep.subr.bf16.mxu0 %v5634_v43  ;;  %794 = vmatpush1.bf16.msra.mxu1 %v5627_v47  ;;  %v6835_v7 = vld [vmem:[%s7714_s21 + $0x40] ss:$8 sps:$4 sm:$0xff]   ;;  %v6870_v14 = vld [vmem:[%s7714_s21 + $0x274] ss:$8 sps:$4 sm:$0xff]   ;;  %v6868_v17 = vld [vmem:[%s7714_s21 + $0x270] ss:$8 sps:$4 sm:$0xff]  }
  0x3d   : > { %825 = vmatprep.mubr.bf16.mxu1 %v7567_v23  ;;  %795 = vmatprep.subr.bf16.mxu1 %v5636_v49  ;;  %v6862_v13 = vld [vmem:[%s7714_s21 + $0x260] ss:$8 sps:$4 sm:$0xff]   ;;  %v6855_v16 = vld [vmem:[%s7714_s21 + $0x74] ss:$8 sps:$4 sm:$0xff]   ;;  %v6876_v18 = vld [vmem:[%s7714_s21 + $0x284] ss:$8 sps:$4 sm:$0xff]  }
  0x3e   : > { %v6847_v15 = vld [vmem:[%s7714_s21 + $0x60] ss:$8 sps:$4 sm:$0xff]   ;;  %v6853_v19 = vld [vmem:[%s7714_s21 + $0x70] ss:$8 sps:$4 sm:$0xff]   ;;  %v6861_v20 = vld [vmem:[%s7714_s21 + $0x84] ss:$8 sps:$4 sm:$0xff]  }
  0x3f   : > { %755 = vmatpush1.bf16.msra.mxu0 %v5633_v48  ;;  %v6874_v21 = vld [vmem:[%s7714_s21 + $0x280] ss:$8 sps:$4 sm:$0xff]   ;;  %v6882_v22 = vld [vmem:[%s7714_s21 + $0x294] ss:$8 sps:$4 sm:$0xff]   ;;  %v6880_v25 = vld [vmem:[%s7714_s21 + $0x290] ss:$8 sps:$4 sm:$0xff]  }
  0x40   : > { %1701 = vmatprep.subr.bf16.mxu0 %v6828_v50  ;;  %796 = vmatpush1.bf16.msra.mxu1 %v5635_v51  ;;  %v6859_v23 = vld [vmem:[%s7714_s21 + $0x80] ss:$8 sps:$4 sm:$0xff]   ;;  %v6867_v24 = vld [vmem:[%s7714_s21 + $0x94] ss:$8 sps:$4 sm:$0xff]   ;;  %v6888_v26 = vld [vmem:[%s7714_s21 + $0x2a4] ss:$8 sps:$4 sm:$0xff]  }
  0x41   : > { %1619 = vmatprep.subr.bf16.mxu1 %v6819_v52  ;;  %v6865_v27 = vld [vmem:[%s7714_s21 + $0x90] ss:$8 sps:$4 sm:$0xff]   ;;  %v6873_v28 = vld [vmem:[%s7714_s21 + $0xa4] ss:$8 sps:$4 sm:$0xff]   ;;  %v6886_v29 = vld [vmem:[%s7714_s21 + $0x2a0] ss:$8 sps:$4 sm:$0xff]  }
  0x42   : > { %5639 = vmatmul.mubr.msk.bf16.vlgmr.msra.gmra.mrb[4].mxu0 %vm666_vm0, %v527_v41  ;;  %v6894_v30 = vld [vmem:[%s7714_s21 + $0x2b4] ss:$8 sps:$4 sm:$0xff]   ;;  %v6871_v31 = vld [vmem:[%s7714_s21 + $0xa0] ss:$8 sps:$4 sm:$0xff]   ;;  %v6892_v33 = vld [vmem:[%s7714_s21 + $0x2b0] ss:$8 sps:$4 sm:$0xff]  }
  0x43   : > { %1702 = vmatpush1.bf16.msra.mxu0 %v6826_v53  ;;  %5640 = vmatmul.mubr.msk.bf16.vlgmr.msra.gmra.mrb[4].mxu1 %vm666_vm0, %v527_v41  ;;  %v6879_v32 = vld [vmem:[%s7714_s21 + $0xb4] ss:$8 sps:$4 sm:$0xff]   ;;  %v6877_v34 = vld [vmem:[%s7714_s21 + $0xb0] ss:$8 sps:$4 sm:$0xff]   ;;  %v6885_v35 = vld [vmem:[%s7714_s21 + $0xc4] ss:$8 sps:$4 sm:$0xff]   ;;  %v546_v53 = vlaneseq }
  0x44   : > { %1703 = vmatprep.subr.bf16.mxu0 %v6834_v54  ;;  %1620 = vmatpush1.bf16.msra.mxu1 %v6817_v55  ;;  %v6883_v36 = vld [vmem:[%s7714_s21 + $0xc0] ss:$8 sps:$4 sm:$0xff]   ;;  %v6891_v37 = vld [vmem:[%s7714_s21 + $0xd4] ss:$8 sps:$4 sm:$0xff]   ;;  %v6889_v38 = vld [vmem:[%s7714_s21 + $0xd0] ss:$8 sps:$4 sm:$0xff]  }
  0x45   : > { %1621 = vmatprep.subr.bf16.mxu1 %v6822_v56  ;;  %v6897_v39 = vld [vmem:[%s7714_s21 + $0xe4] ss:$8 sps:$4 sm:$0xff]   ;;  %v6895_v41 = vld [vmem:[%s7714_s21 + $0xe0] ss:$8 sps:$4 sm:$0xff]   ;;  %v6903_v43 = vld [vmem:[%s7714_s21 + $0xf4] ss:$8 sps:$4 sm:$0xff]  }
  0x46   : > { %v6900_v40 = vld [vmem:[%s7714_s21 + $0x2c4] ss:$8 sps:$4 sm:$0xff]   ;;  %v6898_v42 = vld [vmem:[%s7714_s21 + $0x2c0] ss:$8 sps:$4 sm:$0xff]   ;;  %v6906_v44 = vld [vmem:[%s7714_s21 + $0x2d4] ss:$8 sps:$4 sm:$0xff]  }
  0x47   : > { %1704 = vmatpush1.bf16.msra.mxu0 %v6832_v57  ;;  %v6901_v45 = vld [vmem:[%s7714_s21 + $0xf0] ss:$8 sps:$4 sm:$0xff]   ;;  %v6909_v47 = vld [vmem:[%s7714_s21 + $0x104] ss:$8 sps:$4 sm:$0xff]   ;;  %v6910_v49 = vld [vmem:[%s7714_s21 + $0x2e0] ss:$8 sps:$4 sm:$0xff]  }
  0x48   : > { %1705 = vmatprep.subr.bf16.mxu0 %v6840_v58  ;;  %1622 = vmatpush1.bf16.msra.mxu1 %v6820_v59  ;;  %v6904_v46 = vld [vmem:[%s7714_s21 + $0x2d0] ss:$8 sps:$4 sm:$0xff]   ;;  %v6912_v48 = vld [vmem:[%s7714_s21 + $0x2e4] ss:$8 sps:$4 sm:$0xff]   ;;  %v6918_v50 = vld [vmem:[%s7714_s21 + $0x2f4] ss:$8 sps:$4 sm:$0xff]  }
  0x49   : > { %1623 = vmatprep.subr.bf16.mxu1 %v6825_v60  ;;  %v6916_v51 = vld [vmem:[%s7714_s21 + $0x2f0] ss:$8 sps:$4 sm:$0xff]   ;;  %v6924_v52 = vld [vmem:[%s7714_s21 + $0x304] ss:$8 sps:$4 sm:$0xff]   ;;  %v7808_v54 = vshrl.u32 %v546_v53, 7 }
  0x4a   : > { %v7818_v56 = vld [vmem:[%s512_s18] sm:$0xff]  ;;  %v6942_v53 = vld [vmem:[%s7714_s21 + $0x334] ss:$8 sps:$4 sm:$0xff]  }
  0x4b   : > { %1706 = vmatpush1.bf16.msra.mxu0 %v6838_v61  ;;  %v7811_v55 = vsub.s32 0, %v7808_v54  ;;  %v7821_v57 = vsub.s32 1, %v7808_v54  ;;  %v7826_v59 = vsub.s32 3, %v7808_v54 }
  0x4c   : > { %1707 = vmatprep.subr.bf16.mxu0 %v6846_v62  ;;  %1624 = vmatpush1.bf16.msra.mxu1 %v6823_v63 }
  0x4d   : > { %1625 = vmatprep.subr.bf16.mxu1 %v6831_v0  ;;  %v549_v58 = vrot.slane %v7818_v56, %v7811_v55  ;;  %v553_v60 = vrot.slane %v7818_v56, %v7821_v57  ;;  %v564_v0 = vsub.s32 4, %v7808_v54 }
  0x4f   : > { %1708 = vmatpush1.bf16.msra.mxu0 %v6844_v1  ;;  %v561_v1 = vrot.slane %v7818_v56, %v7826_v59 }
  0x50   : > { %1709 = vmatprep.subr.bf16.mxu0 %v6852_v2  ;;  %1626 = vmatpush1.bf16.msra.mxu1 %v6829_v3 }
  0x51   : > { %1627 = vmatprep.subr.bf16.mxu1 %v6837_v4  ;;  %v568_v4 = vsub.s32 5, %v7808_v54 }
  0x53   : > { %1710 = vmatpush1.bf16.msra.mxu0 %v6850_v5 }
  0x54   : > { %1711 = vmatprep.subr.bf16.mxu0 %v6858_v6  ;;  %1628 = vmatpush1.bf16.msra.mxu1 %v6835_v7 }
  0x55   : > { %1629 = vmatprep.subr.bf16.mxu1 %v6843_v8 }
  0x57   : > { %1712 = vmatpush1.bf16.msra.mxu0 %v6856_v9 }
  0x58   : > { %1713 = vmatprep.subr.bf16.mxu0 %v6864_v10  ;;  %1630 = vmatpush1.bf16.msra.mxu1 %v6841_v11  ;;  %v565_v10 = vrot.slane %v7818_v56, %v564_v0  ;;  %v6946_v0 = vld [vmem:[%s7714_s21 + $0x340] ss:$8 sps:$4 sm:$0xff]  }
  0x59   : > { %1631 = vmatprep.subr.bf16.mxu1 %v6849_v12 }
  0x5b   : > { %1714 = vmatpush1.bf16.msra.mxu0 %v6862_v13  ;;  %v576_v13 = vsub.s32 7, %v7808_v54 }
  0x5c   : > { %1715 = vmatprep.subr.bf16.mxu0 %v6870_v14  ;;  %1632 = vmatpush1.bf16.msra.mxu1 %v6847_v15  ;;  %v6907_v15 = vld [vmem:[%s7714_s21 + $0x100] ss:$8 sps:$4 sm:$0xff]  }
  0x5d   : > { %1633 = vmatprep.subr.bf16.mxu1 %v6855_v16  ;;  %v569_v16 = vrot.slane %v7818_v56, %v568_v4  ;;  %v6952_v4 = vld [vmem:[%s7714_s21 + $0x350] ss:$8 sps:$4 sm:$0xff]  }
  0x5f   : > { %1716 = vmatpush1.bf16.msra.mxu0 %v6868_v17 }
  0x60   : > { %1717 = vmatprep.subr.bf16.mxu0 %v6876_v18  ;;  %1634 = vmatpush1.bf16.msra.mxu1 %v6853_v19  ;;  %v6915_v19 = vld [vmem:[%s7714_s21 + $0x114] ss:$8 sps:$4 sm:$0xff]  }
  0x61   : > { %1635 = vmatprep.subr.bf16.mxu1 %v6861_v20 }
  0x63   : > { %1718 = vmatpush1.bf16.msra.mxu0 %v6874_v21 }
  0x64   : > { %1719 = vmatprep.subr.bf16.mxu0 %v6882_v22  ;;  %1636 = vmatpush1.bf16.msra.mxu1 %v6859_v23 }
  0x65   : > { %1637 = vmatprep.subr.bf16.mxu1 %v6867_v24 }
  0x67   : > { %1720 = vmatpush1.bf16.msra.mxu0 %v6880_v25  ;;  %v577_v25 = vrot.slane %v7818_v56, %v576_v13  ;;  %v6964_v13 = vld [vmem:[%s7714_s21 + $0x370] ss:$8 sps:$4 sm:$0xff]  }
  0x68   : > { %1721 = vmatprep.subr.bf16.mxu0 %v6888_v26  ;;  %1638 = vmatpush1.bf16.msra.mxu1 %v6865_v27 }
  0x69   : > { %1639 = vmatprep.subr.bf16.mxu1 %v6873_v28  ;;  %v6913_v28 = vld [vmem:[%s7714_s21 + $0x110] ss:$8 sps:$4 sm:$0xff]  }
  0x6b   : > { %1722 = vmatpush1.bf16.msra.mxu0 %v6886_v29 }
  0x6c   : > { %1723 = vmatprep.subr.bf16.mxu0 %v6894_v30  ;;  %1640 = vmatpush1.bf16.msra.mxu1 %v6871_v31  ;;  %v6921_v31 = vld [vmem:[%s7714_s21 + $0x124] ss:$8 sps:$4 sm:$0xff]  }
  0x6d   : > { %1641 = vmatprep.subr.bf16.mxu1 %v6879_v32 }
  0x6f   : > { %1724 = vmatpush1.bf16.msra.mxu0 %v6892_v33 }
  0x70   : > { %1642 = vmatpush1.bf16.msra.mxu1 %v6877_v34  ;;  %1725 = vmatprep.subr.bf16.mxu0 %v6900_v40 }
  0x71   : > { %1643 = vmatprep.subr.bf16.mxu1 %v6885_v35 }
  0x73   : > { %1726 = vmatpush1.bf16.msra.mxu0 %v6898_v42  ;;  %v6927_v42 = vld [vmem:[%s7714_s21 + $0x134] ss:$8 sps:$4 sm:$0xff]  }
  0x74   : > { %1644 = vmatpush1.bf16.msra.mxu1 %v6883_v36  ;;  %1727 = vmatprep.subr.bf16.mxu0 %v6906_v44 }
  0x75   : > { %1645 = vmatprep.subr.bf16.mxu1 %v6891_v37 }
  0x77   : > { %1728 = vmatpush1.bf16.msra.mxu0 %v6904_v46  ;;  %v6925_v46 = vld [vmem:[%s7714_s21 + $0x130] ss:$8 sps:$4 sm:$0xff]  }
  0x78   : > { %1646 = vmatpush1.bf16.msra.mxu1 %v6889_v38  ;;  %1729 = vmatprep.subr.bf16.mxu0 %v6912_v48  ;;  %v6919_v38 = vld [vmem:[%s7714_s21 + $0x120] ss:$8 sps:$4 sm:$0xff]   ;;  %v6933_v48 = vld [vmem:[%s7714_s21 + $0x144] ss:$8 sps:$4 sm:$0xff]  }
  0x79   : > { %1647 = vmatprep.subr.bf16.mxu1 %v6897_v39  ;;  %v6922_v39 = vld [vmem:[%s7714_s21 + $0x300] ss:$8 sps:$4 sm:$0xff]  }
  0x7b   : > { %1730 = vmatpush1.bf16.msra.mxu0 %v6910_v49  ;;  %v6936_v49 = vld [vmem:[%s7714_s21 + $0x324] ss:$8 sps:$4 sm:$0xff]  }
  0x7c   : > { %1648 = vmatpush1.bf16.msra.mxu1 %v6895_v41  ;;  %1731 = vmatprep.subr.bf16.mxu0 %v6918_v50  ;;  %v6931_v50 = vld [vmem:[%s7714_s21 + $0x140] ss:$8 sps:$4 sm:$0xff]  }
  0x7d   : > { %1649 = vmatprep.subr.bf16.mxu1 %v6903_v43  ;;  %v6930_v43 = vld [vmem:[%s7714_s21 + $0x314] ss:$8 sps:$4 sm:$0xff]  }
  0x7f   : > { %1732 = vmatpush1.bf16.msra.mxu0 %v6916_v51  ;;  %v6934_v51 = vld [vmem:[%s7714_s21 + $0x320] ss:$8 sps:$4 sm:$0xff]  }
  0x80   : > { %1650 = vmatpush1.bf16.msra.mxu1 %v6901_v45  ;;  %1742 = vmatprep.subr.bf16.mxu0 %v6924_v52  ;;  %v6939_v52 = vld [vmem:[%s7714_s21 + $0x154] ss:$8 sps:$4 sm:$0xff]  }
  0x81   : > { %1660 = vmatprep.subr.bf16.mxu1 %v6909_v47  ;;  %v6928_v47 = vld [vmem:[%s7714_s21 + $0x310] ss:$8 sps:$4 sm:$0xff]  }
 0x10d   : > { %v704_v61 = vpop.f32.mrb[0].mxu0  ;;  %v7834_v7 = vpop.f32.mrb[0].mxu1 }
 0x10e   : > { %v705_v62 = vadd.f32 %v704_v61, %v549_v58  ;;  %v706_v63 = vpop.f32.mrb[1].mxu0  ;;  %v747_v9 = vpop.f32.mrb[1].mxu1  ;;  %v6937_v58 = vld [vmem:[%s7714_s21 + $0x150] ss:$8 sps:$4 sm:$0xff]   ;;  %v6945_v61 = vld [vmem:[%s7714_s21 + $0x164] ss:$8 sps:$4 sm:$0xff]  }
 0x10f   : > { %v707_v2 = vadd.f32 %v706_v63, %v553_v60  ;;  %v708_v3 = vpop.f32.mrb[2].mxu0  ;;  %v748_v11 = vadd.f32 %v747_v9, %v561_v1  ;;  %v749_v12 = vpop.f32.mrb[2].mxu1  ;;  %v6940_v60 = vld [vmem:[%s7714_s21 + $0x330] ss:$8 sps:$4 sm:$0xff]   ;;  %v6943_v63 = vld [vmem:[%s7714_s21 + $0x160] ss:$8 sps:$4 sm:$0xff]  }
 0x110   : > { %v834_v5 = vmax.f32 %v705_v62, 0.0  ;;  %v709_v6 = vpop.f32.mrb[3].mxu0  ;;  %v750_v17 = vpop.f32.mrb[3].mxu1  ;;  %v6948_v62 = vld [vmem:[%s7714_s21 + $0x344] ss:$8 sps:$4 sm:$0xff]  }
 0x111   : > { %v835_v8 = vmax.f32 %v707_v2, 0.0  ;;  %v837_v20 = vmax.f32 %v748_v11, 0.0  ;;  %v6951_v1 = vld [vmem:[%s7714_s21 + $0x174] ss:$8 sps:$4 sm:$0xff]   ;;  %v6949_v3 = vld [vmem:[%s7714_s21 + $0x170] ss:$8 sps:$4 sm:$0xff]  }
 0x112   : > { %v843_v18 = vpack.c.bf16 %v834_v5, %v834_v5  ;;  %v6954_v2 = vld [vmem:[%s7714_s21 + $0x354] ss:$8 sps:$4 sm:$0xff]   ;;  %v6957_v5 = vld [vmem:[%s7714_s21 + $0x184] ss:$8 sps:$4 sm:$0xff]   ;;  %v6958_v9 = vld [vmem:[%s7714_s21 + $0x360] ss:$8 sps:$4 sm:$0xff]  }
 0x113   : > { %v844_v14 = vpack.c.bf16 %v835_v8, %v835_v8  ;;  %v846_v24 = vpack.c.bf16 %v837_v20, %v837_v20  ;;  %v6960_v6 = vld [vmem:[%s7714_s21 + $0x364] ss:$8 sps:$4 sm:$0xff]   ;;  %v6955_v8 = vld [vmem:[%s7714_s21 + $0x180] ss:$8 sps:$4 sm:$0xff]   ;;  %v6966_v11 = vld [vmem:[%s7714_s21 + $0x374] ss:$8 sps:$4 sm:$0xff]  }
 0x114   : > { %v6961_v12 = vld [vmem:[%s7714_s21 + $0x190] ss:$8 sps:$4 sm:$0xff]   ;;  %v6970_v17 = vld [vmem:[%s7714_s21 + $0x380] ss:$8 sps:$4 sm:$0xff]  }
 0x115   : > { %v786_v21 = vpop.f32.mrb[4].mxu0  ;;  %1651 = vmatprep.mubr.bf16.mxu1 %v844_v14  ;;  %v6969_v14 = vld [vmem:[%s7714_s21 + $0x1a4] ss:$8 sps:$4 sm:$0xff]   ;;  %v6973_v20 = vld [vmem:[%s7714_s21 + $0x1b0] ss:$8 sps:$4 sm:$0xff]  }
 0x116   : > { %v787_v22 = vadd.f32 %v786_v21, %v565_v10  ;;  %v788_v23 = vpop.f32.mrb[5].mxu0  ;;  %1652 = vmatmul.mubr.bf16.vlgmr.msra.gmra.mrb[8].mxu1 %v843_v18  ;;  %v7844_v32 = vpop.f32.mrb[4].mxu1  ;;  %v6963_v10 = vld [vmem:[%s7714_s21 + $0x194] ss:$8 sps:$4 sm:$0xff]   ;;  %v6976_v21 = vld [vmem:[%s7714_s21 + $0x390] ss:$8 sps:$4 sm:$0xff]  }
 0x117   : > { %v789_v26 = vadd.f32 %v788_v23, %v569_v16  ;;  %1661 = vmatpush1.bf16.msra.mxu1 %v6907_v15  ;;  %v790_v27 = vpop.f32.mrb[6].mxu0  ;;  %1692 = vmatprep.mubr.bf16.mxu1 %v846_v24  ;;  %v829_v34 = vpop.f32.mrb[5].mxu1  ;;  %v6972_v15 = vld [vmem:[%s7714_s21 + $0x384] ss:$8 sps:$4 sm:$0xff]   ;;  %v6967_v16 = vld [vmem:[%s7714_s21 + $0x1a0] ss:$8 sps:$4 sm:$0xff]  }
 0x118   : > { %v838_v29 = vmax.f32 %v787_v22, 0.0  ;;  %v791_v30 = vpop.f32.mrb[7].mxu0  ;;  %1662 = vmatprep.subr.bf16.mxu1 %v6915_v19  ;;  %v830_v35 = vadd.f32 %v829_v34, %v577_v25  ;;  %v831_v36 = vpop.f32.mrb[6].mxu1  ;;  %v6975_v18 = vld [vmem:[%s7714_s21 + $0x1b4] ss:$8 sps:$4 sm:$0xff]  }
 0x119   : > { %v839_v33 = vmax.f32 %v789_v26, 0.0  ;;  %v832_v40 = vpop.f32.mrb[7].mxu1  ;;  %v6978_v19 = vld [vmem:[%s7714_s21 + $0x394] ss:$8 sps:$4 sm:$0xff]   ;;  %v6981_v22 = vld [vmem:[%s7714_s21 + $0x1c4] ss:$8 sps:$4 sm:$0xff]  }
 0x11a   : > { %v847_v41 = vpack.c.bf16 %v838_v29, %v838_v29  ;;  %v841_v44 = vmax.f32 %v830_v35, 0.0  ;;  %v6984_v23 = vld [vmem:[%s7714_s21 + $0x3a4] ss:$8 sps:$4 sm:$0xff]   ;;  %v6979_v24 = vld [vmem:[%s7714_s21 + $0x1c0] ss:$8 sps:$4 sm:$0xff]   ;;  %v572_v40 = vsub.s32 6, %v7808_v54 }
 0x11b   : > { %v848_v37 = vpack.c.bf16 %v839_v33, %v839_v33  ;;  %1663 = vmatpush1.bf16.msra.mxu1 %v6913_v28  ;;  %v6982_v25 = vld [vmem:[%s7714_s21 + $0x3a0] ss:$8 sps:$4 sm:$0xff]   ;;  %v6987_v26 = vld [vmem:[%s7714_s21 + $0x1d4] ss:$8 sps:$4 sm:$0xff]   ;;  %v7891_v28 = vsub.s32 2, %v7808_v54 }
 0x11c   : > { %1664 = vmatprep.subr.bf16.mxu1 %v6921_v31  ;;  %v850_v45 = vpack.c.bf16 %v841_v44, %v841_v44  ;;  %v6990_v27 = vld [vmem:[%s7714_s21 + $0x3b4] ss:$8 sps:$4 sm:$0xff]   ;;  %v6985_v29 = vld [vmem:[%s7714_s21 + $0x1d0] ss:$8 sps:$4 sm:$0xff]   ;;  %v6993_v33 = vld [vmem:[%s7714_s21 + $0x1e4] ss:$8 sps:$4 sm:$0xff]   ;;  %v573_v44 = vrot.slane %v7818_v56, %v572_v40 }
 0x11d   : > { %1733 = vmatprep.mubr.bf16.mxu0 %v848_v37  ;;  %v6988_v30 = vld [vmem:[%s7714_s21 + $0x3b0] ss:$8 sps:$4 sm:$0xff]   ;;  %v557_v31 = vrot.slane %v7818_v56, %v7891_v28  ;;  %v6996_v34 = vld [vmem:[%s7714_s21 + $0x3c4] ss:$8 sps:$4 sm:$0xff]   ;;  %v6991_v35 = vld [vmem:[%s7714_s21 + $0x1e0] ss:$8 sps:$4 sm:$0xff]  }
 0x11e   : > { %1734 = vmatmul.mubr.bf16.vlgmr.msra.gmra.mrb[8].mxu0 %v847_v41  ;;  %v6994_v36 = vld [vmem:[%s7714_s21 + $0x3c0] ss:$8 sps:$4 sm:$0xff]   ;;  %v6997_v41 = vld [vmem:[%s7714_s21 + $0x1f0] ss:$8 sps:$4 sm:$0xff]   ;;  %v7570_v40 = vmov (!%p5769_p11), 0  }
 0x11f   : > { %1665 = vmatpush1.bf16.msra.mxu1 %v6919_v38  ;;  %1743 = vmatpush1.bf16.msra.mxu0 %v6922_v39  ;;  %v746_v37 = vadd.f32 %v7834_v7, %v557_v31  ;;  %v6999_v38 = vld [vmem:[%s7714_s21 + $0x1f4] ss:$8 sps:$4 sm:$0xff]   ;;  %v7003_v7 = vld [vmem:[%s7714_s21 + $0x3e0] ss:$8 sps:$4 sm:$0xff]  }
 0x120   : > { %1666 = vmatprep.subr.bf16.mxu1 %v6927_v42  ;;  %1744 = vmatprep.subr.bf16.mxu0 %v6930_v43  ;;  %v7002_v39 = vld [vmem:[%s7714_s21 + $0x3d4] ss:$8 sps:$4 sm:$0xff]   ;;  %v7000_v42 = vld [vmem:[%s7714_s21 + $0x3d0] ss:$8 sps:$4 sm:$0xff]  }
 0x121   : > { %1774 = vmatprep.mubr.bf16.mxu0 %v850_v45  ;;  %v836_v43 = vmax.f32 %v746_v37, 0.0  ;;  %v7005_v45 = vld [vmem:[%s7714_s21 + $0x3e4] ss:$8 sps:$4 sm:$0xff]   ;;  %7009 = vset.pattern.permute.xlu0 (!%p5769_p11), %v7570_v40 }
 0x123   : > { %1667 = vmatpush1.bf16.msra.mxu1 %v6925_v46  ;;  %1745 = vmatpush1.bf16.msra.mxu0 %v6928_v47  ;;  %v845_v46 = vpack.c.bf16 %v836_v43, %v836_v43  ;;  %v828_v47 = vadd.f32 %v7844_v32, %v573_v44  ;;  %v7034_v43 = vld [vmem:[%s9270_s9 + $0xc] ss:$16 sps:$4 sm:$0xff] (!%p5769_p11)   ;;  %v7035_v44 = vld [vmem:[%s9270_s9] ss:$16 sps:$4 sm:$0xff] (!%p5769_p11)  }
 0x124   : > { %1668 = vmatprep.subr.bf16.mxu1 %v6933_v48  ;;  %1746 = vmatprep.subr.bf16.mxu0 %v6936_v49  ;;  %v7008_v48 = vld [vmem:[%s7714_s21 + $0x3f4] ss:$8 sps:$4 sm:$0xff]   ;;  %v7006_v49 = vld [vmem:[%s7714_s21 + $0x3f0] ss:$8 sps:$4 sm:$0xff]  }
 0x127   : > { %1669 = vmatpush1.bf16.msra.mxu1 %v6931_v50  ;;  %1747 = vmatpush1.bf16.msra.mxu0 %v6934_v51  ;;  %v840_v50 = vmax.f32 %v828_v47, 0.0  ;;  %v7041_v47 = vld [vmem:[%s9270_s9 + $0x20] ss:$16 sps:$4 sm:$0xff] (!%p5769_p11)  }
 0x128   : > { %1670 = vmatprep.subr.bf16.mxu1 %v6939_v52  ;;  %1748 = vmatprep.subr.bf16.mxu0 %v6942_v53 }
 0x129   : > { %v849_v51 = vpack.c.bf16 %v840_v50, %v840_v50  ;;  %v7044_v50 = vld [vmem:[%s9270_s9 + $0x48] ss:$16 sps:$4 sm:$0xff] (!%p5769_p11)  }
 0x12b   : > { %1671 = vmatpush1.bf16.msra.mxu1 %v6937_v58  ;;  %1749 = vmatpush1.bf16.msra.mxu0 %v6940_v60  ;;  %v7568_v58 = vmov 1983009808  }
 0x12c   : > { %1672 = vmatprep.subr.bf16.mxu1 %v6945_v61  ;;  %1750 = vmatprep.subr.bf16.mxu0 %v6948_v62  ;;  %v1787_v60 = vunpack.c.l.s4 %v7568_v58  ;;  %v7053_v58 = vld [vmem:[%s9270_s9 + $0x60] ss:$16 sps:$4 sm:$0xff] (!%p5769_p11)  }
 0x12e   : > { %v1788_v62 = vunpack.c.0.s8 %v1787_v60  ;;  %v7054_v60 = vld [vmem:[%s9270_s9 + $0x84] ss:$16 sps:$4 sm:$0xff] (!%p5769_p11)  }
 0x12f   : > { %1673 = vmatpush1.bf16.msra.mxu1 %v6943_v63  ;;  %1751 = vmatpush1.bf16.msra.mxu0 %v6946_v0 }
 0x130   : > { %1674 = vmatprep.subr.bf16.mxu1 %v6951_v1  ;;  %1752 = vmatprep.subr.bf16.mxu0 %v6954_v2  ;;  %v1791_v2 = vsub.s32 %v1788_v62, %v7808_v54  ;;  %v7016_v54 = vld [vmem:[%s9266_s5 + $0x48] sm:$0xff] (!%p5769_p11)  }
 0x131   : > { %v7056_v62 = vld [vmem:[%s9270_s9 + $0x88] ss:$16 sps:$4 sm:$0xff] (!%p5769_p11)  }
 0x133   : > { %1675 = vmatpush1.bf16.msra.mxu1 %v6949_v3  ;;  %1753 = vmatpush1.bf16.msra.mxu0 %v6952_v4 }
 0x134   : > { %1676 = vmatprep.subr.bf16.mxu1 %v6957_v5  ;;  %1754 = vmatprep.subr.bf16.mxu0 %v6960_v6  ;;  %v842_v6 = vld [vmem:[#allocation2] sm:$0xf] }
 0x137   : > { %1677 = vmatpush1.bf16.msra.mxu1 %v6955_v8  ;;  %1755 = vmatpush1.bf16.msra.mxu0 %v6958_v9 }
 0x138   : > { %1678 = vmatprep.subr.bf16.mxu1 %v6963_v10  ;;  %1756 = vmatprep.subr.bf16.mxu0 %v6966_v11  ;;  %v7014_v10 = vld [vmem:[%s9266_s5 + $0x40] sm:$0xff] (!%p5769_p11)  }
 0x139   : > { %v7015_v11 = vld [vmem:[%s9266_s5] sm:$0xff] (!%p5769_p11)  }
 0x13b   : > { %1679 = vmatpush1.bf16.msra.mxu1 %v6961_v12  ;;  %1757 = vmatpush1.bf16.msra.mxu0 %v6964_v13  ;;  %v7017_v12 = vld [vmem:[%s9266_s5 + $0x8] sm:$0xff] (!%p5769_p11)   ;;  %v7018_v13 = vld [vmem:[%s9266_s5 + $0x50] sm:$0xff] (!%p5769_p11)  }
 0x13c   : > { %1680 = vmatprep.subr.bf16.mxu1 %v6969_v14  ;;  %1758 = vmatprep.subr.bf16.mxu0 %v6972_v15  ;;  %v7019_v14 = vld [vmem:[%s9266_s5 + $0x10] sm:$0xff] (!%p5769_p11)   ;;  %v7020_v15 = vld [vmem:[%s9266_s5 + $0x58] sm:$0xff] (!%p5769_p11)  }
 0x13f   : > { %1681 = vmatpush1.bf16.msra.mxu1 %v6967_v16  ;;  %1759 = vmatpush1.bf16.msra.mxu0 %v6970_v17  ;;  %v7021_v16 = vld [vmem:[%s9266_s5 + $0x18] sm:$0xff] (!%p5769_p11)   ;;  %v7022_v17 = vld [vmem:[%s9266_s5 + $0x60] sm:$0xff] (!%p5769_p11)  }
 0x140   : > { %1682 = vmatprep.subr.bf16.mxu1 %v6975_v18  ;;  %1760 = vmatprep.subr.bf16.mxu0 %v6978_v19  ;;  %v7023_v18 = vld [vmem:[%s9266_s5 + $0x20] sm:$0xff] (!%p5769_p11)   ;;  %v7024_v19 = vld [vmem:[%s9266_s5 + $0x68] sm:$0xff] (!%p5769_p11)  }
 0x143   : > { %1683 = vmatpush1.bf16.msra.mxu1 %v6973_v20  ;;  %1761 = vmatpush1.bf16.msra.mxu0 %v6976_v21  ;;  %v1801_v20 = vld [vmem:[%s9265_s4] sm:$0x3] (!%p5769_p11)  ;;  %v7025_v21 = vld [vmem:[%s9266_s5 + $0x28] sm:$0xff] (!%p5769_p11)  }
 0x144   : > { %1684 = vmatprep.subr.bf16.mxu1 %v6981_v22  ;;  %1762 = vmatprep.subr.bf16.mxu0 %v6984_v23  ;;  %v1806_v22 = vrot.slane (!%p5769_p11), %v1801_v20, %v7811_v55  ;;  %v1810_v23 = vrot.slane (!%p5769_p11), %v1801_v20, %v7821_v57  ;;  %v7094_v20 = vld [vmem:[%s9270_s9 + $0x14c] ss:$16 sps:$4 sm:$0xff] (!%p5769_p11)  }
 0x147   : > { %1685 = vmatpush1.bf16.msra.mxu1 %v6979_v24  ;;  %1763 = vmatpush1.bf16.msra.mxu0 %v6982_v25  ;;  %v7026_v24 = vld [vmem:[%s9266_s5 + $0x70] sm:$0xff] (!%p5769_p11)  }
 0x148   : > { %1686 = vmatprep.subr.bf16.mxu1 %v6987_v26  ;;  %1764 = vmatprep.subr.bf16.mxu0 %v6990_v27  ;;  %v1811_v26 = vcombine.low (!%p5769_p11), %v1806_v22, %v1810_v23  ;;  %v7027_v27 = vld [vmem:[%s9266_s5 + $0x30] sm:$0xff] (!%p5769_p11)  }
 0x149   : > { %v7095_v22 = vld [vmem:[%s9270_s9 + $0x140] ss:$16 sps:$4 sm:$0xff] (!%p5769_p11)   ;;  %v7096_v23 = vld [vmem:[%s9270_s9 + $0x164] ss:$16 sps:$4 sm:$0xff] (!%p5769_p11)  }
 0x14b   : > { %1687 = vmatpush1.bf16.msra.mxu1 %v6985_v29  ;;  %1765 = vmatpush1.bf16.msra.mxu0 %v6988_v30  ;;  %v1818_v29 = vrot.slane (!%p5769_p11), %v1811_v26, %v1791_v2  ;;  %v7028_v30 = vld [vmem:[%s9266_s5 + $0x78] sm:$0xff] (!%p5769_p11)   ;;  %v7101_v26 = vld [vmem:[%s9270_s9 + $0x160] ss:$16 sps:$4 sm:$0xff] (!%p5769_p11)  }
 0x14c   : > { %1688 = vmatprep.subr.bf16.mxu1 %v6993_v33  ;;  %1766 = vmatprep.subr.bf16.mxu0 %v6996_v34  ;;  %v7029_v33 = vld [vmem:[%s9266_s5 + $0x38] sm:$0xff] (!%p5769_p11)  }
 0x14f   : > { %1689 = vmatpush1.bf16.msra.mxu1 %v6991_v35  ;;  %1767 = vmatpush1.bf16.msra.mxu0 %v6994_v36 }
 0x150   : > { %1690 = vmatprep.subr.bf16.mxu1 %v6999_v38  ;;  %1768 = vmatprep.subr.bf16.mxu0 %v7002_v39  ;;  %v7569_v39 = vmov (!%p5769_p11), 2  }
 0x151   : > { %7011 = vset.pattern.permute.xlu1 (!%p5769_p11), %v7569_v39 }
 0x153   : > { %1691 = vmatpush1.bf16.msra.mxu1 %v6997_v41  ;;  %1769 = vmatpush1.bf16.msra.mxu0 %v7000_v42  ;;  %v7030_v41 = vld [vmem:[%s9270_s9 + $0x4] ss:$16 sps:$4 sm:$0xff] (!%p5769_p11)   ;;  %v7032_v42 = vld [vmem:[%s9270_s9 + $0x8] ss:$16 sps:$4 sm:$0xff] (!%p5769_p11)  }
 0x154   : > { %1770 = vmatprep.subr.bf16.mxu0 %v7005_v45  ;;  %v7036_v45 = vld [vmem:[%s9270_s9 + $0x24] ss:$16 sps:$4 sm:$0xff] (!%p5769_p11)   ;;  %2453 = vmatprep.subr.bf16.mxu1 (!%p5769_p11), %v7030_v41 }
 0x156   : > { %1693 = vmatmul.mubr.bf16.vlgmr.msra.gmra.mrb[8].mxu1 %v845_v46  ;;  %v7038_v46 = vld [vmem:[%s9270_s9 + $0x28] ss:$16 sps:$4 sm:$0xff] (!%p5769_p11)  }
 0x157   : > { %1771 = vmatpush1.bf16.msra.mxu0 %v7003_v7  ;;  %v7040_v7 = vld [vmem:[%s9270_s9 + $0x2c] ss:$16 sps:$4 sm:$0xff] (!%p5769_p11)   ;;  %2454 = vmatpush1.bf16.msra.mxu1 (!%p5769_p11), %v7035_v44  ;;  %v7114_v44 = vld [vmem:[%s9270_s9 + $0x1c4] ss:$16 sps:$4 sm:$0xff] (!%p5769_p11)  }
 0x158   : > { %1772 = vmatprep.subr.bf16.mxu0 %v7008_v48  ;;  %2455 = vmatprep.subr.bf16.mxu1 (!%p5769_p11), %v7036_v45  ;;  %v7042_v48 = vld [vmem:[%s9270_s9 + $0x44] ss:$16 sps:$4 sm:$0xff] (!%p5769_p11)   ;;  %v7118_v45 = vld [vmem:[%s9270_s9 + $0x1cc] ss:$16 sps:$4 sm:$0xff] (!%p5769_p11)  }
 0x15b   : > { %1773 = vmatpush1.bf16.msra.mxu0 %v7006_v49  ;;  %v7046_v49 = vld [vmem:[%s9270_s9 + $0x4c] ss:$16 sps:$4 sm:$0xff] (!%p5769_p11)   ;;  %2456 = vmatpush1.bf16.msra.mxu1 (!%p5769_p11), %v7041_v47  ;;  %v7120_v47 = vld [vmem:[%s9270_s9 + $0x1e4] ss:$16 sps:$4 sm:$0xff] (!%p5769_p11)  }
 0x15c   : > { %6575 = vmatprep.subr.bf16.mxu0 (!%p5769_p11), %v7014_v10  ;;  %2457 = vmatprep.subr.bf16.mxu1 (!%p5769_p11), %v7042_v48  ;;  %v7074_v10 = vld [vmem:[%s9270_s9 + $0xe8] ss:$16 sps:$4 sm:$0xff] (!%p5769_p11)   ;;  %v7124_v48 = vld [vmem:[%s9270_s9 + $0x1ec] ss:$16 sps:$4 sm:$0xff] (!%p5769_p11)  }
 0x15e   : > { %1775 = vmatmul.mubr.bf16.vlgmr.msra.gmra.mrb[8].mxu0 %v849_v51  ;;  %v7047_v51 = vld [vmem:[%s9270_s9 + $0x40] ss:$16 sps:$4 sm:$0xff] (!%p5769_p11)  }
 0x15f   : > { %6576 = vmatpush3.bf16.msra.mxu0 (!%p5769_p11), %v7015_v11  ;;  %2458 = vmatpush1.bf16.msra.mxu1 (!%p5769_p11), %v7047_v51  ;;  %v7077_v11 = vld [vmem:[%s9270_s9 + $0xe0] ss:$16 sps:$4 sm:$0xff] (!%p5769_p11)   ;;  %v7122_v51 = vld [vmem:[%s9270_s9 + $0x1e8] ss:$16 sps:$4 sm:$0xff] (!%p5769_p11)  }
 0x160   : > { %6577 = vmatprep.subr.bf16.mxu0 (!%p5769_p11), %v7016_v54  ;;  %v7078_v54 = vld [vmem:[%s9270_s9 + $0x104] ss:$16 sps:$4 sm:$0xff] (!%p5769_p11)  }
 0x163   : > { %6578 = vmatpush3.bf16.msra.mxu0 (!%p5769_p11), %v7017_v12  ;;  %v7082_v12 = vld [vmem:[%s9270_s9 + $0x10c] ss:$16 sps:$4 sm:$0xff] (!%p5769_p11)  }
 0x164   : > { %6579 = vmatprep.subr.bf16.mxu0 (!%p5769_p11), %v7018_v13  ;;  %v7080_v13 = vld [vmem:[%s9270_s9 + $0x108] ss:$16 sps:$4 sm:$0xff] (!%p5769_p11)  }
 0x167   : > { %6580 = vmatpush3.bf16.msra.mxu0 (!%p5769_p11), %v7019_v14  ;;  %v7083_v14 = vld [vmem:[%s9270_s9 + $0x100] ss:$16 sps:$4 sm:$0xff] (!%p5769_p11)  }
 0x168   : > { %6581 = vmatprep.subr.bf16.mxu0 (!%p5769_p11), %v7020_v15  ;;  %v7084_v15 = vld [vmem:[%s9270_s9 + $0x124] ss:$16 sps:$4 sm:$0xff] (!%p5769_p11)  }
 0x16b   : > { %6582 = vmatpush3.bf16.msra.mxu0 (!%p5769_p11), %v7021_v16  ;;  %v7088_v16 = vld [vmem:[%s9270_s9 + $0x12c] ss:$16 sps:$4 sm:$0xff] (!%p5769_p11)  }
 0x16c   : > { %6583 = vmatprep.subr.bf16.mxu0 (!%p5769_p11), %v7022_v17  ;;  %v7086_v17 = vld [vmem:[%s9270_s9 + $0x128] ss:$16 sps:$4 sm:$0xff] (!%p5769_p11)  }
 0x16f   : > { %6584 = vmatpush3.bf16.msra.mxu0 (!%p5769_p11), %v7023_v18  ;;  %v7089_v18 = vld [vmem:[%s9270_s9 + $0x120] ss:$16 sps:$4 sm:$0xff] (!%p5769_p11)  }
 0x170   : > { %6585 = vmatprep.subr.bf16.mxu0 (!%p5769_p11), %v7024_v19  ;;  %v7090_v19 = vld [vmem:[%s9270_s9 + $0x144] ss:$16 sps:$4 sm:$0xff] (!%p5769_p11)  }
 0x173   : > { %6586 = vmatpush3.bf16.msra.mxu0 (!%p5769_p11), %v7025_v21  ;;  %v7092_v21 = vld [vmem:[%s9270_s9 + $0x148] ss:$16 sps:$4 sm:$0xff] (!%p5769_p11)  }
 0x174   : > { %6587 = vmatprep.subr.bf16.mxu0 (!%p5769_p11), %v7026_v24  ;;  %v7100_v24 = vld [vmem:[%s9270_s9 + $0x16c] ss:$16 sps:$4 sm:$0xff] (!%p5769_p11)  }
 0x177   : > { %6588 = vmatpush3.bf16.msra.mxu0 (!%p5769_p11), %v7027_v27  ;;  %v7102_v27 = vld [vmem:[%s9270_s9 + $0x184] ss:$16 sps:$4 sm:$0xff] (!%p5769_p11)  }
 0x178   : > { %6589 = vmatprep.subr.bf16.mxu0 (!%p5769_p11), %v7028_v30  ;;  %v7104_v30 = vld [vmem:[%s9270_s9 + $0x188] ss:$16 sps:$4 sm:$0xff] (!%p5769_p11)  }
 0x17b   : > { %6590 = vmatpush3.bf16.msra.mxu0 (!%p5769_p11), %v7029_v33  ;;  %v7108_v33 = vld [vmem:[%s9270_s9 + $0x1a4] ss:$16 sps:$4 sm:$0xff] (!%p5769_p11)  }
 0x17c   : > { %2494 = vmatprep.subr.bf16.mxu0 (!%p5769_p11), %v7034_v43 }
 0x229   : > { %v1694_v52 = vpop.f32.mrb[8].mxu1 }
 0x22a   : > { %v1696_v53 = vpop.f32.mrb[9].mxu1 }
 0x22b   : > { %v1698_v56 = vpop.f32.mrb[10].mxu1 }
 0x22c   : > { %v1699_v61 = vpop.f32.mrb[11].mxu1  ;;  %v7050_v56 = vld [vmem:[%s9270_s9 + $0x68] ss:$16 sps:$4 sm:$0xff] (!%p5769_p11)  }
 0x22d   : > { %v7058_v61 = vld [vmem:[%s9270_s9 + $0x8c] ss:$16 sps:$4 sm:$0xff] (!%p5769_p11)  }
 0x231   : > { %v1776_v63 = vpop.f32.mrb[8].mxu0 }
 0x232   : > { %v6773_v0 = vadd.f32 %v1776_v63, %v1694_v52  ;;  %v1778_v32 = vpop.f32.mrb[9].mxu0  ;;  %v7048_v52 = vld [vmem:[%s9270_s9 + $0x64] ss:$16 sps:$4 sm:$0xff] (!%p5769_p11)   ;;  %v7059_v63 = vld [vmem:[%s9270_s9 + $0x80] ss:$16 sps:$4 sm:$0xff] (!%p5769_p11)  }
 0x233   : > { %v6774_v1 = vadd.f32 %v1778_v32, %v1696_v53  ;;  %v1780_v3 = vpop.f32.mrb[10].mxu0  ;;  %v7052_v53 = vld [vmem:[%s9270_s9 + $0x6c] ss:$16 sps:$4 sm:$0xff] (!%p5769_p11)   ;;  %2459 = vmatprep.subr.bf16.mxu1 (!%p5769_p11), %v7048_v52  ;;  %v7125_v52 = vld [vmem:[%s9270_s9 + $0x1e0] ss:$16 sps:$4 sm:$0xff] (!%p5769_p11)  }
 0x234   : > { %v1781_v4 = vpop.f32.mrb[11].mxu0  ;;  %2460 = vmatpush1.bf16.msra.mxu1 (!%p5769_p11), %v7053_v58  ;;  %v7064_v32 = vld [vmem:[%s9270_s9 + $0xac] ss:$16 sps:$4 sm:$0xff] (!%p5769_p11)   ;;  %v7066_v3 = vld [vmem:[%s9270_s9 + $0xc4] ss:$16 sps:$4 sm:$0xff] (!%p5769_p11)  }
 0x235   : > { %v1785_v5 = vcombine.low %v6773_v0, %v6774_v1  ;;  %1799 = sbr.rel (%p5769_p11) target bundleno = 2353 (0x931), region = 103  ;;  %2461 = vmatprep.subr.bf16.mxu1 (!%p5769_p11), %v7054_v60  ;;  %v7060_v0 = vld [vmem:[%s9270_s9 + $0xa4] ss:$16 sps:$4 sm:$0xff] (!%p5769_p11)   ;;  %v7062_v1 = vld [vmem:[%s9270_s9 + $0xa8] ss:$16 sps:$4 sm:$0xff] (!%p5769_p11)  }
 0x236   : > { %v7070_v4 = vld [vmem:[%s9270_s9 + $0xcc] ss:$16 sps:$4 sm:$0xff] (!%p5769_p11)   ;;  %v2010_v58 = vld [vmem:[%s9268_s7] sm:$0x3] (!%p5769_p11) }
 0x237   : > { %v1792_v8 = vrot.slane %v1785_v5, %v1791_v2  ;;  %v7068_v5 = vld [vmem:[%s9270_s9 + $0xc8] ss:$16 sps:$4 sm:$0xff] (!%p5769_p11)   ;;  %v2029_v60 = vld [vmem:[%s9269_s8] sm:$0x3] (!%p5769_p11) }
 0x238   : > { %2462 = vmatpush1.bf16.msra.mxu1 (!%p5769_p11), %v7059_v63  ;;  %v2034_v63 = vrot.slane (!%p5769_p11), %v2029_v60, %v7811_v55 }
 0x239   : > { %v1794_v9 = vadd.f32 %v1792_v8, %v842_v6  ;;  %2463 = vmatprep.subr.bf16.mxu1 (!%p5769_p11), %v7060_v0  ;;  %v7071_v6 = vld [vmem:[%s9270_s9 + $0xc0] ss:$16 sps:$4 sm:$0xff] (!%p5769_p11)   ;;  %v7072_v8 = vld [vmem:[%s9270_s9 + $0xe4] ss:$16 sps:$4 sm:$0xff] (!%p5769_p11)   ;;  %v2038_v0 = vrot.slane (!%p5769_p11), %v2029_v60, %v7821_v57 }
 0x23b   : > { %1795 = vst [vmem:[#allocation2] sm:$0xf] %v1794_v9  ;;  %v7076_v9 = vld [vmem:[%s9270_s9 + $0xec] ss:$16 sps:$4 sm:$0xff] (!%p5769_p11)  }
 0x242   : > { %v1800_v25 = vld [vmem:[#allocation2] sm:$0xf] }
 0x243   : > { %v1820_v31 = vadd.f32 %v1818_v29, %v1800_v25  ;;  %v7098_v25 = vld [vmem:[%s9270_s9 + $0x168] ss:$16 sps:$4 sm:$0xff]   ;;  %v7106_v29 = vld [vmem:[%s9270_s9 + $0x18c] ss:$16 sps:$4 sm:$0xff]  }
 0x245   : > { %v1821_v34 = vmax.f32 %v1820_v31, 0.0  ;;  %v7107_v31 = vld [vmem:[%s9270_s9 + $0x180] ss:$16 sps:$4 sm:$0xff]  }
 0x247   : > { %v1829_v35 = vrot.slane %v1821_v34, %v1791_v2  ;;  %v7065_v2 = vld [vmem:[%s9270_s9 + $0xa0] ss:$16 sps:$4 sm:$0xff]   ;;  %v7112_v34 = vld [vmem:[%s9270_s9 + $0x1ac] ss:$16 sps:$4 sm:$0xff]  }
 0x248   : > { %2464 = vmatpush1.bf16.msra.mxu1 %v7065_v2 }
 0x249   : > { %v1830_v36 = vcombine.high %v1829_v35, %v1829_v35  ;;  %v1833_v37 = vpack.c.bf16 %v1829_v35, %v1829_v35  ;;  %2465 = vmatprep.subr.bf16.mxu1 %v7066_v3  ;;  %v7110_v35 = vld [vmem:[%s9270_s9 + $0x1a8] ss:$16 sps:$4 sm:$0xff]  }
 0x24b   : > { %v1834_v38 = vpack.c.bf16 %v1830_v36, %v1830_v36  ;;  %v7113_v36 = vld [vmem:[%s9270_s9 + $0x1a0] ss:$16 sps:$4 sm:$0xff]  }
 0x24c   : > { %2466 = vmatpush1.bf16.msra.mxu1 %v7071_v6 }
 0x24d   : > { %2002 = vmatprep.mubr.bf16.mxu0 %v1834_v38  ;;  %2467 = vmatprep.subr.bf16.mxu1 %v7072_v8  ;;  %v5770_v38 = vld [vmem:[%s9267_s6] ss:$0 sm:$0xff] }
 0x24e   : > { %2003 = vmatmul.mubr.bf16.vlgmr.msra.gmra.mrb[0].mxu0 %v1833_v37 }
 0x24f   : > { %2495 = vmatpush1.bf16.msra.mxu0 %v7032_v42 }
 0x250   : > { %2496 = vmatprep.subr.bf16.mxu0 %v7040_v7  ;;  %2468 = vmatpush1.bf16.msra.mxu1 %v7077_v11  ;;  %v7116_v7 = vld [vmem:[%s9270_s9 + $0x1c8] ss:$16 sps:$4 sm:$0xff]   ;;  %v7129_v11 = vld [vmem:[%s9272_s11 + $0x80] sm:$0xff]  }
 0x251   : > { %2469 = vmatprep.subr.bf16.mxu1 %v7078_v54  ;;  %v7130_v54 = vld [vmem:[%s9272_s11 + $0x48] sm:$0xff]  }
 0x253   : > { %2497 = vmatpush1.bf16.msra.mxu0 %v7038_v46  ;;  %v7119_v46 = vld [vmem:[%s9270_s9 + $0x1c0] ss:$16 sps:$4 sm:$0xff]  }
 0x254   : > { %2498 = vmatprep.subr.bf16.mxu0 %v7046_v49  ;;  %2470 = vmatpush1.bf16.msra.mxu1 %v7083_v14  ;;  %v7571_v49 = vmov 3   ;;  %v7133_v14 = vld [vmem:[%s9272_s11 + $0x88] sm:$0xff]  }
 0x255   : > { %2471 = vmatprep.subr.bf16.mxu1 %v7084_v15  ;;  %v7134_v15 = vld [vmem:[%s9272_s11 + $0x50] sm:$0xff]  }
 0x257   : > { %2499 = vmatpush1.bf16.msra.mxu0 %v7044_v50  ;;  %v7572_v50 = vmov 1  }
 0x258   : > { %2500 = vmatprep.subr.bf16.mxu0 %v7052_v53  ;;  %2472 = vmatpush1.bf16.msra.mxu1 %v7089_v18  ;;  %v7126_v53 = vld [vmem:[%s9272_s11 + $0x40] sm:$0xff]   ;;  %v7137_v18 = vld [vmem:[%s9272_s11 + $0x90] sm:$0xff]  }
 0x259   : > { %2473 = vmatprep.subr.bf16.mxu1 %v7090_v19  ;;  %v7138_v19 = vld [vmem:[%s9272_s11 + $0x58] sm:$0xff]  }
 0x25b   : > { %2501 = vmatpush1.bf16.msra.mxu0 %v7050_v56  ;;  %v7127_v56 = vld [vmem:[%s9272_s11 + $0xc0] sm:$0xff]  }
 0x25c   : > { %2502 = vmatprep.subr.bf16.mxu0 %v7058_v61  ;;  %2474 = vmatpush1.bf16.msra.mxu1 %v7095_v22  ;;  %v2020_v61 = vrot.slane %v2010_v58, %v7811_v55  ;;  %v7141_v22 = vld [vmem:[%s9272_s11 + $0x98] sm:$0xff]  }
 0x25d   : > { %2475 = vmatprep.subr.bf16.mxu1 %v7096_v23  ;;  %v7142_v23 = vld [vmem:[%s9272_s11 + $0x60] sm:$0xff]  }
 0x25f   : > { %2503 = vmatpush1.bf16.msra.mxu0 %v7056_v62  ;;  %v2024_v62 = vrot.slane %v2010_v58, %v7821_v57 }
 0x260   : > { %2504 = vmatprep.subr.bf16.mxu0 %v7064_v32  ;;  %2476 = vmatpush1.bf16.msra.mxu1 %v7101_v26  ;;  %v7145_v26 = vld [vmem:[%s9272_s11 + $0xa0] sm:$0xff]  }
 0x261   : > { %2477 = vmatprep.subr.bf16.mxu1 %v7102_v27  ;;  %v7146_v27 = vld [vmem:[%s9272_s11 + $0x68] sm:$0xff]  }
 0x263   : > { %2505 = vmatpush1.bf16.msra.mxu0 %v7062_v1 }
 0x264   : > { %2506 = vmatprep.subr.bf16.mxu0 %v7070_v4  ;;  %2478 = vmatpush1.bf16.msra.mxu1 %v7107_v31  ;;  %v7149_v31 = vld [vmem:[%s9272_s11 + $0xa8] sm:$0xff]  }
 0x265   : > { %2479 = vmatprep.subr.bf16.mxu1 %v7108_v33  ;;  %v7150_v33 = vld [vmem:[%s9272_s11 + $0x70] sm:$0xff]  }
 0x267   : > { %2507 = vmatpush1.bf16.msra.mxu0 %v7068_v5 }
 0x268   : > { %2508 = vmatprep.subr.bf16.mxu0 %v7076_v9  ;;  %2480 = vmatpush1.bf16.msra.mxu1 %v7113_v36  ;;  %v7153_v36 = vld [vmem:[%s9272_s11 + $0xb0] sm:$0xff]  }
 0x269   : > { %2481 = vmatprep.subr.bf16.mxu1 %v7114_v44 }
 0x26b   : > { %2509 = vmatpush1.bf16.msra.mxu0 %v7074_v10  ;;  %v7128_v10 = vld [vmem:[%s9272_s11] sm:$0xff]  }
 0x26c   : > { %2510 = vmatprep.subr.bf16.mxu0 %v7082_v12  ;;  %2482 = vmatpush1.bf16.msra.mxu1 %v7119_v46  ;;  %v7131_v12 = vld [vmem:[%s9272_s11 + $0xc8] sm:$0xff]   ;;  %v2111_v46 = vld [vmem:[%s9271_s10] sm:$0xf] }
 0x26d   : > { %2483 = vmatprep.subr.bf16.mxu1 %v7120_v47 }
 0x26f   : > { %2511 = vmatpush1.bf16.msra.mxu0 %v7080_v13  ;;  %v7132_v13 = vld [vmem:[%s9272_s11 + $0x8] sm:$0xff]  }
 0x270   : > { %2512 = vmatprep.subr.bf16.mxu0 %v7088_v16  ;;  %2484 = vmatpush1.bf16.msra.mxu1 %v7125_v52  ;;  %v7135_v16 = vld [vmem:[%s9272_s11 + $0xd0] sm:$0xff]   ;;  %v2128_v52 = vrot.slane %v2111_v46, %v7826_v59 }
 0x271   : > { %6597 = vmatprep.subr.bf16.mxu1 %v7126_v53 }
 0x273   : > { %2513 = vmatpush1.bf16.msra.mxu0 %v7086_v17  ;;  %v7136_v17 = vld [vmem:[%s9272_s11 + $0x10] sm:$0xff]  }
 0x274   : > { %2514 = vmatprep.subr.bf16.mxu0 %v7094_v20  ;;  %v7139_v20 = vld [vmem:[%s9272_s11 + $0xd8] sm:$0xff]  }
 0x277   : > { %2515 = vmatpush1.bf16.msra.mxu0 %v7092_v21  ;;  %v7140_v21 = vld [vmem:[%s9272_s11 + $0x18] sm:$0xff]  }
 0x278   : > { %2516 = vmatprep.subr.bf16.mxu0 %v7100_v24  ;;  %v7143_v24 = vld [vmem:[%s9272_s11 + $0xe0] sm:$0xff]  }
 0x27b   : > { %2517 = vmatpush1.bf16.msra.mxu0 %v7098_v25  ;;  %v7144_v25 = vld [vmem:[%s9272_s11 + $0x20] sm:$0xff]  }
 0x27c   : > { %2518 = vmatprep.subr.bf16.mxu0 %v7106_v29  ;;  %v7147_v29 = vld [vmem:[%s9272_s11 + $0xe8] sm:$0xff]  }
 0x27f   : > { %2519 = vmatpush1.bf16.msra.mxu0 %v7104_v30  ;;  %v7148_v30 = vld [vmem:[%s9272_s11 + $0x28] sm:$0xff]  }
 0x280   : > { %2520 = vmatprep.subr.bf16.mxu0 %v7112_v34  ;;  %v7151_v34 = vld [vmem:[%s9272_s11 + $0xf0] sm:$0xff]  }
 0x283   : > { %2521 = vmatpush1.bf16.msra.mxu0 %v7110_v35  ;;  %v7152_v35 = vld [vmem:[%s9272_s11 + $0x30] sm:$0xff]  }
 0x284   : > { %2522 = vmatprep.subr.bf16.mxu0 %v7118_v45  ;;  %v8285_v45 = vld [vmem:[%s9269_s8 + $0x2] sm:$0x3] }
 0x285   : > { %v2918_v47 = vrot.slane %v8285_v45, %v7821_v57 }
 0x287   : > { %2523 = vmatpush1.bf16.msra.mxu0 %v7116_v7 }
 0x288   : > { %2524 = vmatprep.subr.bf16.mxu0 %v7124_v48 }
 0x28b   : > { %2525 = vmatpush1.bf16.msra.mxu0 %v7122_v51  ;;  %v2120_v51 = vrot.slane %v2111_v46, %v7821_v57 }
 0x28c   : > { %6619 = vmatprep.subr.bf16.mxu0 %v7127_v56 }
 0x321   : > { %v6591_v37 = vpop.f32.mrb[0].mxu0 }
 0x322   : > { %v6592_v39 = vpop.f32.mrb[1].mxu0 }
 0x323   : > { %v6593_v40 = vadd.f32 %v6592_v39, %v6591_v37  ;;  %v6594_v41 = vpop.f32.mrb[2].mxu0  ;;  %v7154_v37 = vld [vmem:[%s9272_s11 + $0x78] sm:$0xff]  }
 0x324   : > { %v6595_v42 = vpop.f32.mrb[3].mxu0  ;;  %v7156_v39 = vld [vmem:[%s9272_s11 + $0x38] sm:$0xff]   ;;  %v7160_v41 = vld [vmem:[%s9270_s9 + $0x204] ss:$16 sps:$4 sm:$0xff]  }
 0x325   : > { %v2005_v43 = vadd.f32 %v6593_v40, %v5770_v38  ;;  %v7155_v38 = vld [vmem:[%s9272_s11 + $0xf8] sm:$0xff]  }
 0x326   : > { %v7157_v40 = vld [vmem:[%s9272_s11 + $0xb8] sm:$0xff]  }
 0x327   : > { %3780 = vperm.xlu1 %7011, %v2005_v43   ;;  %2013 = vperm.xlu0 %7009, %v2005_v43   ;;  %v7163_v42 = vld [vmem:[%s9270_s9 + $0x20c] ss:$16 sps:$4 sm:$0xff]  }
 0x32b   : > { %7012 = vset.pattern.permute.xlu1 %v7571_v49  ;;  %7010 = vset.pattern.permute.xlu0 %v7572_v50  ;;  %v2124_v50 = vrot.slane %v2111_v46, %v7891_v28 }
 0x32c   : > { %4668 = vperm.xlu1 %7012, %v2005_v43   ;;  %2892 = vperm.xlu0 %7010, %v2005_v43   ;;  %v8278_v43 = vld [vmem:[%s9268_s7 + $0x2] sm:$0x3] }
 0x32d   : > { %v2903_v44 = vrot.slane %v8278_v43, %v7821_v57 }
 0x330   : > { %7013 = vset.pattern.permute.xlu0 %v7571_v49  ;;  %v2116_v49 = vrot.slane %v2111_v46, %v7811_v55  ;;  %v7205_v46 = vld [vmem:[%s9270_s9 + $0x2ec] ss:$16 sps:$4 sm:$0xff]  }
 0x3a6   : > { %v2014_v32 = vpop.permute.xlu0 %2013 }
 0x3a7   : > { %v2027_v1 = vmul.f32 %v2020_v61, %v2014_v32  ;;  %v2028_v2 = vmul.f32 %v2024_v62, %v2014_v32 }
 0x3a9   : > { %v2041_v3 = vadd.f32 %v2034_v63, %v2027_v1  ;;  %v2042_v4 = vadd.f32 %v2038_v0, %v2028_v2 }
 0x3ab   : > { %v2043_v5 = vmax.f32 %v2041_v3, 0.0  ;;  %v2044_v6 = vmax.f32 %v2042_v4, 0.0  ;;  %v8287_v7 = vpop.permute.xlu0 %2892 }
 0x3ac   : > { %v2907_v48 = vmul.f32 %v2903_v44, %v8287_v7  ;;  %v7202_v44 = vld [vmem:[%s9270_s9 + $0x2e4] ss:$16 sps:$4 sm:$0xff]  }
 0x3ad   : > { %v2046_v8 = vpack.c.bf16 %v2044_v6, %v2044_v6  ;;  %v2045_v9 = vpack.c.bf16 %v2043_v5, %v2043_v5 }
 0x3ae   : > { %v2922_v58 = vadd.f32 %v2918_v47, %v2907_v48  ;;  %v7200_v47 = vld [vmem:[%s9270_s9 + $0x2e0] ss:$16 sps:$4 sm:$0xff]   ;;  %v7203_v48 = vld [vmem:[%s9270_s9 + $0x2e8] ss:$16 sps:$4 sm:$0xff]  }
 0x3af   : > { %2485 = vmatprep.mubr.bf16.mxu1 %v2046_v8  ;;  %2526 = vmatprep.mubr.bf16.mxu0 %v2046_v8 }
 0x3b0   : > { %2486 = vmatmul.mubr.bf16.vlgmr.msra.gmra.mrb[0].mxu1 %v2045_v9  ;;  %2527 = vmatmul.mubr.bf16.vlgmr.msra.gmra.mrb[4].mxu0 %v2045_v9 }
 0x3b1   : > { %6598 = vmatpush3.bf16.msra.mxu1 %v7128_v10  ;;  %6620 = vmatpush3.bf16.msra.mxu0 %v7129_v11  ;;  %v2924_v10 = vmax.f32 %v2922_v58, 0.0  ;;  %v7212_v58 = vld [vmem:[%s9270_s9 + $0x320] ss:$16 sps:$4 sm:$0xff]  }
 0x3b2   : > { %6599 = vmatprep.subr.bf16.mxu1 %v7130_v54  ;;  %6621 = vmatprep.subr.bf16.mxu0 %v7131_v12  ;;  %v7158_v12 = vld [vmem:[%s9270_s9 + $0x200] ss:$16 sps:$4 sm:$0xff]  }
 0x3b5   : > { %6600 = vmatpush3.bf16.msra.mxu1 %v7132_v13  ;;  %6622 = vmatpush3.bf16.msra.mxu0 %v7133_v14  ;;  %v7161_v13 = vld [vmem:[%s9270_s9 + $0x208] ss:$16 sps:$4 sm:$0xff]  }
 0x3b6   : > { %6601 = vmatprep.subr.bf16.mxu1 %v7134_v15  ;;  %6623 = vmatprep.subr.bf16.mxu0 %v7135_v16  ;;  %v7166_v16 = vld [vmem:[%s9270_s9 + $0x224] ss:$16 sps:$4 sm:$0xff]  }
 0x3b9   : > { %6602 = vmatpush3.bf16.msra.mxu1 %v7136_v17  ;;  %6624 = vmatpush3.bf16.msra.mxu0 %v7137_v18  ;;  %v7169_v17 = vld [vmem:[%s9270_s9 + $0x22c] ss:$16 sps:$4 sm:$0xff]   ;;  %v2926_v18 = vpack.c.bf16 %v2924_v10, %v2924_v10  ;;  %v7238_v10 = vld [vmem:[%s9270_s9 + $0x3a4] ss:$16 sps:$4 sm:$0xff]  }
 0x3ba   : > { %6603 = vmatprep.subr.bf16.mxu1 %v7138_v19  ;;  %6625 = vmatprep.subr.bf16.mxu0 %v7139_v20  ;;  %v7164_v19 = vld [vmem:[%s9270_s9 + $0x220] ss:$16 sps:$4 sm:$0xff]   ;;  %v7167_v20 = vld [vmem:[%s9270_s9 + $0x228] ss:$16 sps:$4 sm:$0xff]  }
 0x3bd   : > { %6604 = vmatpush3.bf16.msra.mxu1 %v7140_v21  ;;  %6626 = vmatpush3.bf16.msra.mxu0 %v7141_v22  ;;  %v7172_v21 = vld [vmem:[%s9270_s9 + $0x244] ss:$16 sps:$4 sm:$0xff]   ;;  %v7175_v22 = vld [vmem:[%s9270_s9 + $0x24c] ss:$16 sps:$4 sm:$0xff]  }
 0x3be   : > { %6605 = vmatprep.subr.bf16.mxu1 %v7142_v23  ;;  %6627 = vmatprep.subr.bf16.mxu0 %v7143_v24  ;;  %v7170_v23 = vld [vmem:[%s9270_s9 + $0x240] ss:$16 sps:$4 sm:$0xff]   ;;  %v7173_v24 = vld [vmem:[%s9270_s9 + $0x248] ss:$16 sps:$4 sm:$0xff]  }
 0x3c1   : > { %6606 = vmatpush3.bf16.msra.mxu1 %v7144_v25  ;;  %6628 = vmatpush3.bf16.msra.mxu0 %v7145_v26  ;;  %v7178_v25 = vld [vmem:[%s9270_s9 + $0x264] ss:$16 sps:$4 sm:$0xff]   ;;  %v7181_v26 = vld [vmem:[%s9270_s9 + $0x26c] ss:$16 sps:$4 sm:$0xff]  }
 0x3c2   : > { %6607 = vmatprep.subr.bf16.mxu1 %v7146_v27  ;;  %6629 = vmatprep.subr.bf16.mxu0 %v7147_v29  ;;  %v7176_v27 = vld [vmem:[%s9270_s9 + $0x260] ss:$16 sps:$4 sm:$0xff]   ;;  %v7179_v29 = vld [vmem:[%s9270_s9 + $0x268] ss:$16 sps:$4 sm:$0xff]  }
 0x3c5   : > { %6608 = vmatpush3.bf16.msra.mxu1 %v7148_v30  ;;  %6630 = vmatpush3.bf16.msra.mxu0 %v7149_v31  ;;  %v7184_v30 = vld [vmem:[%s9270_s9 + $0x284] ss:$16 sps:$4 sm:$0xff]   ;;  %v7187_v31 = vld [vmem:[%s9270_s9 + $0x28c] ss:$16 sps:$4 sm:$0xff]  }
 0x3c6   : > { %6609 = vmatprep.subr.bf16.mxu1 %v7150_v33  ;;  %6631 = vmatprep.subr.bf16.mxu0 %v7151_v34  ;;  %v7182_v33 = vld [vmem:[%s9270_s9 + $0x280] ss:$16 sps:$4 sm:$0xff]   ;;  %v7185_v34 = vld [vmem:[%s9270_s9 + $0x288] ss:$16 sps:$4 sm:$0xff]  }
 0x3c9   : > { %6610 = vmatpush3.bf16.msra.mxu1 %v7152_v35  ;;  %6632 = vmatpush3.bf16.msra.mxu0 %v7153_v36  ;;  %v7190_v35 = vld [vmem:[%s9270_s9 + $0x2a4] ss:$16 sps:$4 sm:$0xff]   ;;  %v7193_v36 = vld [vmem:[%s9270_s9 + $0x2ac] ss:$16 sps:$4 sm:$0xff]  }
 0x3ca   : > { %6611 = vmatprep.subr.bf16.mxu1 %v7154_v37  ;;  %6633 = vmatprep.subr.bf16.mxu0 %v7155_v38  ;;  %v7188_v37 = vld [vmem:[%s9270_s9 + $0x2a0] ss:$16 sps:$4 sm:$0xff]   ;;  %v7191_v38 = vld [vmem:[%s9270_s9 + $0x2a8] ss:$16 sps:$4 sm:$0xff]  }
 0x3cd   : > { %6612 = vmatpush3.bf16.msra.mxu1 %v7156_v39  ;;  %6634 = vmatpush3.bf16.msra.mxu0 %v7157_v40  ;;  %v7196_v39 = vld [vmem:[%s9270_s9 + $0x2c4] ss:$16 sps:$4 sm:$0xff]   ;;  %v7199_v40 = vld [vmem:[%s9270_s9 + $0x2cc] ss:$16 sps:$4 sm:$0xff]  }
 0x3ce   : > { %3335 = vmatprep.subr.bf16.mxu1 %v7160_v41  ;;  %3376 = vmatprep.subr.bf16.mxu0 %v7163_v42  ;;  %v7194_v41 = vld [vmem:[%s9270_s9 + $0x2c0] ss:$16 sps:$4 sm:$0xff]   ;;  %v7197_v42 = vld [vmem:[%s9270_s9 + $0x2c8] ss:$16 sps:$4 sm:$0xff]  }
 0x483   : > { %v2487_v53 = vpop.f32.mrb[0].mxu1  ;;  %v2528_v56 = vpop.f32.mrb[4].mxu0 }
 0x484   : > { %v2488_v60 = vadd.f32 %v2487_v53, %v2116_v49  ;;  %v2529_v61 = vadd.f32 %v2528_v56, %v2124_v50  ;;  %v2489_v62 = vpop.f32.mrb[1].mxu1  ;;  %v2530_v63 = vpop.f32.mrb[5].mxu0  ;;  %v7208_v49 = vld [vmem:[%s9270_s9 + $0x304] ss:$16 sps:$4 sm:$0xff]   ;;  %v7211_v50 = vld [vmem:[%s9270_s9 + $0x30c] ss:$16 sps:$4 sm:$0xff]  }
 0x485   : > { %v2490_v0 = vadd.f32 %v2489_v62, %v2120_v51  ;;  %v2531_v32 = vadd.f32 %v2530_v63, %v2128_v52  ;;  %v2491_v1 = vpop.f32.mrb[2].mxu1  ;;  %v2532_v2 = vpop.f32.mrb[6].mxu0  ;;  %v7206_v51 = vld [vmem:[%s9270_s9 + $0x300] ss:$16 sps:$4 sm:$0xff]   ;;  %v7209_v52 = vld [vmem:[%s9270_s9 + $0x308] ss:$16 sps:$4 sm:$0xff]  }
 0x486   : > { %v2535_v3 = vmax.f32 %v2488_v60, 0.0  ;;  %v2537_v4 = vmax.f32 %v2529_v61, 0.0  ;;  %v2492_v5 = vpop.f32.mrb[3].mxu1  ;;  %v2533_v6 = vpop.f32.mrb[7].mxu0  ;;  %v7214_v53 = vld [vmem:[%s9270_s9 + $0x324] ss:$16 sps:$4 sm:$0xff]  }
 0x487   : > { %v2536_v8 = vmax.f32 %v2490_v0, 0.0  ;;  %v2538_v9 = vmax.f32 %v2531_v32, 0.0  ;;  %v7217_v56 = vld [vmem:[%s9270_s9 + $0x32c] ss:$16 sps:$4 sm:$0xff]   ;;  %v7215_v60 = vld [vmem:[%s9270_s9 + $0x328] ss:$16 sps:$4 sm:$0xff]  }
 0x488   : > { %v2539_v14 = vpack.c.bf16 %v2535_v3, %v2535_v3  ;;  %v2541_v15 = vpack.c.bf16 %v2537_v4, %v2537_v4  ;;  %v7220_v61 = vld [vmem:[%s9270_s9 + $0x344] ss:$16 sps:$4 sm:$0xff]   ;;  %v7223_v62 = vld [vmem:[%s9270_s9 + $0x34c] ss:$16 sps:$4 sm:$0xff]   ;;  %v7218_v63 = vld [vmem:[%s9270_s9 + $0x340] ss:$16 sps:$4 sm:$0xff]  }
 0x489   : > { %v2540_v11 = vpack.c.bf16 %v2536_v8, %v2536_v8  ;;  %v2542_v54 = vpack.c.bf16 %v2538_v9, %v2538_v9  ;;  %v7221_v0 = vld [vmem:[%s9270_s9 + $0x348] ss:$16 sps:$4 sm:$0xff]   ;;  %v7226_v32 = vld [vmem:[%s9270_s9 + $0x364] ss:$16 sps:$4 sm:$0xff]   ;;  %v7229_v1 = vld [vmem:[%s9270_s9 + $0x36c] ss:$16 sps:$4 sm:$0xff]   ;;  %v2899_v9 = vrot.slane %v8278_v43, %v7811_v55 }
 0x48a   : > { %v7224_v2 = vld [vmem:[%s9270_s9 + $0x360] ss:$16 sps:$4 sm:$0xff]   ;;  %v7227_v3 = vld [vmem:[%s9270_s9 + $0x368] ss:$16 sps:$4 sm:$0xff]   ;;  %v7232_v4 = vld [vmem:[%s9270_s9 + $0x384] ss:$16 sps:$4 sm:$0xff]  }
 0x48b   : > { %2838 = vmatprep.mubr.bf16.mxu1 %v2540_v11  ;;  %2878 = vmatprep.mubr.bf16.mxu0 %v2542_v54  ;;  %v7235_v5 = vld [vmem:[%s9270_s9 + $0x38c] ss:$16 sps:$4 sm:$0xff]   ;;  %v7230_v6 = vld [vmem:[%s9270_s9 + $0x380] ss:$16 sps:$4 sm:$0xff]   ;;  %v7233_v8 = vld [vmem:[%s9270_s9 + $0x388] ss:$16 sps:$4 sm:$0xff]  }
 0x48c   : > { %2839 = vmatmul.mubr.bf16.vlgmr.msra.gmra.mrb[4].mxu1 %v2539_v14  ;;  %2879 = vmatmul.mubr.bf16.vlgmr.msra.gmra.mrb[8].mxu0 %v2541_v15  ;;  %v7241_v11 = vld [vmem:[%s9270_s9 + $0x3ac] ss:$16 sps:$4 sm:$0xff]   ;;  %v7236_v54 = vld [vmem:[%s9270_s9 + $0x3a0] ss:$16 sps:$4 sm:$0xff]   ;;  %v7239_v43 = vld [vmem:[%s9270_s9 + $0x3a8] ss:$16 sps:$4 sm:$0xff]  }
 0x48d   : > { %3336 = vmatpush1.bf16.msra.mxu1 %v7158_v12  ;;  %3377 = vmatpush1.bf16.msra.mxu0 %v7161_v13  ;;  %v2914_v12 = vrot.slane %v8285_v45, %v7811_v55  ;;  %v2906_v13 = vmul.f32 %v2899_v9, %v8287_v7  ;;  %v7244_v14 = vld [vmem:[%s9270_s9 + $0x3c4] ss:$16 sps:$4 sm:$0xff]   ;;  %v7247_v15 = vld [vmem:[%s9270_s9 + $0x3cc] ss:$16 sps:$4 sm:$0xff]   ;;  %v7245_v45 = vld [vmem:[%s9270_s9 + $0x3c8] ss:$16 sps:$4 sm:$0xff]  }
 0x48e   : > { %3367 = vmatprep.mubr.bf16.mxu1 %v2926_v18  ;;  %3408 = vmatprep.mubr.bf16.mxu0 %v2926_v18  ;;  %v7253_v18 = vld [vmem:[%s9270_s9 + $0x3ec] ss:$16 sps:$4 sm:$0xff]  }
 0x48f   : > { %3337 = vmatprep.subr.bf16.mxu1 %v7166_v16  ;;  %3378 = vmatprep.subr.bf16.mxu0 %v7169_v17  ;;  %v7242_v16 = vld [vmem:[%s9270_s9 + $0x3c0] ss:$16 sps:$4 sm:$0xff]   ;;  %v2921_v7 = vadd.f32 %v2914_v12, %v2906_v13  ;;  %v7250_v17 = vld [vmem:[%s9270_s9 + $0x3e4] ss:$16 sps:$4 sm:$0xff]  }
 0x490   : > { %v8601_v13 = vld [vmem:[%s9268_s7 + $0x4] sm:$0x3] }
 0x491   : > { %3338 = vmatpush1.bf16.msra.mxu1 %v7164_v19  ;;  %3379 = vmatpush1.bf16.msra.mxu0 %v7167_v20  ;;  %v7248_v19 = vld [vmem:[%s9270_s9 + $0x3e0] ss:$16 sps:$4 sm:$0xff]   ;;  %v7251_v20 = vld [vmem:[%s9270_s9 + $0x3e8] ss:$16 sps:$4 sm:$0xff]  }
 0x492   : > { %3339 = vmatprep.subr.bf16.mxu1 %v7172_v21  ;;  %3380 = vmatprep.subr.bf16.mxu0 %v7175_v22  ;;  %v2923_v21 = vmax.f32 %v2921_v7, 0.0 }
 0x494   : > { %v2925_v22 = vpack.c.bf16 %v2923_v21, %v2923_v21 }
 0x495   : > { %3340 = vmatpush1.bf16.msra.mxu1 %v7170_v23  ;;  %3381 = vmatpush1.bf16.msra.mxu0 %v7173_v24  ;;  %v7254_v23 = vld [vmem:[%s9272_s11 + $0x140] sm:$0xff]  }
 0x496   : > { %3341 = vmatprep.subr.bf16.mxu1 %v7178_v25  ;;  %3382 = vmatprep.subr.bf16.mxu0 %v7181_v26  ;;  %v7255_v24 = vld [vmem:[%s9272_s11 + $0x1c0] sm:$0xff]  }
 0x497   : > { %v7256_v25 = vld [vmem:[%s9272_s11 + $0x100] sm:$0xff]  }
 0x498   : > { %v7257_v26 = vld [vmem:[%s9272_s11 + $0x180] sm:$0xff]  }
 0x499   : > { %3342 = vmatpush1.bf16.msra.mxu1 %v7176_v27  ;;  %3383 = vmatpush1.bf16.msra.mxu0 %v7179_v29  ;;  %v7258_v27 = vld [vmem:[%s9272_s11 + $0x148] sm:$0xff]  }
 0x49a   : > { %3343 = vmatprep.subr.bf16.mxu1 %v7184_v30  ;;  %3384 = vmatprep.subr.bf16.mxu0 %v7187_v31  ;;  %v7259_v29 = vld [vmem:[%s9272_s11 + $0x1c8] sm:$0xff]  }
 0x49b   : > { %v7260_v30 = vld [vmem:[%s9272_s11 + $0x108] sm:$0xff]  }
 0x49c   : > { %v7261_v31 = vld [vmem:[%s9272_s11 + $0x188] sm:$0xff]  }
 0x49d   : > { %3344 = vmatpush1.bf16.msra.mxu1 %v7182_v33  ;;  %3385 = vmatpush1.bf16.msra.mxu0 %v7185_v34  ;;  %v7262_v33 = vld [vmem:[%s9272_s11 + $0x150] sm:$0xff]  }
 0x49e   : > { %3345 = vmatprep.subr.bf16.mxu1 %v7190_v35  ;;  %3386 = vmatprep.subr.bf16.mxu0 %v7193_v36  ;;  %v7263_v34 = vld [vmem:[%s9272_s11 + $0x1d0] sm:$0xff]  }
 0x49f   : > { %v7264_v35 = vld [vmem:[%s9272_s11 + $0x110] sm:$0xff]  }
 0x4a0   : > { %v7265_v36 = vld [vmem:[%s9272_s11 + $0x190] sm:$0xff]  }
 0x4a1   : > { %3346 = vmatpush1.bf16.msra.mxu1 %v7188_v37  ;;  %3387 = vmatpush1.bf16.msra.mxu0 %v7191_v38  ;;  %v7266_v37 = vld [vmem:[%s9272_s11 + $0x158] sm:$0xff]  }
 0x4a2   : > { %3347 = vmatprep.subr.bf16.mxu1 %v7196_v39  ;;  %3388 = vmatprep.subr.bf16.mxu0 %v7199_v40  ;;  %v7267_v38 = vld [vmem:[%s9272_s11 + $0x1d8] sm:$0xff]  }
 0x4a3   : > { %v7268_v39 = vld [vmem:[%s9272_s11 + $0x118] sm:$0xff]  }
 0x4a4   : > { %v7269_v40 = vld [vmem:[%s9272_s11 + $0x198] sm:$0xff]  }
 0x4a5   : > { %3348 = vmatpush1.bf16.msra.mxu1 %v7194_v41  ;;  %3389 = vmatpush1.bf16.msra.mxu0 %v7197_v42  ;;  %v7270_v41 = vld [vmem:[%s9272_s11 + $0x160] sm:$0xff]  }
 0x4a6   : > { %3349 = vmatprep.subr.bf16.mxu1 %v7202_v44  ;;  %3390 = vmatprep.subr.bf16.mxu0 %v7205_v46  ;;  %v7271_v42 = vld [vmem:[%s9272_s11 + $0x1e0] sm:$0xff]  }
 0x4a7   : > { %v7272_v44 = vld [vmem:[%s9272_s11 + $0x120] sm:$0xff]  }
 0x4a8   : > { %v7273_v46 = vld [vmem:[%s9272_s11 + $0x1a0] sm:$0xff]  }
 0x4a9   : > { %3350 = vmatpush1.bf16.msra.mxu1 %v7200_v47  ;;  %3391 = vmatpush1.bf16.msra.mxu0 %v7203_v48  ;;  %v7274_v47 = vld [vmem:[%s9272_s11 + $0x168] sm:$0xff]  }
 0x4aa   : > { %3351 = vmatprep.subr.bf16.mxu1 %v7208_v49  ;;  %3392 = vmatprep.subr.bf16.mxu0 %v7211_v50  ;;  %v7275_v48 = vld [vmem:[%s9272_s11 + $0x1e8] sm:$0xff]  }
 0x4ab   : > { %v7276_v49 = vld [vmem:[%s9272_s11 + $0x128] sm:$0xff]  }
 0x4ac   : > { %v7277_v50 = vld [vmem:[%s9272_s11 + $0x1a8] sm:$0xff]  }
 0x4ad   : > { %3352 = vmatpush1.bf16.msra.mxu1 %v7206_v51  ;;  %3393 = vmatpush1.bf16.msra.mxu0 %v7209_v52  ;;  %v7278_v51 = vld [vmem:[%s9272_s11 + $0x170] sm:$0xff]  }
 0x4ae   : > { %3353 = vmatprep.subr.bf16.mxu1 %v7214_v53  ;;  %3394 = vmatprep.subr.bf16.mxu0 %v7217_v56  ;;  %v7279_v52 = vld [vmem:[%s9272_s11 + $0x1f0] sm:$0xff]  }
 0x4af   : > { %v7280_v53 = vld [vmem:[%s9272_s11 + $0x130] sm:$0xff]  }
 0x4b0   : > { %v7281_v56 = vld [vmem:[%s9272_s11 + $0x1b0] sm:$0xff]  }
 0x4b1   : > { %3354 = vmatpush1.bf16.msra.mxu1 %v7212_v58  ;;  %3395 = vmatpush1.bf16.msra.mxu0 %v7215_v60  ;;  %v7282_v58 = vld [vmem:[%s9272_s11 + $0x178] sm:$0xff]  }
 0x4b2   : > { %3355 = vmatprep.subr.bf16.mxu1 %v7220_v61  ;;  %3396 = vmatprep.subr.bf16.mxu0 %v7223_v62  ;;  %v7283_v60 = vld [vmem:[%s9272_s11 + $0x1f8] sm:$0xff]  }
 0x4b3   : > { %v7284_v61 = vld [vmem:[%s9272_s11 + $0x138] sm:$0xff]  }
 0x4b4   : > { %v7285_v62 = vld [vmem:[%s9272_s11 + $0x1b8] sm:$0xff]  }
 0x4b5   : > { %3356 = vmatpush1.bf16.msra.mxu1 %v7218_v63  ;;  %3397 = vmatpush1.bf16.msra.mxu0 %v7221_v0  ;;  %v7288_v63 = vld [vmem:[%s9270_s9 + $0x404] ss:$16 sps:$4 sm:$0xff]   ;;  %v7291_v0 = vld [vmem:[%s9270_s9 + $0x40c] ss:$16 sps:$4 sm:$0xff]  }
 0x4b6   : > { %3357 = vmatprep.subr.bf16.mxu1 %v7226_v32  ;;  %3398 = vmatprep.subr.bf16.mxu0 %v7229_v1 }
 0x4b9   : > { %3358 = vmatpush1.bf16.msra.mxu1 %v7224_v2  ;;  %3399 = vmatpush1.bf16.msra.mxu0 %v7227_v3  ;;  %v5851_v2 = vld [vmem:[%s9273_s12] ss:$0 sm:$0xff] }
 0x4ba   : > { %3359 = vmatprep.subr.bf16.mxu1 %v7232_v4  ;;  %3400 = vmatprep.subr.bf16.mxu0 %v7235_v5 }
 0x4bd   : > { %3360 = vmatpush1.bf16.msra.mxu1 %v7230_v6  ;;  %3401 = vmatpush1.bf16.msra.mxu0 %v7233_v8 }
 0x4be   : > { %3361 = vmatprep.subr.bf16.mxu1 %v7238_v10  ;;  %3402 = vmatprep.subr.bf16.mxu0 %v7241_v11 }
 0x4c1   : > { %3362 = vmatpush1.bf16.msra.mxu1 %v7236_v54  ;;  %3403 = vmatpush1.bf16.msra.mxu0 %v7239_v43 }
 0x4c2   : > { %3363 = vmatprep.subr.bf16.mxu1 %v7244_v14  ;;  %3404 = vmatprep.subr.bf16.mxu0 %v7247_v15  ;;  %v3791_v14 = vrot.slane %v8601_v13, %v7821_v57  ;;  %v8608_v15 = vld [vmem:[%s9269_s8 + $0x4] sm:$0x3] }
 0x4c3   : > { %v3806_v7 = vrot.slane %v8608_v15, %v7821_v57 }
 0x4c5   : > { %3364 = vmatpush1.bf16.msra.mxu1 %v7242_v16  ;;  %3405 = vmatpush1.bf16.msra.mxu0 %v7245_v45  ;;  %v8610_v16 = vpop.permute.xlu1 %3780  ;;  %v5950_v45 = vld [vmem:[%s9271_s10 + $0x4] sm:$0xf] }
 0x4c6   : > { %3365 = vmatprep.subr.bf16.mxu1 %v7250_v17  ;;  %3406 = vmatprep.subr.bf16.mxu0 %v7253_v18  ;;  %v3795_v17 = vmul.f32 %v3791_v14, %v8610_v16  ;;  %v2998_v18 = vrot.slane %v5950_v45, %v7811_v55  ;;  %v3010_v21 = vrot.slane %v5950_v45, %v7826_v59  ;;  %v7330_v14 = vld [vmem:[%s9270_s9 + $0x4e4] ss:$16 sps:$4 sm:$0xff]  }
 0x4c9   : > { %3366 = vmatpush1.bf16.msra.mxu1 %v7248_v19  ;;  %3407 = vmatpush1.bf16.msra.mxu0 %v7251_v20  ;;  %v3006_v19 = vrot.slane %v5950_v45, %v7891_v28  ;;  %v3002_v20 = vrot.slane %v5950_v45, %v7821_v57  ;;  %v7333_v45 = vld [vmem:[%s9270_s9 + $0x4ec] ss:$16 sps:$4 sm:$0xff]  }
 0x4ca   : > { %6641 = vmatprep.subr.bf16.mxu1 %v7254_v23  ;;  %6663 = vmatprep.subr.bf16.mxu0 %v7255_v24  ;;  %v3810_v24 = vadd.f32 %v3806_v7, %v3795_v17  ;;  %v7328_v7 = vld [vmem:[%s9270_s9 + $0x4e0] ss:$16 sps:$4 sm:$0xff]   ;;  %v7331_v17 = vld [vmem:[%s9270_s9 + $0x4e8] ss:$16 sps:$4 sm:$0xff]  }
 0x4cc   : > { %3368 = vmatmul.mubr.bf16.vlgmr.msra.gmra.mrb[8].mxu1 %v2925_v22  ;;  %3409 = vmatmul.mubr.bf16.vlgmr.msra.gmra.mrb[12].mxu0 %v2925_v22 }
 0x4cd   : > { %6642 = vmatpush3.bf16.msra.mxu1 %v7256_v25  ;;  %6664 = vmatpush3.bf16.msra.mxu0 %v7257_v26 }
 0x4ce   : > { %6643 = vmatprep.subr.bf16.mxu1 %v7258_v27  ;;  %6665 = vmatprep.subr.bf16.mxu0 %v7259_v29 }
 0x4d1   : > { %6644 = vmatpush3.bf16.msra.mxu1 %v7260_v30  ;;  %6666 = vmatpush3.bf16.msra.mxu0 %v7261_v31 }
 0x4d2   : > { %6645 = vmatprep.subr.bf16.mxu1 %v7262_v33  ;;  %6667 = vmatprep.subr.bf16.mxu0 %v7263_v34 }
 0x4d5   : > { %6646 = vmatpush3.bf16.msra.mxu1 %v7264_v35  ;;  %6668 = vmatpush3.bf16.msra.mxu0 %v7265_v36 }
 0x4d6   : > { %6647 = vmatprep.subr.bf16.mxu1 %v7266_v37  ;;  %6669 = vmatprep.subr.bf16.mxu0 %v7267_v38 }
 0x4d9   : > { %6648 = vmatpush3.bf16.msra.mxu1 %v7268_v39  ;;  %6670 = vmatpush3.bf16.msra.mxu0 %v7269_v40 }
 0x4da   : > { %6649 = vmatprep.subr.bf16.mxu1 %v7270_v41  ;;  %6671 = vmatprep.subr.bf16.mxu0 %v7271_v42  ;;  %v3812_v41 = vmax.f32 %v3810_v24, 0.0  ;;  %v7340_v24 = vld [vmem:[%s9270_s9 + $0x520] ss:$16 sps:$4 sm:$0xff]  }
 0x4dd   : > { %6650 = vmatpush3.bf16.msra.mxu1 %v7272_v44  ;;  %6672 = vmatpush3.bf16.msra.mxu0 %v7273_v46  ;;  %v7286_v46 = vld [vmem:[%s9270_s9 + $0x400] ss:$16 sps:$4 sm:$0xff]  }
 0x4de   : > { %6651 = vmatprep.subr.bf16.mxu1 %v7274_v47  ;;  %6673 = vmatprep.subr.bf16.mxu0 %v7275_v48  ;;  %v7289_v47 = vld [vmem:[%s9270_s9 + $0x408] ss:$16 sps:$4 sm:$0xff]  }
 0x4e1   : > { %6652 = vmatpush3.bf16.msra.mxu1 %v7276_v49  ;;  %6674 = vmatpush3.bf16.msra.mxu0 %v7277_v50  ;;  %v7294_v50 = vld [vmem:[%s9270_s9 + $0x424] ss:$16 sps:$4 sm:$0xff]  }
 0x4e2   : > { %6653 = vmatprep.subr.bf16.mxu1 %v7278_v51  ;;  %6675 = vmatprep.subr.bf16.mxu0 %v7279_v52  ;;  %v7297_v51 = vld [vmem:[%s9270_s9 + $0x42c] ss:$16 sps:$4 sm:$0xff]   ;;  %v3814_v52 = vpack.c.bf16 %v3812_v41, %v3812_v41  ;;  %v7366_v41 = vld [vmem:[%s9270_s9 + $0x5a4] ss:$16 sps:$4 sm:$0xff]  }
 0x4e5   : > { %6654 = vmatpush3.bf16.msra.mxu1 %v7280_v53  ;;  %6676 = vmatpush3.bf16.msra.mxu0 %v7281_v56  ;;  %v7292_v53 = vld [vmem:[%s9270_s9 + $0x420] ss:$16 sps:$4 sm:$0xff]   ;;  %v7295_v56 = vld [vmem:[%s9270_s9 + $0x428] ss:$16 sps:$4 sm:$0xff]  }
 0x4e6   : > { %6655 = vmatprep.subr.bf16.mxu1 %v7282_v58  ;;  %6677 = vmatprep.subr.bf16.mxu0 %v7283_v60  ;;  %v7300_v58 = vld [vmem:[%s9270_s9 + $0x444] ss:$16 sps:$4 sm:$0xff]   ;;  %v7303_v60 = vld [vmem:[%s9270_s9 + $0x44c] ss:$16 sps:$4 sm:$0xff]  }
 0x4e9   : > { %6656 = vmatpush3.bf16.msra.mxu1 %v7284_v61  ;;  %6678 = vmatpush3.bf16.msra.mxu0 %v7285_v62  ;;  %v7298_v61 = vld [vmem:[%s9270_s9 + $0x440] ss:$16 sps:$4 sm:$0xff]   ;;  %v7301_v62 = vld [vmem:[%s9270_s9 + $0x448] ss:$16 sps:$4 sm:$0xff]  }
 0x4ea   : > { %4223 = vmatprep.subr.bf16.mxu1 %v7288_v63  ;;  %4264 = vmatprep.subr.bf16.mxu0 %v7291_v0  ;;  %v7306_v63 = vld [vmem:[%s9270_s9 + $0x464] ss:$16 sps:$4 sm:$0xff]   ;;  %v7309_v0 = vld [vmem:[%s9270_s9 + $0x46c] ss:$16 sps:$4 sm:$0xff]  }
 0x55f   : > { %v6613_v32 = vpop.f32.mrb[4].mxu1  ;;  %v6635_v1 = vpop.f32.mrb[8].mxu0 }
 0x560   : > { %v6614_v3 = vpop.f32.mrb[5].mxu1  ;;  %v6636_v4 = vpop.f32.mrb[9].mxu0 }
 0x561   : > { %v6615_v5 = vadd.f32 %v6614_v3, %v6613_v32  ;;  %v6637_v6 = vadd.f32 %v6636_v4, %v6635_v1  ;;  %v6616_v8 = vpop.f32.mrb[6].mxu1  ;;  %v6638_v9 = vpop.f32.mrb[10].mxu0  ;;  %v7304_v32 = vld [vmem:[%s9270_s9 + $0x460] ss:$16 sps:$4 sm:$0xff]   ;;  %v7307_v1 = vld [vmem:[%s9270_s9 + $0x468] ss:$16 sps:$4 sm:$0xff]  }
 0x562   : > { %v6617_v10 = vpop.f32.mrb[7].mxu1  ;;  %v6639_v11 = vpop.f32.mrb[11].mxu0  ;;  %v7315_v3 = vld [vmem:[%s9270_s9 + $0x48c] ss:$16 sps:$4 sm:$0xff]   ;;  %v7310_v4 = vld [vmem:[%s9270_s9 + $0x480] ss:$16 sps:$4 sm:$0xff]  }
 0x563   : > { %v2841_v54 = vadd.f32 %v6615_v5, %v5851_v2  ;;  %v7312_v2 = vld [vmem:[%s9270_s9 + $0x484] ss:$16 sps:$4 sm:$0xff]   ;;  %v7313_v5 = vld [vmem:[%s9270_s9 + $0x488] ss:$16 sps:$4 sm:$0xff]   ;;  %v7321_v8 = vld [vmem:[%s9270_s9 + $0x4ac] ss:$16 sps:$4 sm:$0xff]  }
 0x564   : > { %v7316_v9 = vld [vmem:[%s9270_s9 + $0x4a0] ss:$16 sps:$4 sm:$0xff]   ;;  %v7319_v10 = vld [vmem:[%s9270_s9 + $0x4a8] ss:$16 sps:$4 sm:$0xff]   ;;  %v7324_v11 = vld [vmem:[%s9270_s9 + $0x4c4] ss:$16 sps:$4 sm:$0xff]  }
 0x565   : > { %v2881_v43 = vadd.f32 %v6637_v6, %v2841_v54  ;;  %v7318_v6 = vld [vmem:[%s9270_s9 + $0x4a4] ss:$16 sps:$4 sm:$0xff]   ;;  %v7327_v54 = vld [vmem:[%s9270_s9 + $0x4cc] ss:$16 sps:$4 sm:$0xff]  }
 0x567   : > { %v2886_v12 = vmax.f32 %v2881_v43, 0.0  ;;  %v7322_v43 = vld [vmem:[%s9270_s9 + $0x4c0] ss:$16 sps:$4 sm:$0xff]  }
 0x569   : > { %2888 = vst.msk [vmem:[%s9274_s13] sm:$0x3] %vm2887_vm1, %v2886_v12  ;;  %v7325_v12 = vld [vmem:[%s9270_s9 + $0x4c8] ss:$16 sps:$4 sm:$0xff]  }
 0x59f   : > { %v3369_v22 = vpop.f32.mrb[8].mxu1  ;;  %v3410_v23 = vpop.f32.mrb[12].mxu0 }
 0x5a0   : > { %v3370_v25 = vadd.f32 %v3369_v22, %v2998_v18  ;;  %v3411_v26 = vadd.f32 %v3410_v23, %v3006_v19  ;;  %v3371_v27 = vpop.f32.mrb[9].mxu1  ;;  %v3412_v29 = vpop.f32.mrb[13].mxu0  ;;  %v7336_v18 = vld [vmem:[%s9270_s9 + $0x504] ss:$16 sps:$4 sm:$0xff]   ;;  %v7339_v19 = vld [vmem:[%s9270_s9 + $0x50c] ss:$16 sps:$4 sm:$0xff]  }
 0x5a1   : > { %v3372_v30 = vadd.f32 %v3371_v27, %v3002_v20  ;;  %v3413_v31 = vadd.f32 %v3412_v29, %v3010_v21  ;;  %v3373_v33 = vpop.f32.mrb[10].mxu1  ;;  %v3414_v34 = vpop.f32.mrb[14].mxu0  ;;  %v7334_v20 = vld [vmem:[%s9270_s9 + $0x500] ss:$16 sps:$4 sm:$0xff]   ;;  %v7337_v21 = vld [vmem:[%s9270_s9 + $0x508] ss:$16 sps:$4 sm:$0xff]  }
 0x5a2   : > { %v3417_v35 = vmax.f32 %v3370_v25, 0.0  ;;  %v3419_v36 = vmax.f32 %v3411_v26, 0.0  ;;  %v3374_v37 = vpop.f32.mrb[11].mxu1  ;;  %v3415_v38 = vpop.f32.mrb[15].mxu0  ;;  %v7342_v22 = vld [vmem:[%s9270_s9 + $0x524] ss:$16 sps:$4 sm:$0xff]  }
 0x5a3   : > { %v3418_v39 = vmax.f32 %v3372_v30, 0.0  ;;  %v3420_v40 = vmax.f32 %v3413_v31, 0.0  ;;  %v7345_v23 = vld [vmem:[%s9270_s9 + $0x52c] ss:$16 sps:$4 sm:$0xff]   ;;  %v7343_v25 = vld [vmem:[%s9270_s9 + $0x528] ss:$16 sps:$4 sm:$0xff]  }
 0x5a4   : > { %v3421_v48 = vpack.c.bf16 %v3417_v35, %v3417_v35  ;;  %v3423_v49 = vpack.c.bf16 %v3419_v36, %v3419_v36  ;;  %v7348_v26 = vld [vmem:[%s9270_s9 + $0x544] ss:$16 sps:$4 sm:$0xff]   ;;  %v7351_v27 = vld [vmem:[%s9270_s9 + $0x54c] ss:$16 sps:$4 sm:$0xff]   ;;  %v7346_v29 = vld [vmem:[%s9270_s9 + $0x540] ss:$16 sps:$4 sm:$0xff]  }
 0x5a5   : > { %v3422_v42 = vpack.c.bf16 %v3418_v39, %v3418_v39  ;;  %v3424_v44 = vpack.c.bf16 %v3420_v40, %v3420_v40  ;;  %v7349_v30 = vld [vmem:[%s9270_s9 + $0x548] ss:$16 sps:$4 sm:$0xff]   ;;  %v7354_v31 = vld [vmem:[%s9270_s9 + $0x564] ss:$16 sps:$4 sm:$0xff]   ;;  %v7357_v33 = vld [vmem:[%s9270_s9 + $0x56c] ss:$16 sps:$4 sm:$0xff]   ;;  %v3787_v40 = vrot.slane %v8601_v13, %v7811_v55 }
 0x5a6   : > { %v7352_v34 = vld [vmem:[%s9270_s9 + $0x560] ss:$16 sps:$4 sm:$0xff]   ;;  %v7355_v35 = vld [vmem:[%s9270_s9 + $0x568] ss:$16 sps:$4 sm:$0xff]   ;;  %v7360_v36 = vld [vmem:[%s9270_s9 + $0x584] ss:$16 sps:$4 sm:$0xff]  }
 0x5a7   : > { %3722 = vmatprep.mubr.bf16.mxu1 %v3422_v42  ;;  %3762 = vmatprep.mubr.bf16.mxu0 %v3424_v44  ;;  %v7363_v37 = vld [vmem:[%s9270_s9 + $0x58c] ss:$16 sps:$4 sm:$0xff]   ;;  %v7358_v38 = vld [vmem:[%s9270_s9 + $0x580] ss:$16 sps:$4 sm:$0xff]   ;;  %v7361_v39 = vld [vmem:[%s9270_s9 + $0x588] ss:$16 sps:$4 sm:$0xff]  }
 0x5a8   : > { %3723 = vmatmul.mubr.bf16.vlgmr.msra.gmra.mrb[12].mxu1 %v3421_v48  ;;  %3763 = vmatmul.mubr.bf16.vlgmr.msra.gmra.mrb[16].mxu0 %v3423_v49  ;;  %v7369_v42 = vld [vmem:[%s9270_s9 + $0x5ac] ss:$16 sps:$4 sm:$0xff]   ;;  %v7364_v44 = vld [vmem:[%s9270_s9 + $0x5a0] ss:$16 sps:$4 sm:$0xff]   ;;  %v7367_v13 = vld [vmem:[%s9270_s9 + $0x5a8] ss:$16 sps:$4 sm:$0xff]  }
 0x5a9   : > { %4224 = vmatpush1.bf16.msra.mxu1 %v7286_v46  ;;  %4265 = vmatpush1.bf16.msra.mxu0 %v7289_v47  ;;  %v3802_v46 = vrot.slane %v8608_v15, %v7811_v55  ;;  %v3794_v47 = vmul.f32 %v3787_v40, %v8610_v16  ;;  %v7372_v48 = vld [vmem:[%s9270_s9 + $0x5c4] ss:$16 sps:$4 sm:$0xff]   ;;  %v7375_v49 = vld [vmem:[%s9270_s9 + $0x5cc] ss:$16 sps:$4 sm:$0xff]   ;;  %v7373_v15 = vld [vmem:[%s9270_s9 + $0x5c8] ss:$16 sps:$4 sm:$0xff]  }
 0x5aa   : > { %4255 = vmatprep.mubr.bf16.mxu1 %v3814_v52  ;;  %4296 = vmatprep.mubr.bf16.mxu0 %v3814_v52  ;;  %v7381_v52 = vld [vmem:[%s9270_s9 + $0x5ec] ss:$16 sps:$4 sm:$0xff]  }
 0x5ab   : > { %4225 = vmatprep.subr.bf16.mxu1 %v7294_v50  ;;  %4266 = vmatprep.subr.bf16.mxu0 %v7297_v51  ;;  %v7370_v50 = vld [vmem:[%s9270_s9 + $0x5c0] ss:$16 sps:$4 sm:$0xff]   ;;  %v3809_v16 = vadd.f32 %v3802_v46, %v3794_v47  ;;  %v7378_v51 = vld [vmem:[%s9270_s9 + $0x5e4] ss:$16 sps:$4 sm:$0xff]  }
 0x5ac   : > { %v8921_v47 = vld [vmem:[%s9268_s7 + $0x6] sm:$0x3] }
 0x5ad   : > { %4226 = vmatpush1.bf16.msra.mxu1 %v7292_v53  ;;  %4267 = vmatpush1.bf16.msra.mxu0 %v7295_v56  ;;  %v7376_v53 = vld [vmem:[%s9270_s9 + $0x5e0] ss:$16 sps:$4 sm:$0xff]   ;;  %v7379_v56 = vld [vmem:[%s9270_s9 + $0x5e8] ss:$16 sps:$4 sm:$0xff]  }
 0x5ae   : > { %4227 = vmatprep.subr.bf16.mxu1 %v7300_v58  ;;  %4268 = vmatprep.subr.bf16.mxu0 %v7303_v60  ;;  %v3811_v58 = vmax.f32 %v3809_v16, 0.0 }
 0x5b0   : > { %v3813_v60 = vpack.c.bf16 %v3811_v58, %v3811_v58 }
 0x5b1   : > { %4228 = vmatpush1.bf16.msra.mxu1 %v7298_v61  ;;  %4269 = vmatpush1.bf16.msra.mxu0 %v7301_v62  ;;  %v7382_v61 = vld [vmem:[%s9272_s11 + $0x240] sm:$0xff]  }
 0x5b2   : > { %4229 = vmatprep.subr.bf16.mxu1 %v7306_v63  ;;  %4270 = vmatprep.subr.bf16.mxu0 %v7309_v0  ;;  %v7383_v62 = vld [vmem:[%s9272_s11 + $0x2c0] sm:$0xff]  }
 0x5b3   : > { %v7384_v63 = vld [vmem:[%s9272_s11 + $0x200] sm:$0xff]  }
 0x5b4   : > { %v7385_v0 = vld [vmem:[%s9272_s11 + $0x280] sm:$0xff]  }
 0x5b5   : > { %4230 = vmatpush1.bf16.msra.mxu1 %v7304_v32  ;;  %4271 = vmatpush1.bf16.msra.mxu0 %v7307_v1  ;;  %v7386_v32 = vld [vmem:[%s9272_s11 + $0x248] sm:$0xff]  }
 0x5b6   : > { %4231 = vmatprep.subr.bf16.mxu1 %v7312_v2  ;;  %4272 = vmatprep.subr.bf16.mxu0 %v7315_v3  ;;  %v7387_v1 = vld [vmem:[%s9272_s11 + $0x2c8] sm:$0xff]  }
 0x5b7   : > { %v7388_v2 = vld [vmem:[%s9272_s11 + $0x208] sm:$0xff]  }
 0x5b8   : > { %v7389_v3 = vld [vmem:[%s9272_s11 + $0x288] sm:$0xff]  }
 0x5b9   : > { %4232 = vmatpush1.bf16.msra.mxu1 %v7310_v4  ;;  %4273 = vmatpush1.bf16.msra.mxu0 %v7313_v5  ;;  %v7390_v4 = vld [vmem:[%s9272_s11 + $0x250] sm:$0xff]  }
 0x5ba   : > { %4233 = vmatprep.subr.bf16.mxu1 %v7318_v6  ;;  %4274 = vmatprep.subr.bf16.mxu0 %v7321_v8  ;;  %v7391_v5 = vld [vmem:[%s9272_s11 + $0x2d0] sm:$0xff]  }
 0x5bb   : > { %v7392_v6 = vld [vmem:[%s9272_s11 + $0x210] sm:$0xff]  }
 0x5bc   : > { %v7393_v8 = vld [vmem:[%s9272_s11 + $0x290] sm:$0xff]  }
 0x5bd   : > { %4234 = vmatpush1.bf16.msra.mxu1 %v7316_v9  ;;  %4275 = vmatpush1.bf16.msra.mxu0 %v7319_v10  ;;  %v7394_v9 = vld [vmem:[%s9272_s11 + $0x258] sm:$0xff]  }
 0x5be   : > { %4235 = vmatprep.subr.bf16.mxu1 %v7324_v11  ;;  %4276 = vmatprep.subr.bf16.mxu0 %v7327_v54  ;;  %v7395_v10 = vld [vmem:[%s9272_s11 + $0x2d8] sm:$0xff]  }
 0x5bf   : > { %v7396_v11 = vld [vmem:[%s9272_s11 + $0x218] sm:$0xff]  }
 0x5c0   : > { %v7397_v54 = vld [vmem:[%s9272_s11 + $0x298] sm:$0xff]  }
 0x5c1   : > { %4236 = vmatpush1.bf16.msra.mxu1 %v7322_v43  ;;  %4277 = vmatpush1.bf16.msra.mxu0 %v7325_v12  ;;  %v7398_v43 = vld [vmem:[%s9272_s11 + $0x260] sm:$0xff]  }
 0x5c2   : > { %4237 = vmatprep.subr.bf16.mxu1 %v7330_v14  ;;  %4278 = vmatprep.subr.bf16.mxu0 %v7333_v45  ;;  %v7399_v12 = vld [vmem:[%s9272_s11 + $0x2e0] sm:$0xff]  }
 0x5c3   : > { %v7400_v14 = vld [vmem:[%s9272_s11 + $0x220] sm:$0xff]  }
 0x5c4   : > { %v7401_v45 = vld [vmem:[%s9272_s11 + $0x2a0] sm:$0xff]  }
 0x5c5   : > { %4238 = vmatpush1.bf16.msra.mxu1 %v7328_v7  ;;  %4279 = vmatpush1.bf16.msra.mxu0 %v7331_v17  ;;  %v7402_v7 = vld [vmem:[%s9272_s11 + $0x268] sm:$0xff]  }
 0x5c6   : > { %4239 = vmatprep.subr.bf16.mxu1 %v7336_v18  ;;  %4280 = vmatprep.subr.bf16.mxu0 %v7339_v19  ;;  %v7403_v17 = vld [vmem:[%s9272_s11 + $0x2e8] sm:$0xff]  }
 0x5c7   : > { %v7404_v18 = vld [vmem:[%s9272_s11 + $0x228] sm:$0xff]  }
 0x5c8   : > { %v7405_v19 = vld [vmem:[%s9272_s11 + $0x2a8] sm:$0xff]  }
 0x5c9   : > { %4240 = vmatpush1.bf16.msra.mxu1 %v7334_v20  ;;  %4281 = vmatpush1.bf16.msra.mxu0 %v7337_v21  ;;  %v7406_v20 = vld [vmem:[%s9272_s11 + $0x270] sm:$0xff]  }
 0x5ca   : > { %4241 = vmatprep.subr.bf16.mxu1 %v7342_v22  ;;  %4282 = vmatprep.subr.bf16.mxu0 %v7345_v23  ;;  %v7407_v21 = vld [vmem:[%s9272_s11 + $0x2f0] sm:$0xff]  }
 0x5cb   : > { %v7408_v22 = vld [vmem:[%s9272_s11 + $0x230] sm:$0xff]  }
 0x5cc   : > { %v7409_v23 = vld [vmem:[%s9272_s11 + $0x2b0] sm:$0xff]  }
 0x5cd   : > { %4242 = vmatpush1.bf16.msra.mxu1 %v7340_v24  ;;  %4283 = vmatpush1.bf16.msra.mxu0 %v7343_v25  ;;  %v7410_v24 = vld [vmem:[%s9272_s11 + $0x278] sm:$0xff]  }
 0x5ce   : > { %4243 = vmatprep.subr.bf16.mxu1 %v7348_v26  ;;  %4284 = vmatprep.subr.bf16.mxu0 %v7351_v27  ;;  %v7411_v25 = vld [vmem:[%s9272_s11 + $0x2f8] sm:$0xff]  }
 0x5cf   : > { %v7412_v26 = vld [vmem:[%s9272_s11 + $0x238] sm:$0xff]  }
 0x5d0   : > { %v7413_v27 = vld [vmem:[%s9272_s11 + $0x2b8] sm:$0xff]  }
 0x5d1   : > { %4244 = vmatpush1.bf16.msra.mxu1 %v7346_v29  ;;  %4285 = vmatpush1.bf16.msra.mxu0 %v7349_v30  ;;  %v7416_v29 = vld [vmem:[%s9270_s9 + $0x604] ss:$16 sps:$4 sm:$0xff]   ;;  %v7419_v30 = vld [vmem:[%s9270_s9 + $0x60c] ss:$16 sps:$4 sm:$0xff]  }
 0x5d2   : > { %4245 = vmatprep.subr.bf16.mxu1 %v7354_v31  ;;  %4286 = vmatprep.subr.bf16.mxu0 %v7357_v33 }
 0x5d5   : > { %4246 = vmatpush1.bf16.msra.mxu1 %v7352_v34  ;;  %4287 = vmatpush1.bf16.msra.mxu0 %v7355_v35  ;;  %v6080_v34 = vld [vmem:[%s9273_s12 + $0x1] ss:$0 sm:$0xff] }
 0x5d6   : > { %4247 = vmatprep.subr.bf16.mxu1 %v7360_v36  ;;  %4288 = vmatprep.subr.bf16.mxu0 %v7363_v37 }
 0x5d9   : > { %4248 = vmatpush1.bf16.msra.mxu1 %v7358_v38  ;;  %4289 = vmatpush1.bf16.msra.mxu0 %v7361_v39 }
 0x5da   : > { %4249 = vmatprep.subr.bf16.mxu1 %v7366_v41  ;;  %4290 = vmatprep.subr.bf16.mxu0 %v7369_v42 }
 0x5dd   : > { %4250 = vmatpush1.bf16.msra.mxu1 %v7364_v44  ;;  %4291 = vmatpush1.bf16.msra.mxu0 %v7367_v13 }
 0x5de   : > { %4251 = vmatprep.subr.bf16.mxu1 %v7372_v48  ;;  %4292 = vmatprep.subr.bf16.mxu0 %v7375_v49  ;;  %v4679_v48 = vrot.slane %v8921_v47, %v7821_v57  ;;  %v8928_v49 = vld [vmem:[%s9269_s8 + $0x6] sm:$0x3] }
 0x5df   : > { %v4694_v16 = vrot.slane %v8928_v49, %v7821_v57 }
 0x5e1   : > { %4252 = vmatpush1.bf16.msra.mxu1 %v7370_v50  ;;  %4293 = vmatpush1.bf16.msra.mxu0 %v7373_v15  ;;  %v8930_v50 = vpop.permute.xlu1 %4668  ;;  %v6179_v15 = vld [vmem:[%s9271_s10 + $0x8] sm:$0xf] }
 0x5e2   : > { %4253 = vmatprep.subr.bf16.mxu1 %v7378_v51  ;;  %4294 = vmatprep.subr.bf16.mxu0 %v7381_v52  ;;  %v4683_v51 = vmul.f32 %v4679_v48, %v8930_v50  ;;  %v3886_v52 = vrot.slane %v6179_v15, %v7811_v55  ;;  %v3898_v58 = vrot.slane %v6179_v15, %v7826_v59  ;;  %v7458_v48 = vld [vmem:[%s9270_s9 + $0x6e4] ss:$16 sps:$4 sm:$0xff]  }
 0x5e5   : > { %4254 = vmatpush1.bf16.msra.mxu1 %v7376_v53  ;;  %4295 = vmatpush1.bf16.msra.mxu0 %v7379_v56  ;;  %v3894_v53 = vrot.slane %v6179_v15, %v7891_v28  ;;  %v3890_v56 = vrot.slane %v6179_v15, %v7821_v57  ;;  %v7461_v15 = vld [vmem:[%s9270_s9 + $0x6ec] ss:$16 sps:$4 sm:$0xff]  }
 0x5e6   : > { %6685 = vmatprep.subr.bf16.mxu1 %v7382_v61  ;;  %6707 = vmatprep.subr.bf16.mxu0 %v7383_v62  ;;  %v4698_v62 = vadd.f32 %v4694_v16, %v4683_v51  ;;  %v7456_v16 = vld [vmem:[%s9270_s9 + $0x6e0] ss:$16 sps:$4 sm:$0xff]   ;;  %v7459_v51 = vld [vmem:[%s9270_s9 + $0x6e8] ss:$16 sps:$4 sm:$0xff]  }
 0x5e8   : > { %4256 = vmatmul.mubr.bf16.vlgmr.msra.gmra.mrb[16].mxu1 %v3813_v60  ;;  %4297 = vmatmul.mubr.bf16.vlgmr.msra.gmra.mrb[20].mxu0 %v3813_v60 }
 0x5e9   : > { %6686 = vmatpush3.bf16.msra.mxu1 %v7384_v63  ;;  %6708 = vmatpush3.bf16.msra.mxu0 %v7385_v0 }
 0x5ea   : > { %6687 = vmatprep.subr.bf16.mxu1 %v7386_v32  ;;  %6709 = vmatprep.subr.bf16.mxu0 %v7387_v1 }
 0x5ed   : > { %6688 = vmatpush3.bf16.msra.mxu1 %v7388_v2  ;;  %6710 = vmatpush3.bf16.msra.mxu0 %v7389_v3 }
 0x5ee   : > { %6689 = vmatprep.subr.bf16.mxu1 %v7390_v4  ;;  %6711 = vmatprep.subr.bf16.mxu0 %v7391_v5 }
 0x5f1   : > { %6690 = vmatpush3.bf16.msra.mxu1 %v7392_v6  ;;  %6712 = vmatpush3.bf16.msra.mxu0 %v7393_v8 }
 0x5f2   : > { %6691 = vmatprep.subr.bf16.mxu1 %v7394_v9  ;;  %6713 = vmatprep.subr.bf16.mxu0 %v7395_v10 }
 0x5f5   : > { %6692 = vmatpush3.bf16.msra.mxu1 %v7396_v11  ;;  %6714 = vmatpush3.bf16.msra.mxu0 %v7397_v54 }
 0x5f6   : > { %6693 = vmatprep.subr.bf16.mxu1 %v7398_v43  ;;  %6715 = vmatprep.subr.bf16.mxu0 %v7399_v12  ;;  %v4700_v43 = vmax.f32 %v4698_v62, 0.0  ;;  %v7468_v62 = vld [vmem:[%s9270_s9 + $0x720] ss:$16 sps:$4 sm:$0xff]  }
 0x5f9   : > { %6694 = vmatpush3.bf16.msra.mxu1 %v7400_v14  ;;  %6716 = vmatpush3.bf16.msra.mxu0 %v7401_v45  ;;  %v7414_v45 = vld [vmem:[%s9270_s9 + $0x600] ss:$16 sps:$4 sm:$0xff]  }
 0x5fa   : > { %6695 = vmatprep.subr.bf16.mxu1 %v7402_v7  ;;  %6717 = vmatprep.subr.bf16.mxu0 %v7403_v17  ;;  %v7417_v7 = vld [vmem:[%s9270_s9 + $0x608] ss:$16 sps:$4 sm:$0xff]  }
 0x5fd   : > { %6696 = vmatpush3.bf16.msra.mxu1 %v7404_v18  ;;  %6718 = vmatpush3.bf16.msra.mxu0 %v7405_v19  ;;  %v7422_v19 = vld [vmem:[%s9270_s9 + $0x624] ss:$16 sps:$4 sm:$0xff]  }
 0x5fe   : > { %6697 = vmatprep.subr.bf16.mxu1 %v7406_v20  ;;  %6719 = vmatprep.subr.bf16.mxu0 %v7407_v21  ;;  %v7425_v20 = vld [vmem:[%s9270_s9 + $0x62c] ss:$16 sps:$4 sm:$0xff]   ;;  %v4702_v21 = vpack.c.bf16 %v4700_v43, %v4700_v43  ;;  %v7494_v43 = vld [vmem:[%s9270_s9 + $0x7a4] ss:$16 sps:$4 sm:$0xff]  }
 0x601   : > { %6698 = vmatpush3.bf16.msra.mxu1 %v7408_v22  ;;  %6720 = vmatpush3.bf16.msra.mxu0 %v7409_v23  ;;  %v7420_v22 = vld [vmem:[%s9270_s9 + $0x620] ss:$16 sps:$4 sm:$0xff]   ;;  %v7423_v23 = vld [vmem:[%s9270_s9 + $0x628] ss:$16 sps:$4 sm:$0xff]  }
 0x602   : > { %6699 = vmatprep.subr.bf16.mxu1 %v7410_v24  ;;  %6721 = vmatprep.subr.bf16.mxu0 %v7411_v25  ;;  %v7428_v24 = vld [vmem:[%s9270_s9 + $0x644] ss:$16 sps:$4 sm:$0xff]   ;;  %v7431_v25 = vld [vmem:[%s9270_s9 + $0x64c] ss:$16 sps:$4 sm:$0xff]  }
 0x605   : > { %6700 = vmatpush3.bf16.msra.mxu1 %v7412_v26  ;;  %6722 = vmatpush3.bf16.msra.mxu0 %v7413_v27  ;;  %v7426_v26 = vld [vmem:[%s9270_s9 + $0x640] ss:$16 sps:$4 sm:$0xff]   ;;  %v7429_v27 = vld [vmem:[%s9270_s9 + $0x648] ss:$16 sps:$4 sm:$0xff]  }
 0x606   : > { %5111 = vmatprep.subr.bf16.mxu1 %v7416_v29  ;;  %5152 = vmatprep.subr.bf16.mxu0 %v7419_v30  ;;  %v7434_v29 = vld [vmem:[%s9270_s9 + $0x664] ss:$16 sps:$4 sm:$0xff]   ;;  %v7437_v30 = vld [vmem:[%s9270_s9 + $0x66c] ss:$16 sps:$4 sm:$0xff]  }
 0x67b   : > { %v6657_v31 = vpop.f32.mrb[12].mxu1  ;;  %v6679_v33 = vpop.f32.mrb[16].mxu0 }
 0x67c   : > { %v6658_v35 = vpop.f32.mrb[13].mxu1  ;;  %v6680_v36 = vpop.f32.mrb[17].mxu0 }
 0x67d   : > { %v6659_v37 = vadd.f32 %v6658_v35, %v6657_v31  ;;  %v6681_v38 = vadd.f32 %v6680_v36, %v6679_v33  ;;  %v6660_v39 = vpop.f32.mrb[14].mxu1  ;;  %v6682_v40 = vpop.f32.mrb[18].mxu0  ;;  %v7432_v31 = vld [vmem:[%s9270_s9 + $0x660] ss:$16 sps:$4 sm:$0xff]   ;;  %v7435_v33 = vld [vmem:[%s9270_s9 + $0x668] ss:$16 sps:$4 sm:$0xff]  }
 0x67e   : > { %v6661_v41 = vpop.f32.mrb[15].mxu1  ;;  %v6683_v42 = vpop.f32.mrb[19].mxu0  ;;  %v7443_v35 = vld [vmem:[%s9270_s9 + $0x68c] ss:$16 sps:$4 sm:$0xff]   ;;  %v7438_v36 = vld [vmem:[%s9270_s9 + $0x680] ss:$16 sps:$4 sm:$0xff]  }
 0x67f   : > { %v3725_v44 = vadd.f32 %v6659_v37, %v6080_v34  ;;  %v7440_v34 = vld [vmem:[%s9270_s9 + $0x684] ss:$16 sps:$4 sm:$0xff]   ;;  %v7441_v37 = vld [vmem:[%s9270_s9 + $0x688] ss:$16 sps:$4 sm:$0xff]   ;;  %v7449_v39 = vld [vmem:[%s9270_s9 + $0x6ac] ss:$16 sps:$4 sm:$0xff]  }
 0x680   : > { %v7444_v40 = vld [vmem:[%s9270_s9 + $0x6a0] ss:$16 sps:$4 sm:$0xff]   ;;  %v7447_v41 = vld [vmem:[%s9270_s9 + $0x6a8] ss:$16 sps:$4 sm:$0xff]   ;;  %v7452_v42 = vld [vmem:[%s9270_s9 + $0x6c4] ss:$16 sps:$4 sm:$0xff]  }
 0x681   : > { %v3765_v13 = vadd.f32 %v6681_v38, %v3725_v44  ;;  %v7446_v38 = vld [vmem:[%s9270_s9 + $0x6a4] ss:$16 sps:$4 sm:$0xff]   ;;  %v7455_v44 = vld [vmem:[%s9270_s9 + $0x6cc] ss:$16 sps:$4 sm:$0xff]  }
 0x683   : > { %v3770_v46 = vmax.f32 %v3765_v13, 0.0  ;;  %v7450_v13 = vld [vmem:[%s9270_s9 + $0x6c0] ss:$16 sps:$4 sm:$0xff]  }
 0x685   : > { %3772 = vrot.lane.b32.xlu1 %v3770_v46, %s7573_s28  ;;  %v7453_v46 = vld [vmem:[%s9270_s9 + $0x6c8] ss:$16 sps:$4 sm:$0xff]  }
 0x6bb   : > { %v4257_v60 = vpop.f32.mrb[16].mxu1  ;;  %v4298_v61 = vpop.f32.mrb[20].mxu0 }
 0x6bc   : > { %v4258_v63 = vadd.f32 %v4257_v60, %v3886_v52  ;;  %v4299_v0 = vadd.f32 %v4298_v61, %v3894_v53  ;;  %v4259_v32 = vpop.f32.mrb[17].mxu1  ;;  %v4300_v1 = vpop.f32.mrb[21].mxu0  ;;  %v7464_v52 = vld [vmem:[%s9270_s9 + $0x704] ss:$16 sps:$4 sm:$0xff]   ;;  %v7467_v53 = vld [vmem:[%s9270_s9 + $0x70c] ss:$16 sps:$4 sm:$0xff]  }
 0x6bd   : > { %v4260_v2 = vadd.f32 %v4259_v32, %v3890_v56  ;;  %v4301_v3 = vadd.f32 %v4300_v1, %v3898_v58  ;;  %v4261_v4 = vpop.f32.mrb[18].mxu1  ;;  %v4302_v5 = vpop.f32.mrb[22].mxu0  ;;  %v7462_v56 = vld [vmem:[%s9270_s9 + $0x700] ss:$16 sps:$4 sm:$0xff]   ;;  %v7465_v58 = vld [vmem:[%s9270_s9 + $0x708] ss:$16 sps:$4 sm:$0xff]  }
 0x6be   : > { %v4305_v6 = vmax.f32 %v4258_v63, 0.0  ;;  %v4307_v8 = vmax.f32 %v4299_v0, 0.0  ;;  %v4262_v9 = vpop.f32.mrb[19].mxu1  ;;  %v4303_v10 = vpop.f32.mrb[23].mxu0  ;;  %v7470_v60 = vld [vmem:[%s9270_s9 + $0x724] ss:$16 sps:$4 sm:$0xff]  }
 0x6bf   : > { %v4306_v11 = vmax.f32 %v4260_v2, 0.0  ;;  %v4308_v54 = vmax.f32 %v4301_v3, 0.0  ;;  %v7473_v61 = vld [vmem:[%s9270_s9 + $0x72c] ss:$16 sps:$4 sm:$0xff]   ;;  %v7471_v63 = vld [vmem:[%s9270_s9 + $0x728] ss:$16 sps:$4 sm:$0xff]  }
 0x6c0   : > { %v4309_v17 = vpack.c.bf16 %v4305_v6, %v4305_v6  ;;  %v4311_v18 = vpack.c.bf16 %v4307_v8, %v4307_v8  ;;  %v7476_v0 = vld [vmem:[%s9270_s9 + $0x744] ss:$16 sps:$4 sm:$0xff]   ;;  %v7479_v32 = vld [vmem:[%s9270_s9 + $0x74c] ss:$16 sps:$4 sm:$0xff]   ;;  %v7474_v1 = vld [vmem:[%s9270_s9 + $0x740] ss:$16 sps:$4 sm:$0xff]  }
 0x6c1   : > { %v4310_v12 = vpack.c.bf16 %v4306_v11, %v4306_v11  ;;  %v4312_v14 = vpack.c.bf16 %v4308_v54, %v4308_v54  ;;  %v7477_v2 = vld [vmem:[%s9270_s9 + $0x748] ss:$16 sps:$4 sm:$0xff]   ;;  %v7482_v3 = vld [vmem:[%s9270_s9 + $0x764] ss:$16 sps:$4 sm:$0xff]   ;;  %v7485_v4 = vld [vmem:[%s9270_s9 + $0x76c] ss:$16 sps:$4 sm:$0xff]   ;;  %v4675_v54 = vrot.slane %v8921_v47, %v7811_v55 }
 0x6c2   : > { %v7480_v5 = vld [vmem:[%s9270_s9 + $0x760] ss:$16 sps:$4 sm:$0xff]   ;;  %v7483_v6 = vld [vmem:[%s9270_s9 + $0x768] ss:$16 sps:$4 sm:$0xff]   ;;  %v7488_v8 = vld [vmem:[%s9270_s9 + $0x784] ss:$16 sps:$4 sm:$0xff]  }
 0x6c3   : > { %4610 = vmatprep.mubr.bf16.mxu1 %v4310_v12  ;;  %4650 = vmatprep.mubr.bf16.mxu0 %v4312_v14  ;;  %v7491_v9 = vld [vmem:[%s9270_s9 + $0x78c] ss:$16 sps:$4 sm:$0xff]   ;;  %v7486_v10 = vld [vmem:[%s9270_s9 + $0x780] ss:$16 sps:$4 sm:$0xff]   ;;  %v7489_v11 = vld [vmem:[%s9270_s9 + $0x788] ss:$16 sps:$4 sm:$0xff]  }
 0x6c4   : > { %4611 = vmatmul.mubr.bf16.vlgmr.msra.gmra.mrb[20].mxu1 %v4309_v17  ;;  %4651 = vmatmul.mubr.bf16.vlgmr.msra.gmra.mrb[24].mxu0 %v4311_v18  ;;  %v7497_v12 = vld [vmem:[%s9270_s9 + $0x7ac] ss:$16 sps:$4 sm:$0xff]   ;;  %v7492_v14 = vld [vmem:[%s9270_s9 + $0x7a0] ss:$16 sps:$4 sm:$0xff]   ;;  %v7495_v47 = vld [vmem:[%s9270_s9 + $0x7a8] ss:$16 sps:$4 sm:$0xff]  }
 0x6c5   : > { %5112 = vmatpush1.bf16.msra.mxu1 %v7414_v45  ;;  %5153 = vmatpush1.bf16.msra.mxu0 %v7417_v7  ;;  %v4690_v45 = vrot.slane %v8928_v49, %v7811_v55  ;;  %v4682_v7 = vmul.f32 %v4675_v54, %v8930_v50  ;;  %v7500_v17 = vld [vmem:[%s9270_s9 + $0x7c4] ss:$16 sps:$4 sm:$0xff]   ;;  %v7503_v18 = vld [vmem:[%s9270_s9 + $0x7cc] ss:$16 sps:$4 sm:$0xff]   ;;  %v7498_v49 = vld [vmem:[%s9270_s9 + $0x7c0] ss:$16 sps:$4 sm:$0xff]  }
 0x6c6   : > { %5143 = vmatprep.mubr.bf16.mxu1 %v4702_v21  ;;  %5184 = vmatprep.mubr.bf16.mxu0 %v4702_v21  ;;  %v7501_v50 = vld [vmem:[%s9270_s9 + $0x7c8] ss:$16 sps:$4 sm:$0xff]   ;;  %v7506_v21 = vld [vmem:[%s9270_s9 + $0x7e4] ss:$16 sps:$4 sm:$0xff]  }
 0x6c7   : > { %5113 = vmatprep.subr.bf16.mxu1 %v7422_v19  ;;  %5154 = vmatprep.subr.bf16.mxu0 %v7425_v20  ;;  %v4697_v20 = vadd.f32 %v4690_v45, %v4682_v7  ;;  %v6408_v45 = vld [vmem:[%s9271_s10 + $0xc] sm:$0xf] }
 0x6c8   : > { %v4774_v7 = vrot.slane %v6408_v45, %v7811_v55 }
 0x6c9   : > { %5114 = vmatpush1.bf16.msra.mxu1 %v7420_v22  ;;  %5155 = vmatpush1.bf16.msra.mxu0 %v7423_v23  ;;  %v7509_v22 = vld [vmem:[%s9270_s9 + $0x7ec] ss:$16 sps:$4 sm:$0xff]   ;;  %v7504_v23 = vld [vmem:[%s9270_s9 + $0x7e0] ss:$16 sps:$4 sm:$0xff]  }
 0x6ca   : > { %5115 = vmatprep.subr.bf16.mxu1 %v7428_v24  ;;  %5156 = vmatprep.subr.bf16.mxu0 %v7431_v25  ;;  %v7507_v24 = vld [vmem:[%s9270_s9 + $0x7e8] ss:$16 sps:$4 sm:$0xff]   ;;  %v4699_v25 = vmax.f32 %v4697_v20, 0.0 }
 0x6cd   : > { %5116 = vmatpush1.bf16.msra.mxu1 %v7426_v26  ;;  %5157 = vmatpush1.bf16.msra.mxu0 %v7429_v27  ;;  %v4701_v26 = vpack.c.bf16 %v4699_v25, %v4699_v25  ;;  %v7510_v27 = vld [vmem:[%s9272_s11 + $0x340] sm:$0xff]  }
 0x6ce   : > { %5117 = vmatprep.subr.bf16.mxu1 %v7434_v29  ;;  %5158 = vmatprep.subr.bf16.mxu0 %v7437_v30  ;;  %v7511_v29 = vld [vmem:[%s9272_s11 + $0x3c0] sm:$0xff]  }
 0x6cf   : > { %v7512_v30 = vld [vmem:[%s9272_s11 + $0x300] sm:$0xff]  }
 0x6d1   : > { %5118 = vmatpush1.bf16.msra.mxu1 %v7432_v31  ;;  %5159 = vmatpush1.bf16.msra.mxu0 %v7435_v33  ;;  %v7513_v31 = vld [vmem:[%s9272_s11 + $0x380] sm:$0xff]   ;;  %v7514_v33 = vld [vmem:[%s9272_s11 + $0x348] sm:$0xff]  }
 0x6d2   : > { %5119 = vmatprep.subr.bf16.mxu1 %v7440_v34  ;;  %5160 = vmatprep.subr.bf16.mxu0 %v7443_v35  ;;  %v7515_v34 = vld [vmem:[%s9272_s11 + $0x3c8] sm:$0xff]  }
 0x6d3   : > { %v7516_v35 = vld [vmem:[%s9272_s11 + $0x308] sm:$0xff]  }
 0x6d5   : > { %5120 = vmatpush1.bf16.msra.mxu1 %v7438_v36  ;;  %5161 = vmatpush1.bf16.msra.mxu0 %v7441_v37  ;;  %v7517_v36 = vld [vmem:[%s9272_s11 + $0x388] sm:$0xff]   ;;  %v7518_v37 = vld [vmem:[%s9272_s11 + $0x350] sm:$0xff]  }
 0x6d6   : > { %5121 = vmatprep.subr.bf16.mxu1 %v7446_v38  ;;  %5162 = vmatprep.subr.bf16.mxu0 %v7449_v39  ;;  %v7519_v38 = vld [vmem:[%s9272_s11 + $0x3d0] sm:$0xff]  }
 0x6d7   : > { %v7520_v39 = vld [vmem:[%s9272_s11 + $0x310] sm:$0xff]  }
 0x6d9   : > { %5122 = vmatpush1.bf16.msra.mxu1 %v7444_v40  ;;  %5163 = vmatpush1.bf16.msra.mxu0 %v7447_v41  ;;  %v7521_v40 = vld [vmem:[%s9272_s11 + $0x390] sm:$0xff]   ;;  %v7522_v41 = vld [vmem:[%s9272_s11 + $0x358] sm:$0xff]  }
 0x6da   : > { %5123 = vmatprep.subr.bf16.mxu1 %v7452_v42  ;;  %5164 = vmatprep.subr.bf16.mxu0 %v7455_v44  ;;  %v7523_v42 = vld [vmem:[%s9272_s11 + $0x3d8] sm:$0xff]  }
 0x6db   : > { %v7524_v44 = vld [vmem:[%s9272_s11 + $0x318] sm:$0xff]  }
 0x6dd   : > { %5124 = vmatpush1.bf16.msra.mxu1 %v7450_v13  ;;  %5165 = vmatpush1.bf16.msra.mxu0 %v7453_v46  ;;  %v7525_v13 = vld [vmem:[%s9272_s11 + $0x398] sm:$0xff]   ;;  %v7526_v46 = vld [vmem:[%s9272_s11 + $0x360] sm:$0xff]  }
 0x6de   : > { %5125 = vmatprep.subr.bf16.mxu1 %v7458_v48  ;;  %5166 = vmatprep.subr.bf16.mxu0 %v7461_v15  ;;  %v7527_v48 = vld [vmem:[%s9272_s11 + $0x3e0] sm:$0xff]  }
 0x6df   : > { %v7528_v15 = vld [vmem:[%s9272_s11 + $0x320] sm:$0xff]  }
 0x6e1   : > { %5126 = vmatpush1.bf16.msra.mxu1 %v7456_v16  ;;  %5167 = vmatpush1.bf16.msra.mxu0 %v7459_v51  ;;  %v7529_v16 = vld [vmem:[%s9272_s11 + $0x3a0] sm:$0xff]   ;;  %v7530_v51 = vld [vmem:[%s9272_s11 + $0x368] sm:$0xff]  }
 0x6e2   : > { %5127 = vmatprep.subr.bf16.mxu1 %v7464_v52  ;;  %5168 = vmatprep.subr.bf16.mxu0 %v7467_v53  ;;  %v7531_v52 = vld [vmem:[%s9272_s11 + $0x3e8] sm:$0xff]  }
 0x6e3   : > { %v7532_v53 = vld [vmem:[%s9272_s11 + $0x328] sm:$0xff]  }
 0x6e5   : > { %5128 = vmatpush1.bf16.msra.mxu1 %v7462_v56  ;;  %5169 = vmatpush1.bf16.msra.mxu0 %v7465_v58  ;;  %v7533_v56 = vld [vmem:[%s9272_s11 + $0x3a8] sm:$0xff]   ;;  %v7534_v58 = vld [vmem:[%s9272_s11 + $0x370] sm:$0xff]  }
 0x6e6   : > { %5129 = vmatprep.subr.bf16.mxu1 %v7470_v60  ;;  %5170 = vmatprep.subr.bf16.mxu0 %v7473_v61  ;;  %v7535_v60 = vld [vmem:[%s9272_s11 + $0x3f0] sm:$0xff]  }
 0x6e7   : > { %v7536_v61 = vld [vmem:[%s9272_s11 + $0x330] sm:$0xff]  }
 0x6e9   : > { %5130 = vmatpush1.bf16.msra.mxu1 %v7468_v62  ;;  %5171 = vmatpush1.bf16.msra.mxu0 %v7471_v63  ;;  %v7537_v62 = vld [vmem:[%s9272_s11 + $0x3b0] sm:$0xff]   ;;  %v7538_v63 = vld [vmem:[%s9272_s11 + $0x378] sm:$0xff]  }
 0x6ea   : > { %5131 = vmatprep.subr.bf16.mxu1 %v7476_v0  ;;  %5172 = vmatprep.subr.bf16.mxu0 %v7479_v32  ;;  %v7539_v0 = vld [vmem:[%s9272_s11 + $0x3f8] sm:$0xff]  }
 0x6eb   : > { %v7540_v32 = vld [vmem:[%s9272_s11 + $0x338] sm:$0xff]  }
 0x6ed   : > { %5132 = vmatpush1.bf16.msra.mxu1 %v7474_v1  ;;  %5173 = vmatpush1.bf16.msra.mxu0 %v7477_v2  ;;  %v7541_v1 = vld [vmem:[%s9272_s11 + $0x3b8] sm:$0xff]  }
 0x6ee   : > { %5133 = vmatprep.subr.bf16.mxu1 %v7482_v3  ;;  %5174 = vmatprep.subr.bf16.mxu0 %v7485_v4  ;;  %v6309_v4 = vld [vmem:[%s9273_s12 + $0x2] ss:$0 sm:$0xff] }
 0x6f1   : > { %5134 = vmatpush1.bf16.msra.mxu1 %v7480_v5  ;;  %5175 = vmatpush1.bf16.msra.mxu0 %v7483_v6 }
 0x6f2   : > { %5135 = vmatprep.subr.bf16.mxu1 %v7488_v8  ;;  %5176 = vmatprep.subr.bf16.mxu0 %v7491_v9 }
 0x6f5   : > { %5136 = vmatpush1.bf16.msra.mxu1 %v7486_v10  ;;  %5177 = vmatpush1.bf16.msra.mxu0 %v7489_v11 }
 0x6f6   : > { %5137 = vmatprep.subr.bf16.mxu1 %v7494_v43  ;;  %5178 = vmatprep.subr.bf16.mxu0 %v7497_v12 }
 0x6f7   : > { %v3773_v19 = vpop.permute.xlu1 %3772 }
 0x6f8   : > { %3776 = vst.msk [vmem:[%s9274_s13] sm:$0x3] %vm3775_vm2, %v3773_v19  ;;  %v4786_v19 = vrot.slane %v6408_v45, %v7826_v59 }
 0x6f9   : > { %5138 = vmatpush1.bf16.msra.mxu1 %v7492_v14  ;;  %5179 = vmatpush1.bf16.msra.mxu0 %v7495_v47 }
 0x6fa   : > { %5139 = vmatprep.subr.bf16.mxu1 %v7500_v17  ;;  %5180 = vmatprep.subr.bf16.mxu0 %v7503_v18  ;;  %v4782_v17 = vrot.slane %v6408_v45, %v7891_v28  ;;  %v4778_v18 = vrot.slane %v6408_v45, %v7821_v57 }
 0x6fd   : > { %5140 = vmatpush1.bf16.msra.mxu1 %v7498_v49  ;;  %5181 = vmatpush1.bf16.msra.mxu0 %v7501_v50 }
 0x6fe   : > { %5141 = vmatprep.subr.bf16.mxu1 %v7506_v21  ;;  %5182 = vmatprep.subr.bf16.mxu0 %v7509_v22 }
 0x701   : > { %5142 = vmatpush1.bf16.msra.mxu1 %v7504_v23  ;;  %5183 = vmatpush1.bf16.msra.mxu0 %v7507_v24 }
 0x702   : > { %6729 = vmatprep.subr.bf16.mxu1 %v7510_v27  ;;  %6751 = vmatprep.subr.bf16.mxu0 %v7511_v29 }
 0x704   : > { %5144 = vmatmul.mubr.bf16.vlgmr.msra.gmra.mrb[24].mxu1 %v4701_v26  ;;  %5185 = vmatmul.mubr.bf16.vlgmr.msra.gmra.mrb[28].mxu0 %v4701_v26 }
 0x705   : > { %6730 = vmatpush3.bf16.msra.mxu1 %v7512_v30  ;;  %6752 = vmatpush3.bf16.msra.mxu0 %v7513_v31 }
 0x706   : > { %6731 = vmatprep.subr.bf16.mxu1 %v7514_v33  ;;  %6753 = vmatprep.subr.bf16.mxu0 %v7515_v34 }
 0x709   : > { %6732 = vmatpush3.bf16.msra.mxu1 %v7516_v35  ;;  %6754 = vmatpush3.bf16.msra.mxu0 %v7517_v36 }
 0x70a   : > { %6733 = vmatprep.subr.bf16.mxu1 %v7518_v37  ;;  %6755 = vmatprep.subr.bf16.mxu0 %v7519_v38 }
 0x70d   : > { %6734 = vmatpush3.bf16.msra.mxu1 %v7520_v39  ;;  %6756 = vmatpush3.bf16.msra.mxu0 %v7521_v40  ;;  %v6538_v39 = vld [vmem:[%s9273_s12 + $0x3] ss:$0 sm:$0xff] }
 0x70e   : > { %6735 = vmatprep.subr.bf16.mxu1 %v7522_v41  ;;  %6757 = vmatprep.subr.bf16.mxu0 %v7523_v42 }
 0x711   : > { %6736 = vmatpush3.bf16.msra.mxu1 %v7524_v44  ;;  %6758 = vmatpush3.bf16.msra.mxu0 %v7525_v13 }
 0x712   : > { %6737 = vmatprep.subr.bf16.mxu1 %v7526_v46  ;;  %6759 = vmatprep.subr.bf16.mxu0 %v7527_v48 }
 0x715   : > { %6738 = vmatpush3.bf16.msra.mxu1 %v7528_v15  ;;  %6760 = vmatpush3.bf16.msra.mxu0 %v7529_v16 }
 0x716   : > { %6739 = vmatprep.subr.bf16.mxu1 %v7530_v51  ;;  %6761 = vmatprep.subr.bf16.mxu0 %v7531_v52 }
 0x719   : > { %6740 = vmatpush3.bf16.msra.mxu1 %v7532_v53  ;;  %6762 = vmatpush3.bf16.msra.mxu0 %v7533_v56 }
 0x71a   : > { %6741 = vmatprep.subr.bf16.mxu1 %v7534_v58  ;;  %6763 = vmatprep.subr.bf16.mxu0 %v7535_v60 }
 0x71d   : > { %6742 = vmatpush3.bf16.msra.mxu1 %v7536_v61  ;;  %6764 = vmatpush3.bf16.msra.mxu0 %v7537_v62 }
 0x71e   : > { %6743 = vmatprep.subr.bf16.mxu1 %v7538_v63  ;;  %6765 = vmatprep.subr.bf16.mxu0 %v7539_v0 }
 0x721   : > { %6744 = vmatpush3.bf16.msra.mxu1 %v7540_v32  ;;  %6766 = vmatpush3.bf16.msra.mxu0 %v7541_v1 }
 0x797   : > { %v6701_v2 = vpop.f32.mrb[20].mxu1  ;;  %v6723_v3 = vpop.f32.mrb[24].mxu0 }
 0x798   : > { %v6702_v5 = vpop.f32.mrb[21].mxu1  ;;  %v6724_v6 = vpop.f32.mrb[25].mxu0 }
 0x799   : > { %v6703_v8 = vadd.f32 %v6702_v5, %v6701_v2  ;;  %v6725_v9 = vadd.f32 %v6724_v6, %v6723_v3  ;;  %v6704_v10 = vpop.f32.mrb[22].mxu1  ;;  %v6726_v11 = vpop.f32.mrb[26].mxu0 }
 0x79a   : > { %v6705_v54 = vpop.f32.mrb[23].mxu1  ;;  %v6727_v43 = vpop.f32.mrb[27].mxu0 }
 0x79b   : > { %v4613_v12 = vadd.f32 %v6703_v8, %v6309_v4 }
 0x79d   : > { %v4653_v14 = vadd.f32 %v6725_v9, %v4613_v12 }
 0x79f   : > { %v4658_v47 = vmax.f32 %v4653_v14, 0.0 }
 0x7a1   : > { %4660 = vrot.lane.b32.xlu0 %v4658_v47, %s7574_s23 }
 0x7d7   : > { %v5145_v49 = vpop.f32.mrb[24].mxu1  ;;  %v5186_v50 = vpop.f32.mrb[28].mxu0 }
 0x7d8   : > { %v5146_v20 = vadd.f32 %v5145_v49, %v4774_v7  ;;  %v5187_v21 = vadd.f32 %v5186_v50, %v4782_v17  ;;  %v5147_v22 = vpop.f32.mrb[25].mxu1  ;;  %v5188_v23 = vpop.f32.mrb[29].mxu0 }
 0x7d9   : > { %v5148_v24 = vadd.f32 %v5147_v22, %v4778_v18  ;;  %v5189_v25 = vadd.f32 %v5188_v23, %v4786_v19  ;;  %v5149_v26 = vpop.f32.mrb[26].mxu1  ;;  %v5190_v27 = vpop.f32.mrb[30].mxu0 }
 0x7da   : > { %v5193_v29 = vmax.f32 %v5146_v20, 0.0  ;;  %v5195_v30 = vmax.f32 %v5187_v21, 0.0  ;;  %v5150_v31 = vpop.f32.mrb[27].mxu1  ;;  %v5191_v55 = vpop.f32.mrb[31].mxu0 }
 0x7db   : > { %v5194_v33 = vmax.f32 %v5148_v24, 0.0  ;;  %v5196_v28 = vmax.f32 %v5189_v25, 0.0 }
 0x7dc   : > { %v5197_v35 = vpack.c.bf16 %v5193_v29, %v5193_v29  ;;  %v5199_v59 = vpack.c.bf16 %v5195_v30, %v5195_v30 }
 0x7dd   : > { %v5198_v34 = vpack.c.bf16 %v5194_v33, %v5194_v33  ;;  %v5200_v57 = vpack.c.bf16 %v5196_v28, %v5196_v28 }
 0x7df   : > { %5498 = vmatprep.mubr.bf16.mxu1 %v5198_v34  ;;  %5538 = vmatprep.mubr.bf16.mxu0 %v5200_v57 }
 0x7e0   : > { %5499 = vmatmul.mubr.bf16.vlgmr.msra.gmra.mrb[28].mxu1 %v5197_v35  ;;  %5539 = vmatmul.mubr.bf16.vlgmr.msra.gmra.mrb[32].mxu0 %v5199_v59 }
 0x813   : > { %v4661_v36 = vpop.permute.xlu0 %4660 }
 0x814   : > { %4664 = vst.msk [vmem:[%s9274_s13] sm:$0x3] %vm4663_vm3, %v4661_v36 }
 0x8b3   : > { %v6745_v37 = vpop.f32.mrb[28].mxu1  ;;  %v6767_v38 = vpop.f32.mrb[32].mxu0 }
 0x8b4   : > { %v6746_v40 = vpop.f32.mrb[29].mxu1  ;;  %v6768_v41 = vpop.f32.mrb[33].mxu0 }
 0x8b5   : > { %v6747_v42 = vadd.f32 %v6746_v40, %v6745_v37  ;;  %v6769_v44 = vadd.f32 %v6768_v41, %v6767_v38  ;;  %v6748_v13 = vpop.f32.mrb[30].mxu1  ;;  %v6770_v46 = vpop.f32.mrb[34].mxu0 }
 0x8b6   : > { %v6749_v48 = vpop.f32.mrb[31].mxu1  ;;  %v6771_v15 = vpop.f32.mrb[35].mxu0 }
 0x8b7   : > { %v5501_v16 = vadd.f32 %v6747_v42, %v6538_v39 }
 0x8b9   : > { %v5541_v51 = vadd.f32 %v6769_v44, %v5501_v16 }
 0x8bb   : > { %v5546_v52 = vmax.f32 %v5541_v51, 0.0 }
 0x8bd   : > { %5548 = vrot.lane.b32.xlu1 %v5546_v52, %s7575_s27 }
 0x92f   : > { %v5549_v53 = vpop.permute.xlu1 %5548 }
 0x930   : > { %5552 = vst.msk [vmem:[%s9274_s13] sm:$0x3] %vm5551_vm4, %v5549_v53 }
 0x931 PF: > { %p20_p12 = scmp.ge.s32.totalorder %s7665_s29, 6   ;;  %s9275_s25 = smov %s7560_s26 }
 0x932   : > { %s9276_s26 = smov %s7674_s15  ;;  %s9277_s27 = smov %s7665_s29 }
 0x933   :  { %22 = sbr.rel (!%p20_p12) target bundleno = 2 (0x2), region = 158 }

</bundles_post_ra>
